<compile_context>
chip_gen: v7x
topology: tpu7x:2x2x1
jax: 0.10.0
libtpu: 0.0.40
codegen_flags: <defaults>
</compile_context>

<pallas_src>
import functools

import jax
import jax.numpy as jnp
from jax.experimental import pallas as pl
from jax.experimental.pallas import tpu as pltpu


def _round_up(x, m):
    return (x + m - 1) // m * m


@functools.lru_cache(maxsize=1)
def _vmem_ceiling_bytes():
    """Generation-aware VMEM ceiling (~75% of per-core capacity, capped at 100 MiB)."""
    try:
        cap = int(getattr(pltpu.get_tpu_info(), "vmem_capacity_bytes", 0))
    except Exception:
        cap = 0
    if cap <= 0:
        return 64 * 1024 * 1024          # unknown chip: conservative, safe everywhere
    return min(cap * 3 // 4, 100 * 1024 * 1024)


def _make_gru_kernel(L, T, T_pad, Tc, FL, B_tile, H_pad, unroll, hoist_whh):
    """Build the Pallas kernel body. All sizes are static / already padded."""
    n_chunks = T_pad // Tc

    def kernel(x_ref, *refs):
        # refs: [w_ih_T, w_hh_T, b_gi, b_hn] * L, fc_w_T, fc_b, out, gi_scr, seq_scr
        layer_refs = refs[: 4 * L]
        fc_w_ref = refs[4 * L]
        fc_b_ref = refs[4 * L + 1]
        out_ref = refs[4 * L + 2]
        gi_ref = refs[4 * L + 3]      # (Tc*B_tile, 3*H_pad) f32   scratch
        seq_ref = refs[4 * L + 4]     # (T_pad*B_tile, H_pad) bf16 scratch (single buffer)

        in_ref = x_ref                # (T_pad*B_tile, in_pad) bf16
        for layer in range(L):
            w_ih_ref = layer_refs[4 * layer]          # (in_pad, 3*H_pad) bf16
            w_hh_ref = layer_refs[4 * layer + 1]      # (H_pad, 3*H_pad)  bf16
            b_gi = layer_refs[4 * layer + 2][...]     # (1, 3*H_pad) f32 (b_ih + b_hh[r,z])
            # hoist the b_hn broadcast out of the time loop (JAX does not CSE broadcasts)
            b_hn_b = jnp.broadcast_to(layer_refs[4 * layer + 3][...], (B_tile, H_pad))
            # only pin w_hh in vregs when it comfortably fits the register file
            w_hh_val = w_hh_ref[...] if hoist_whh else None

            h = jnp.zeros((B_tile, H_pad), jnp.float32)

            for c in range(n_chunks):
                # ---- one big MXU matmul: input projection for this time chunk
                row0 = c * Tc * B_tile
                xc = in_ref[pl.ds(row0, Tc * B_tile), :]               # bf16
                gi_ref[...] = jnp.dot(xc, w_ih_ref[...],
                                      preferred_element_type=jnp.float32) + b_gi

                # ---- serial recurrence; h_t overwrites this chunk's (dead) input rows
                def step(tl, h, c=c):
                    w_hh = w_hh_val if hoist_whh else w_hh_ref[...]
                    off = pl.multiple_of(tl * B_tile, B_tile)
                    gi = gi_ref[pl.ds(off, B_tile), :]                 # (B_tile, 3*H_pad)
                    gh = jnp.dot(h.astype(jnp.bfloat16), w_hh,
                                 preferred_element_type=jnp.float32)
                    r = jax.nn.sigmoid(gi[:, :H_pad] + gh[:, :H_pad])
                    z = jax.nn.sigmoid(gi[:, H_pad:2 * H_pad] + gh[:, H_pad:2 * H_pad])
                    n = jnp.tanh(gi[:, 2 * H_pad:] + r * (gh[:, 2 * H_pad:] + b_hn_b))
                    h_new = (1.0 - z) * n + z * h
                    row = pl.multiple_of((c * Tc + tl) * B_tile, B_tile)
                    seq_ref[pl.ds(row, B_tile), :] = h_new.astype(jnp.bfloat16)
                    return h_new

                h = jax.lax.fori_loop(0, Tc, step, h, unroll=unroll)

            in_ref = seq_ref   # this layer's sequence feeds the next layer's projection

        # ---- batched FC head: last FL real timesteps, one matmul, lane-dense store
        hid = seq_ref[pl.ds((T - FL) * B_tile, FL * B_tile), :]        # bf16
        out_ref[...] = (jnp.dot(hid, fc_w_ref[...],
                                preferred_element_type=jnp.float32) + fc_b_ref[...])

    return kernel


def init_vanilla_gru_params(key, n_time_series, hidden_dim, num_layers, n_target):
    """PyTorch-style uniform init, deterministic from `key`."""
    params = {"gru": [], "fc": {}}
    k_gru = 1.0 / jnp.sqrt(hidden_dim)
    for layer in range(num_layers):
        in_dim = n_time_series if layer == 0 else hidden_dim
        key, k1, k2, k3, k4 = jax.random.split(key, 5)
        params["gru"].append({
            "w_ih": jax.random.uniform(k1, (3 * hidden_dim, in_dim),
                                       jnp.float32, -k_gru, k_gru),
            "w_hh": jax.random.uniform(k2, (3 * hidden_dim, hidden_dim),
                                       jnp.float32, -k_gru, k_gru),
            "b_ih": jax.random.uniform(k3, (3 * hidden_dim,),
                                       jnp.float32, -k_gru, k_gru),
            "b_hh": jax.random.uniform(k4, (3 * hidden_dim,),
                                       jnp.float32, -k_gru, k_gru),
        })
    k_fc = 1.0 / jnp.sqrt(hidden_dim)
    key, k1, k2 = jax.random.split(key, 3)
    params["fc"]["w"] = jax.random.uniform(k1, (n_target, hidden_dim),
                                           jnp.float32, -k_fc, k_fc)
    params["fc"]["b"] = jax.random.uniform(k2, (n_target,),
                                           jnp.float32, -k_fc, k_fc)
    return params


@functools.partial(jax.jit,
                   static_argnames=("forecast_length", "batch_tiles", "time_chunk"))
def vanilla_gru_forward(x, params, *, forecast_length=1, batch_tiles=1, time_chunk=64):
    """x: (batch, seq, n_time_series) -> (batch, forecast_length, n_target)
    or (batch, forecast_length) if n_target == 1.

    batch_tiles: number of independent batch tiles (use 2 on v7x to occupy both TCs).
    time_chunk:  target time-chunk size for the input-projection scratch (VMEM = O(Tc)).
    """
    B, T, F = x.shape
    L = len(params["gru"])
    H = params["gru"][0]["w_hh"].shape[1]
    n_target = params["fc"]["w"].shape[0]
    FL = forecast_length
    assert 1 <= FL <= T

    # batch tile: bf16 matmul LHS sublane tile is 16 rows
    B_tile = _round_up(max(1, -(-B // batch_tiles)), 16)
    B_pad = B_tile * batch_tiles
    H_pad = _round_up(H, 128)            # each gate on its own 128-lane block
    F_pad = _round_up(F, 128)
    Nt_pad = _round_up(n_target, 128)    # lane-dense output store

    # time chunking: gi scratch is O(Tc); padded tail steps are causal no-ops
    n_chunks = -(-T // max(1, time_chunk))
    Tc = -(-T // n_chunks)
    T_pad = Tc * n_chunks

    # time-major, zero-padded, bf16, arranged as (batch_tiles, T_pad*B_tile, F_pad)
    x_tm = jnp.transpose(x, (1, 0, 2)).astype(jnp.float32)
    x_tm = jnp.pad(x_tm, ((0, T_pad - T), (0, B_pad - B), (0, F_pad - F)))
    x_in = (x_tm.reshape(T_pad, batch_tiles, B_tile, F_pad)
            .transpose(1, 0, 2, 3)
            .reshape(batch_tiles, T_pad * B_tile, F_pad)
            .astype(jnp.bfloat16))

    kernel_args = [x_in]
    for layer in range(L):
        p = params["gru"][layer]
        in_dim = F if layer == 0 else H
        in_pad = F_pad if layer == 0 else H_pad

        # gate-padded, pre-transposed weights: (in_pad, 3*H_pad), each gate = 128-lane block
        w_ih = p["w_ih"].reshape(3, H, in_dim)                         # [r, z, n]
        w_ih_p = jnp.zeros((3, H_pad, in_pad), jnp.float32).at[:, :H, :in_dim].set(w_ih)
        w_ih_T = jnp.transpose(w_ih_p, (2, 0, 1)).reshape(in_pad, 3 * H_pad)

        w_hh = p["w_hh"].reshape(3, H, H)
        w_hh_p = jnp.zeros((3, H_pad, H_pad), jnp.float32).at[:, :H, :H].set(w_hh)
        w_hh_T = jnp.transpose(w_hh_p, (2, 0, 1)).reshape(H_pad, 3 * H_pad)

        b_ih = p["b_ih"].reshape(3, H)
        b_hh = p["b_hh"].reshape(3, H)
        # fold r/z hidden biases into the precomputed input-projection bias
        b_gi = jnp.stack([b_ih[0] + b_hh[0], b_ih[1] + b_hh[1], b_ih[2]], axis=0)
        b_gi_p = jnp.zeros((3, H_pad), jnp.float32).at[:, :H].set(b_gi).reshape(1, 3 * H_pad)
        b_hn_p = jnp.zeros((1, H_pad), jnp.float32).at[0, :H].set(b_hh[2])

        kernel_args += [w_ih_T.astype(jnp.bfloat16),
                        w_hh_T.astype(jnp.bfloat16),
                        b_gi_p, b_hn_p]

    fc_w_T = jnp.zeros((H_pad, Nt_pad), jnp.float32).at[:H, :n_target].set(params["fc"]["w"].T)
    fc_b = jnp.zeros((1, Nt_pad), jnp.float32).at[0, :n_target].set(params["fc"]["b"])
    kernel_args += [fc_w_T.astype(jnp.bfloat16), fc_b]

    unroll = max(1, min(Tc, 8))          # always keep >= 4-way LLO visibility when possible
    hoist_whh = H_pad <= 128             # 24 vregs at H_pad=128; larger -> reload from VMEM
    kernel = _make_gru_kernel(L, T, T_pad, Tc, FL, B_tile, H_pad, unroll, hoist_whh)

    # generation-aware VMEM budget from the real buffer sizes (+ pipeline / Mosaic headroom)
    arg_bytes = sum(int(a.size) * a.dtype.itemsize for a in kernel_args)
    scratch_bytes = Tc * B_tile * 3 * H_pad * 4 + T_pad * B_tile * H_pad * 2
    out_block_bytes = FL * B_tile * Nt_pad * 4
    needed = 2 * (arg_bytes + out_block_bytes) + scratch_bytes
    vmem_limit = max(32 * 1024 * 1024,
                     min(int(needed * 1.5) + (4 << 20), _vmem_ceiling_bytes()))

    in_specs = [pl.BlockSpec((None, T_pad * B_tile, F_pad), lambda b: (b, 0, 0))]
    in_specs += [pl.BlockSpec(a.shape, lambda b: (0, 0)) for a in kernel_args[1:]]

    out4 = pl.pallas_call(
        kernel,
        out_shape=jax.ShapeDtypeStruct((batch_tiles, FL * B_tile, Nt_pad), jnp.float32),
        grid=(batch_tiles,),
        in_specs=in_specs,
        out_specs=pl.BlockSpec((None, FL * B_tile, Nt_pad), lambda b: (b, 0, 0)),
        scratch_shapes=[
            pltpu.VMEM((Tc * B_tile, 3 * H_pad), jnp.float32),    # gi for current chunk
            pltpu.VMEM((T_pad * B_tile, H_pad), jnp.bfloat16),    # single sequence buffer
        ],
        compiler_params=pltpu.CompilerParams(
            dimension_semantics=("parallel",),                    # batch tiles -> v7x TCs
            vmem_limit_bytes=vmem_limit),
    )(*kernel_args)

    out = out4.reshape(batch_tiles, FL, B_tile, Nt_pad)
    out = jnp.transpose(out, (1, 0, 2, 3)).reshape(FL, B_pad, Nt_pad)
    out = jnp.transpose(out[:, :B, :n_target], (1, 0, 2))         # (B, FL, n_target)
    if n_target == 1:
        return out[:, :, 0]
    return out


def _gru_reference(x, params, forecast_length):
    """Pure-JAX f32 reference matching PyTorch nn.GRU + Linear (eval mode)."""
    B, T, _ = x.shape
    L = len(params["gru"])
    H = params["gru"][0]["w_hh"].shape[1]
    hs = [jnp.zeros((B, H), jnp.float32) for _ in range(L)]
    outs = []
    for t in range(T):
        inp = x[:, t, :]
        for layer in range(L):
            p = params["gru"][layer]
            gi = inp @ p["w_ih"].T + p["b_ih"]
            gh = hs[layer] @ p["w_hh"].T + p["b_hh"]
            i_r, i_z, i_n = jnp.split(gi, 3, axis=1)
            h_r, h_z, h_n = jnp.split(gh, 3, axis=1)
            r = jax.nn.sigmoid(i_r + h_r)
            z = jax.nn.sigmoid(i_z + h_z)
            n = jnp.tanh(i_n + r * h_n)
            h_new = (1.0 - z) * n + z * hs[layer]
            hs[layer] = h_new
            inp = h_new
        outs.append(inp)
    seq = jnp.stack(outs, axis=1)[:, -forecast_length:, :]
    y = seq @ params["fc"]["w"].T + params["fc"]["b"]
    if params["fc"]["w"].shape[0] == 1:
        return y[:, :, 0]
    return y


if __name__ == "__main__":
    key = jax.random.PRNGKey(0)

    # ---- test 1: small deterministic example (single batch tile, single time chunk)
    n_time_series, hidden_dim, num_layers = 4, 32, 2
    n_target, forecast_length, batch, seq_len = 2, 3, 4, 8
    key, kx, kp = jax.random.split(key, 3)
    x = jax.random.normal(kx, (batch, seq_len, n_time_series), jnp.float32)
    params = init_vanilla_gru_params(kp, n_time_series, hidden_dim, num_layers, n_target)

    out = vanilla_gru_forward(x, params, forecast_length=forecast_length)
    jax.block_until_ready(out)
    assert out.shape == (batch, forecast_length, n_target), out.shape
    ref = _gru_reference(x, params, forecast_length)
    err = float(jnp.max(jnp.abs(out - ref)))
    assert err < 3e-2, f"test1 max abs err vs reference: {err}"

    # ---- test 2: exercises the batch-parallel grid, time chunking and n_target==1 path
    n_ts2, hid2, layers2 = 3, 48, 2
    n_target2, fl2, batch2, seq2 = 1, 4, 32, 13
    key, kx2, kp2 = jax.random.split(key, 3)
    x2 = jax.random.normal(kx2, (batch2, seq2, n_ts2), jnp.float32)
    params2 = init_vanilla_gru_params(kp2, n_ts2, hid2, layers2, n_target2)

    out2 = vanilla_gru_forward(x2, params2, forecast_length=fl2,
                               batch_tiles=2, time_chunk=5)
    jax.block_until_ready(out2)
    assert out2.shape == (batch2, fl2), out2.shape
    ref2 = _gru_reference(x2, params2, fl2)
    err2 = float(jnp.max(jnp.abs(out2 - ref2)))
    assert err2 < 5e-2, f"test2 max abs err vs reference: {err2}"

    print("KERNEL_OK")
</pallas_src>

<mosaic_0001>
module attributes {stable_mosaic.version = 11 : i64} {
  func.func @kernel(%arg0: i32, %arg1: memref<1x128x128xbf16, #tpu.memory_space<vmem>>, %arg2: memref<128x384xbf16, #tpu.memory_space<vmem>>, %arg3: memref<128x384xbf16, #tpu.memory_space<vmem>>, %arg4: memref<1x384xf32, #tpu.memory_space<vmem>>, %arg5: memref<1x128xf32, #tpu.memory_space<vmem>>, %arg6: memref<128x384xbf16, #tpu.memory_space<vmem>>, %arg7: memref<128x384xbf16, #tpu.memory_space<vmem>>, %arg8: memref<1x384xf32, #tpu.memory_space<vmem>>, %arg9: memref<1x128xf32, #tpu.memory_space<vmem>>, %arg10: memref<128x128xbf16, #tpu.memory_space<vmem>>, %arg11: memref<1x128xf32, #tpu.memory_space<vmem>>, %arg12: memref<1x48x128xf32, #tpu.memory_space<vmem>>, %arg13: memref<128x384xf32, #tpu.memory_space<vmem>>, %arg14: memref<128x128xbf16, #tpu.memory_space<vmem>>) attributes {dimension_semantics = [#tpu.dimension_semantics<parallel>], iteration_bounds = array<i64: 1>, scalar_prefetch = 0 : i64, scratch_operands = 2 : i64, tpu.core_type = #tpu.core_type<tc>, window_params = [{transform_indices = @transform_0, window_bounds = array<i64: 1, 128, 128>}, {pipeline_mode = #tpu.pipeline_mode<synchronous>, transform_indices = @transform_1, window_bounds = array<i64: 128, 384>}, {pipeline_mode = #tpu.pipeline_mode<synchronous>, transform_indices = @transform_2, window_bounds = array<i64: 128, 384>}, {pipeline_mode = #tpu.pipeline_mode<synchronous>, transform_indices = @transform_3, window_bounds = array<i64: 1, 384>}, {pipeline_mode = #tpu.pipeline_mode<synchronous>, transform_indices = @transform_4, window_bounds = array<i64: 1, 128>}, {pipeline_mode = #tpu.pipeline_mode<synchronous>, transform_indices = @transform_5, window_bounds = array<i64: 128, 384>}, {pipeline_mode = #tpu.pipeline_mode<synchronous>, transform_indices = @transform_6, window_bounds = array<i64: 128, 384>}, {pipeline_mode = #tpu.pipeline_mode<synchronous>, transform_indices = @transform_7, window_bounds = array<i64: 1, 384>}, {pipeline_mode = #tpu.pipeline_mode<synchronous>, transform_indices = @transform_8, window_bounds = array<i64: 1, 128>}, {pipeline_mode = #tpu.pipeline_mode<synchronous>, transform_indices = @transform_9, window_bounds = array<i64: 128, 128>}, {pipeline_mode = #tpu.pipeline_mode<synchronous>, transform_indices = @transform_10, window_bounds = array<i64: 1, 128>}, {transform_indices = @transform_11, window_bounds = array<i64: 1, 48, 128>}]} {
    %c0 = arith.constant 0 : index
    %c0_0 = arith.constant 0 : index
    %0 = vector.load %arg4[%c0, %c0_0] : memref<1x384xf32, #tpu.memory_space<vmem>>, vector<1x384xf32>
    %c0_1 = arith.constant 0 : index
    %c0_2 = arith.constant 0 : index
    %1 = vector.load %arg5[%c0_1, %c0_2] : memref<1x128xf32, #tpu.memory_space<vmem>>, vector<1x128xf32>
    %2 = vector.shape_cast %1 : vector<1x128xf32> to vector<1x128xf32>
    %3 = vector.broadcast %2 : vector<1x128xf32> to vector<16x128xf32>
    %c0_3 = arith.constant 0 : index
    %c0_4 = arith.constant 0 : index
    %4 = vector.load %arg3[%c0_3, %c0_4] : memref<128x384xbf16, #tpu.memory_space<vmem>>, vector<128x384xbf16>
    %cst = arith.constant 0.000000e+00 : f32
    %5 = vector.broadcast %cst : f32 to vector<16x128xf32>
    %c0_5 = arith.constant 0 : index
    %c0_6 = arith.constant 0 : index
    %c0_7 = arith.constant 0 : index
    %6 = vector.load %arg1[%c0_5, %c0_6, %c0_7] : memref<1x128x128xbf16, #tpu.memory_space<vmem>>, vector<1x128x128xbf16>
    %7 = vector.shape_cast %6 : vector<1x128x128xbf16> to vector<128x128xbf16>
    %c0_8 = arith.constant 0 : index
    %c0_9 = arith.constant 0 : index
    %8 = vector.load %arg2[%c0_8, %c0_9] : memref<128x384xbf16, #tpu.memory_space<vmem>>, vector<128x384xbf16>
    %cst_10 = arith.constant dense<0.000000e+00> : vector<128x384xf32>
    %9 = tpu.matmul %7, %8, %cst_10 {dimension_numbers = #tpu.dot_dimension_numbers<[1], [0], [0], [1], [0, 0, 1, 1], [], []>} : vector<128x128xbf16>, vector<128x384xbf16>, vector<128x384xf32> -> vector<128x384xf32>
    %10 = vector.broadcast %0 : vector<1x384xf32> to vector<128x384xf32>
    %11 = arith.addf %9, %10 : vector<128x384xf32>
    %c0_11 = arith.constant 0 : index
    %c0_12 = arith.constant 0 : index
    %12 = vector.load %arg13[%c0_11, %c0_12] : memref<128x384xf32, #tpu.memory_space<vmem>>, vector<128x384xf32>
    tpu.vector_store %arg13[%c0_11, %c0_12], %11 {strides = array<i32>} : memref<128x384xf32, #tpu.memory_space<vmem>>, vector<128x384xf32>,
    %c0_i32 = arith.constant 0 : i32
    %c16_i32 = arith.constant 16 : i32
    %13 = arith.muli %c0_i32, %c16_i32 : i32
    %14 = tpu.assume_multiple %13, 16 : i32
    %15 = arith.index_cast %14 : i32 to index
    %c0_13 = arith.constant 0 : index
    %16 = vector.load %arg13[%15, %c0_13] : memref<128x384xf32, #tpu.memory_space<vmem>>, vector<16x384xf32>
    %17 = arith.truncf %5 : vector<16x128xf32> to vector<16x128xbf16>
    %cst_14 = arith.constant dense<0.000000e+00> : vector<16x384xf32>
    %18 = tpu.matmul %17, %4, %cst_14 {dimension_numbers = #tpu.dot_dimension_numbers<[1], [0], [0], [1], [0, 0, 1, 1], [], []>} : vector<16x128xbf16>, vector<128x384xbf16>, vector<16x384xf32> -> vector<16x384xf32>
    %19 = vector.extract_strided_slice %16 {offsets = [0, 0], sizes = [16, 128], strides = [1, 1]} : vector<16x384xf32> to vector<16x128xf32>
    %20 = vector.extract_strided_slice %18 {offsets = [0, 0], sizes = [16, 128], strides = [1, 1]} : vector<16x384xf32> to vector<16x128xf32>
    %21 = arith.addf %19, %20 : vector<16x128xf32>
    %22 = arith.negf %21 : vector<16x128xf32>
    %23 = math.exp %22 : vector<16x128xf32>
    %cst_15 = arith.constant 1.000000e+00 : f32
    %24 = vector.broadcast %cst_15 : f32 to vector<16x128xf32>
    %25 = arith.addf %24, %23 : vector<16x128xf32>
    %26 = arith.divf %24, %25 : vector<16x128xf32>
    %27 = vector.extract_strided_slice %16 {offsets = [0, 128], sizes = [16, 128], strides = [1, 1]} : vector<16x384xf32> to vector<16x128xf32>
    %28 = vector.extract_strided_slice %18 {offsets = [0, 128], sizes = [16, 128], strides = [1, 1]} : vector<16x384xf32> to vector<16x128xf32>
    %29 = arith.addf %27, %28 : vector<16x128xf32>
    %30 = arith.negf %29 : vector<16x128xf32>
    %31 = math.exp %30 : vector<16x128xf32>
    %cst_16 = arith.constant 1.000000e+00 : f32
    %32 = vector.broadcast %cst_16 : f32 to vector<16x128xf32>
    %33 = arith.addf %32, %31 : vector<16x128xf32>
    %34 = arith.divf %32, %33 : vector<16x128xf32>
    %35 = vector.extract_strided_slice %16 {offsets = [0, 256], sizes = [16, 128], strides = [1, 1]} : vector<16x384xf32> to vector<16x128xf32>
    %36 = vector.extract_strided_slice %18 {offsets = [0, 256], sizes = [16, 128], strides = [1, 1]} : vector<16x384xf32> to vector<16x128xf32>
    %37 = arith.addf %36, %3 : vector<16x128xf32>
    %38 = arith.mulf %26, %37 : vector<16x128xf32>
    %39 = arith.addf %35, %38 : vector<16x128xf32>
    %40 = math.tanh %39 : vector<16x128xf32>
    %cst_17 = arith.constant 1.000000e+00 : f32
    %41 = vector.broadcast %cst_17 : f32 to vector<16x128xf32>
    %42 = arith.subf %41, %34 : vector<16x128xf32>
    %43 = arith.mulf %42, %40 : vector<16x128xf32>
    %44 = arith.mulf %34, %5 : vector<16x128xf32>
    %45 = arith.addf %43, %44 : vector<16x128xf32>
    %c0_i32_18 = arith.constant 0 : i32
    %46 = arith.addi %c0_i32_18, %c0_i32 : i32
    %c16_i32_19 = arith.constant 16 : i32
    %47 = arith.muli %46, %c16_i32_19 : i32
    %48 = tpu.assume_multiple %47, 16 : i32
    %49 = arith.truncf %45 : vector<16x128xf32> to vector<16x128xbf16>
    %50 = arith.index_cast %48 : i32 to index
    %c0_20 = arith.constant 0 : index
    %51 = vector.load %arg14[%50, %c0_20] : memref<128x128xbf16, #tpu.memory_space<vmem>>, vector<16x128xbf16>
    tpu.vector_store %arg14[%50, %c0_20], %49 {strides = array<i32>} : memref<128x128xbf16, #tpu.memory_space<vmem>>, vector<16x128xbf16>,
    %c1_i32 = arith.constant 1 : i32
    %c16_i32_21 = arith.constant 16 : i32
    %52 = arith.muli %c1_i32, %c16_i32_21 : i32
    %53 = tpu.assume_multiple %52, 16 : i32
    %54 = arith.index_cast %53 : i32 to index
    %c0_22 = arith.constant 0 : index
    %55 = vector.load %arg13[%54, %c0_22] : memref<128x384xf32, #tpu.memory_space<vmem>>, vector<16x384xf32>
    %56 = arith.truncf %45 : vector<16x128xf32> to vector<16x128xbf16>
    %cst_23 = arith.constant dense<0.000000e+00> : vector<16x384xf32>
    %57 = tpu.matmul %56, %4, %cst_23 {dimension_numbers = #tpu.dot_dimension_numbers<[1], [0], [0], [1], [0, 0, 1, 1], [], []>} : vector<16x128xbf16>, vector<128x384xbf16>, vector<16x384xf32> -> vector<16x384xf32>
    %58 = vector.extract_strided_slice %55 {offsets = [0, 0], sizes = [16, 128], strides = [1, 1]} : vector<16x384xf32> to vector<16x128xf32>
    %59 = vector.extract_strided_slice %57 {offsets = [0, 0], sizes = [16, 128], strides = [1, 1]} : vector<16x384xf32> to vector<16x128xf32>
    %60 = arith.addf %58, %59 : vector<16x128xf32>
    %61 = arith.negf %60 : vector<16x128xf32>
    %62 = math.exp %61 : vector<16x128xf32>
    %cst_24 = arith.constant 1.000000e+00 : f32
    %63 = vector.broadcast %cst_24 : f32 to vector<16x128xf32>
    %64 = arith.addf %63, %62 : vector<16x128xf32>
    %65 = arith.divf %63, %64 : vector<16x128xf32>
    %66 = vector.extract_strided_slice %55 {offsets = [0, 128], sizes = [16, 128], strides = [1, 1]} : vector<16x384xf32> to vector<16x128xf32>
    %67 = vector.extract_strided_slice %57 {offsets = [0, 128], sizes = [16, 128], strides = [1, 1]} : vector<16x384xf32> to vector<16x128xf32>
    %68 = arith.addf %66, %67 : vector<16x128xf32>
    %69 = arith.negf %68 : vector<16x128xf32>
    %70 = math.exp %69 : vector<16x128xf32>
    %cst_25 = arith.constant 1.000000e+00 : f32
    %71 = vector.broadcast %cst_25 : f32 to vector<16x128xf32>
    %72 = arith.addf %71, %70 : vector<16x128xf32>
    %73 = arith.divf %71, %72 : vector<16x128xf32>
    %74 = vector.extract_strided_slice %55 {offsets = [0, 256], sizes = [16, 128], strides = [1, 1]} : vector<16x384xf32> to vector<16x128xf32>
    %75 = vector.extract_strided_slice %57 {offsets = [0, 256], sizes = [16, 128], strides = [1, 1]} : vector<16x384xf32> to vector<16x128xf32>
    %76 = arith.addf %75, %3 : vector<16x128xf32>
    %77 = arith.mulf %65, %76 : vector<16x128xf32>
    %78 = arith.addf %74, %77 : vector<16x128xf32>
    %79 = math.tanh %78 : vector<16x128xf32>
    %cst_26 = arith.constant 1.000000e+00 : f32
    %80 = vector.broadcast %cst_26 : f32 to vector<16x128xf32>
    %81 = arith.subf %80, %73 : vector<16x128xf32>
    %82 = arith.mulf %81, %79 : vector<16x128xf32>
    %83 = arith.mulf %73, %45 : vector<16x128xf32>
    %84 = arith.addf %82, %83 : vector<16x128xf32>
    %c0_i32_27 = arith.constant 0 : i32
    %85 = arith.addi %c0_i32_27, %c1_i32 : i32
    %c16_i32_28 = arith.constant 16 : i32
    %86 = arith.muli %85, %c16_i32_28 : i32
    %87 = tpu.assume_multiple %86, 16 : i32
    %88 = arith.truncf %84 : vector<16x128xf32> to vector<16x128xbf16>
    %89 = arith.index_cast %87 : i32 to index
    %c0_29 = arith.constant 0 : index
    %90 = vector.load %arg14[%89, %c0_29] : memref<128x128xbf16, #tpu.memory_space<vmem>>, vector<16x128xbf16>
    tpu.vector_store %arg14[%89, %c0_29], %88 {strides = array<i32>} : memref<128x128xbf16, #tpu.memory_space<vmem>>, vector<16x128xbf16>,
    %c2_i32 = arith.constant 2 : i32
    %c16_i32_30 = arith.constant 16 : i32
    %91 = arith.muli %c2_i32, %c16_i32_30 : i32
    %92 = tpu.assume_multiple %91, 16 : i32
    %93 = arith.index_cast %92 : i32 to index
    %c0_31 = arith.constant 0 : index
    %94 = vector.load %arg13[%93, %c0_31] : memref<128x384xf32, #tpu.memory_space<vmem>>, vector<16x384xf32>
    %95 = arith.truncf %84 : vector<16x128xf32> to vector<16x128xbf16>
    %cst_32 = arith.constant dense<0.000000e+00> : vector<16x384xf32>
    %96 = tpu.matmul %95, %4, %cst_32 {dimension_numbers = #tpu.dot_dimension_numbers<[1], [0], [0], [1], [0, 0, 1, 1], [], []>} : vector<16x128xbf16>, vector<128x384xbf16>, vector<16x384xf32> -> vector<16x384xf32>
    %97 = vector.extract_strided_slice %94 {offsets = [0, 0], sizes = [16, 128], strides = [1, 1]} : vector<16x384xf32> to vector<16x128xf32>
    %98 = vector.extract_strided_slice %96 {offsets = [0, 0], sizes = [16, 128], strides = [1, 1]} : vector<16x384xf32> to vector<16x128xf32>
    %99 = arith.addf %97, %98 : vector<16x128xf32>
    %100 = arith.negf %99 : vector<16x128xf32>
    %101 = math.exp %100 : vector<16x128xf32>
    %cst_33 = arith.constant 1.000000e+00 : f32
    %102 = vector.broadcast %cst_33 : f32 to vector<16x128xf32>
    %103 = arith.addf %102, %101 : vector<16x128xf32>
    %104 = arith.divf %102, %103 : vector<16x128xf32>
    %105 = vector.extract_strided_slice %94 {offsets = [0, 128], sizes = [16, 128], strides = [1, 1]} : vector<16x384xf32> to vector<16x128xf32>
    %106 = vector.extract_strided_slice %96 {offsets = [0, 128], sizes = [16, 128], strides = [1, 1]} : vector<16x384xf32> to vector<16x128xf32>
    %107 = arith.addf %105, %106 : vector<16x128xf32>
    %108 = arith.negf %107 : vector<16x128xf32>
    %109 = math.exp %108 : vector<16x128xf32>
    %cst_34 = arith.constant 1.000000e+00 : f32
    %110 = vector.broadcast %cst_34 : f32 to vector<16x128xf32>
    %111 = arith.addf %110, %109 : vector<16x128xf32>
    %112 = arith.divf %110, %111 : vector<16x128xf32>
    %113 = vector.extract_strided_slice %94 {offsets = [0, 256], sizes = [16, 128], strides = [1, 1]} : vector<16x384xf32> to vector<16x128xf32>
    %114 = vector.extract_strided_slice %96 {offsets = [0, 256], sizes = [16, 128], strides = [1, 1]} : vector<16x384xf32> to vector<16x128xf32>
    %115 = arith.addf %114, %3 : vector<16x128xf32>
    %116 = arith.mulf %104, %115 : vector<16x128xf32>
    %117 = arith.addf %113, %116 : vector<16x128xf32>
    %118 = math.tanh %117 : vector<16x128xf32>
    %cst_35 = arith.constant 1.000000e+00 : f32
    %119 = vector.broadcast %cst_35 : f32 to vector<16x128xf32>
    %120 = arith.subf %119, %112 : vector<16x128xf32>
    %121 = arith.mulf %120, %118 : vector<16x128xf32>
    %122 = arith.mulf %112, %84 : vector<16x128xf32>
    %123 = arith.addf %121, %122 : vector<16x128xf32>
    %c0_i32_36 = arith.constant 0 : i32
    %124 = arith.addi %c0_i32_36, %c2_i32 : i32
    %c16_i32_37 = arith.constant 16 : i32
    %125 = arith.muli %124, %c16_i32_37 : i32
    %126 = tpu.assume_multiple %125, 16 : i32
    %127 = arith.truncf %123 : vector<16x128xf32> to vector<16x128xbf16>
    %128 = arith.index_cast %126 : i32 to index
    %c0_38 = arith.constant 0 : index
    %129 = vector.load %arg14[%128, %c0_38] : memref<128x128xbf16, #tpu.memory_space<vmem>>, vector<16x128xbf16>
    tpu.vector_store %arg14[%128, %c0_38], %127 {strides = array<i32>} : memref<128x128xbf16, #tpu.memory_space<vmem>>, vector<16x128xbf16>,
    %c3_i32 = arith.constant 3 : i32
    %c16_i32_39 = arith.constant 16 : i32
    %130 = arith.muli %c3_i32, %c16_i32_39 : i32
    %131 = tpu.assume_multiple %130, 16 : i32
    %132 = arith.index_cast %131 : i32 to index
    %c0_40 = arith.constant 0 : index
    %133 = vector.load %arg13[%132, %c0_40] : memref<128x384xf32, #tpu.memory_space<vmem>>, vector<16x384xf32>
    %134 = arith.truncf %123 : vector<16x128xf32> to vector<16x128xbf16>
    %cst_41 = arith.constant dense<0.000000e+00> : vector<16x384xf32>
    %135 = tpu.matmul %134, %4, %cst_41 {dimension_numbers = #tpu.dot_dimension_numbers<[1], [0], [0], [1], [0, 0, 1, 1], [], []>} : vector<16x128xbf16>, vector<128x384xbf16>, vector<16x384xf32> -> vector<16x384xf32>
    %136 = vector.extract_strided_slice %133 {offsets = [0, 0], sizes = [16, 128], strides = [1, 1]} : vector<16x384xf32> to vector<16x128xf32>
    %137 = vector.extract_strided_slice %135 {offsets = [0, 0], sizes = [16, 128], strides = [1, 1]} : vector<16x384xf32> to vector<16x128xf32>
    %138 = arith.addf %136, %137 : vector<16x128xf32>
    %139 = arith.negf %138 : vector<16x128xf32>
    %140 = math.exp %139 : vector<16x128xf32>
    %cst_42 = arith.constant 1.000000e+00 : f32
    %141 = vector.broadcast %cst_42 : f32 to vector<16x128xf32>
    %142 = arith.addf %141, %140 : vector<16x128xf32>
    %143 = arith.divf %141, %142 : vector<16x128xf32>
    %144 = vector.extract_strided_slice %133 {offsets = [0, 128], sizes = [16, 128], strides = [1, 1]} : vector<16x384xf32> to vector<16x128xf32>
    %145 = vector.extract_strided_slice %135 {offsets = [0, 128], sizes = [16, 128], strides = [1, 1]} : vector<16x384xf32> to vector<16x128xf32>
    %146 = arith.addf %144, %145 : vector<16x128xf32>
    %147 = arith.negf %146 : vector<16x128xf32>
    %148 = math.exp %147 : vector<16x128xf32>
    %cst_43 = arith.constant 1.000000e+00 : f32
    %149 = vector.broadcast %cst_43 : f32 to vector<16x128xf32>
    %150 = arith.addf %149, %148 : vector<16x128xf32>
    %151 = arith.divf %149, %150 : vector<16x128xf32>
    %152 = vector.extract_strided_slice %133 {offsets = [0, 256], sizes = [16, 128], strides = [1, 1]} : vector<16x384xf32> to vector<16x128xf32>
    %153 = vector.extract_strided_slice %135 {offsets = [0, 256], sizes = [16, 128], strides = [1, 1]} : vector<16x384xf32> to vector<16x128xf32>
    %154 = arith.addf %153, %3 : vector<16x128xf32>
    %155 = arith.mulf %143, %154 : vector<16x128xf32>
    %156 = arith.addf %152, %155 : vector<16x128xf32>
    %157 = math.tanh %156 : vector<16x128xf32>
    %cst_44 = arith.constant 1.000000e+00 : f32
    %158 = vector.broadcast %cst_44 : f32 to vector<16x128xf32>
    %159 = arith.subf %158, %151 : vector<16x128xf32>
    %160 = arith.mulf %159, %157 : vector<16x128xf32>
    %161 = arith.mulf %151, %123 : vector<16x128xf32>
    %162 = arith.addf %160, %161 : vector<16x128xf32>
    %c0_i32_45 = arith.constant 0 : i32
    %163 = arith.addi %c0_i32_45, %c3_i32 : i32
    %c16_i32_46 = arith.constant 16 : i32
    %164 = arith.muli %163, %c16_i32_46 : i32
    %165 = tpu.assume_multiple %164, 16 : i32
    %166 = arith.truncf %162 : vector<16x128xf32> to vector<16x128xbf16>
    %167 = arith.index_cast %165 : i32 to index
    %c0_47 = arith.constant 0 : index
    %168 = vector.load %arg14[%167, %c0_47] : memref<128x128xbf16, #tpu.memory_space<vmem>>, vector<16x128xbf16>
    tpu.vector_store %arg14[%167, %c0_47], %166 {strides = array<i32>} : memref<128x128xbf16, #tpu.memory_space<vmem>>, vector<16x128xbf16>,
    %c4_i32 = arith.constant 4 : i32
    %c16_i32_48 = arith.constant 16 : i32
    %169 = arith.muli %c4_i32, %c16_i32_48 : i32
    %170 = tpu.assume_multiple %169, 16 : i32
    %171 = arith.index_cast %170 : i32 to index
    %c0_49 = arith.constant 0 : index
    %172 = vector.load %arg13[%171, %c0_49] : memref<128x384xf32, #tpu.memory_space<vmem>>, vector<16x384xf32>
    %173 = arith.truncf %162 : vector<16x128xf32> to vector<16x128xbf16>
    %cst_50 = arith.constant dense<0.000000e+00> : vector<16x384xf32>
    %174 = tpu.matmul %173, %4, %cst_50 {dimension_numbers = #tpu.dot_dimension_numbers<[1], [0], [0], [1], [0, 0, 1, 1], [], []>} : vector<16x128xbf16>, vector<128x384xbf16>, vector<16x384xf32> -> vector<16x384xf32>
    %175 = vector.extract_strided_slice %172 {offsets = [0, 0], sizes = [16, 128], strides = [1, 1]} : vector<16x384xf32> to vector<16x128xf32>
    %176 = vector.extract_strided_slice %174 {offsets = [0, 0], sizes = [16, 128], strides = [1, 1]} : vector<16x384xf32> to vector<16x128xf32>
    %177 = arith.addf %175, %176 : vector<16x128xf32>
    %178 = arith.negf %177 : vector<16x128xf32>
    %179 = math.exp %178 : vector<16x128xf32>
    %cst_51 = arith.constant 1.000000e+00 : f32
    %180 = vector.broadcast %cst_51 : f32 to vector<16x128xf32>
    %181 = arith.addf %180, %179 : vector<16x128xf32>
    %182 = arith.divf %180, %181 : vector<16x128xf32>
    %183 = vector.extract_strided_slice %172 {offsets = [0, 128], sizes = [16, 128], strides = [1, 1]} : vector<16x384xf32> to vector<16x128xf32>
    %184 = vector.extract_strided_slice %174 {offsets = [0, 128], sizes = [16, 128], strides = [1, 1]} : vector<16x384xf32> to vector<16x128xf32>
    %185 = arith.addf %183, %184 : vector<16x128xf32>
    %186 = arith.negf %185 : vector<16x128xf32>
    %187 = math.exp %186 : vector<16x128xf32>
    %cst_52 = arith.constant 1.000000e+00 : f32
    %188 = vector.broadcast %cst_52 : f32 to vector<16x128xf32>
    %189 = arith.addf %188, %187 : vector<16x128xf32>
    %190 = arith.divf %188, %189 : vector<16x128xf32>
    %191 = vector.extract_strided_slice %172 {offsets = [0, 256], sizes = [16, 128], strides = [1, 1]} : vector<16x384xf32> to vector<16x128xf32>
    %192 = vector.extract_strided_slice %174 {offsets = [0, 256], sizes = [16, 128], strides = [1, 1]} : vector<16x384xf32> to vector<16x128xf32>
    %193 = arith.addf %192, %3 : vector<16x128xf32>
    %194 = arith.mulf %182, %193 : vector<16x128xf32>
    %195 = arith.addf %191, %194 : vector<16x128xf32>
    %196 = math.tanh %195 : vector<16x128xf32>
    %cst_53 = arith.constant 1.000000e+00 : f32
    %197 = vector.broadcast %cst_53 : f32 to vector<16x128xf32>
    %198 = arith.subf %197, %190 : vector<16x128xf32>
    %199 = arith.mulf %198, %196 : vector<16x128xf32>
    %200 = arith.mulf %190, %162 : vector<16x128xf32>
    %201 = arith.addf %199, %200 : vector<16x128xf32>
    %c0_i32_54 = arith.constant 0 : i32
    %202 = arith.addi %c0_i32_54, %c4_i32 : i32
    %c16_i32_55 = arith.constant 16 : i32
    %203 = arith.muli %202, %c16_i32_55 : i32
    %204 = tpu.assume_multiple %203, 16 : i32
    %205 = arith.truncf %201 : vector<16x128xf32> to vector<16x128xbf16>
    %206 = arith.index_cast %204 : i32 to index
    %c0_56 = arith.constant 0 : index
    %207 = vector.load %arg14[%206, %c0_56] : memref<128x128xbf16, #tpu.memory_space<vmem>>, vector<16x128xbf16>
    tpu.vector_store %arg14[%206, %c0_56], %205 {strides = array<i32>} : memref<128x128xbf16, #tpu.memory_space<vmem>>, vector<16x128xbf16>,
    %c5_i32 = arith.constant 5 : i32
    %c16_i32_57 = arith.constant 16 : i32
    %208 = arith.muli %c5_i32, %c16_i32_57 : i32
    %209 = tpu.assume_multiple %208, 16 : i32
    %210 = arith.index_cast %209 : i32 to index
    %c0_58 = arith.constant 0 : index
    %211 = vector.load %arg13[%210, %c0_58] : memref<128x384xf32, #tpu.memory_space<vmem>>, vector<16x384xf32>
    %212 = arith.truncf %201 : vector<16x128xf32> to vector<16x128xbf16>
    %cst_59 = arith.constant dense<0.000000e+00> : vector<16x384xf32>
    %213 = tpu.matmul %212, %4, %cst_59 {dimension_numbers = #tpu.dot_dimension_numbers<[1], [0], [0], [1], [0, 0, 1, 1], [], []>} : vector<16x128xbf16>, vector<128x384xbf16>, vector<16x384xf32> -> vector<16x384xf32>
    %214 = vector.extract_strided_slice %211 {offsets = [0, 0], sizes = [16, 128], strides = [1, 1]} : vector<16x384xf32> to vector<16x128xf32>
    %215 = vector.extract_strided_slice %213 {offsets = [0, 0], sizes = [16, 128], strides = [1, 1]} : vector<16x384xf32> to vector<16x128xf32>
    %216 = arith.addf %214, %215 : vector<16x128xf32>
    %217 = arith.negf %216 : vector<16x128xf32>
    %218 = math.exp %217 : vector<16x128xf32>
    %cst_60 = arith.constant 1.000000e+00 : f32
    %219 = vector.broadcast %cst_60 : f32 to vector<16x128xf32>
    %220 = arith.addf %219, %218 : vector<16x128xf32>
    %221 = arith.divf %219, %220 : vector<16x128xf32>
    %222 = vector.extract_strided_slice %211 {offsets = [0, 128], sizes = [16, 128], strides = [1, 1]} : vector<16x384xf32> to vector<16x128xf32>
    %223 = vector.extract_strided_slice %213 {offsets = [0, 128], sizes = [16, 128], strides = [1, 1]} : vector<16x384xf32> to vector<16x128xf32>
    %224 = arith.addf %222, %223 : vector<16x128xf32>
    %225 = arith.negf %224 : vector<16x128xf32>
    %226 = math.exp %225 : vector<16x128xf32>
    %cst_61 = arith.constant 1.000000e+00 : f32
    %227 = vector.broadcast %cst_61 : f32 to vector<16x128xf32>
    %228 = arith.addf %227, %226 : vector<16x128xf32>
    %229 = arith.divf %227, %228 : vector<16x128xf32>
    %230 = vector.extract_strided_slice %211 {offsets = [0, 256], sizes = [16, 128], strides = [1, 1]} : vector<16x384xf32> to vector<16x128xf32>
    %231 = vector.extract_strided_slice %213 {offsets = [0, 256], sizes = [16, 128], strides = [1, 1]} : vector<16x384xf32> to vector<16x128xf32>
    %232 = arith.addf %231, %3 : vector<16x128xf32>
    %233 = arith.mulf %221, %232 : vector<16x128xf32>
    %234 = arith.addf %230, %233 : vector<16x128xf32>
    %235 = math.tanh %234 : vector<16x128xf32>
    %cst_62 = arith.constant 1.000000e+00 : f32
    %236 = vector.broadcast %cst_62 : f32 to vector<16x128xf32>
    %237 = arith.subf %236, %229 : vector<16x128xf32>
    %238 = arith.mulf %237, %235 : vector<16x128xf32>
    %239 = arith.mulf %229, %201 : vector<16x128xf32>
    %240 = arith.addf %238, %239 : vector<16x128xf32>
    %c0_i32_63 = arith.constant 0 : i32
    %241 = arith.addi %c0_i32_63, %c5_i32 : i32
    %c16_i32_64 = arith.constant 16 : i32
    %242 = arith.muli %241, %c16_i32_64 : i32
    %243 = tpu.assume_multiple %242, 16 : i32
    %244 = arith.truncf %240 : vector<16x128xf32> to vector<16x128xbf16>
    %245 = arith.index_cast %243 : i32 to index
    %c0_65 = arith.constant 0 : index
    %246 = vector.load %arg14[%245, %c0_65] : memref<128x128xbf16, #tpu.memory_space<vmem>>, vector<16x128xbf16>
    tpu.vector_store %arg14[%245, %c0_65], %244 {strides = array<i32>} : memref<128x128xbf16, #tpu.memory_space<vmem>>, vector<16x128xbf16>,
    %c6_i32 = arith.constant 6 : i32
    %c16_i32_66 = arith.constant 16 : i32
    %247 = arith.muli %c6_i32, %c16_i32_66 : i32
    %248 = tpu.assume_multiple %247, 16 : i32
    %249 = arith.index_cast %248 : i32 to index
    %c0_67 = arith.constant 0 : index
    %250 = vector.load %arg13[%249, %c0_67] : memref<128x384xf32, #tpu.memory_space<vmem>>, vector<16x384xf32>
    %251 = arith.truncf %240 : vector<16x128xf32> to vector<16x128xbf16>
    %cst_68 = arith.constant dense<0.000000e+00> : vector<16x384xf32>
    %252 = tpu.matmul %251, %4, %cst_68 {dimension_numbers = #tpu.dot_dimension_numbers<[1], [0], [0], [1], [0, 0, 1, 1], [], []>} : vector<16x128xbf16>, vector<128x384xbf16>, vector<16x384xf32> -> vector<16x384xf32>
    %253 = vector.extract_strided_slice %250 {offsets = [0, 0], sizes = [16, 128], strides = [1, 1]} : vector<16x384xf32> to vector<16x128xf32>
    %254 = vector.extract_strided_slice %252 {offsets = [0, 0], sizes = [16, 128], strides = [1, 1]} : vector<16x384xf32> to vector<16x128xf32>
    %255 = arith.addf %253, %254 : vector<16x128xf32>
    %256 = arith.negf %255 : vector<16x128xf32>
    %257 = math.exp %256 : vector<16x128xf32>
    %cst_69 = arith.constant 1.000000e+00 : f32
    %258 = vector.broadcast %cst_69 : f32 to vector<16x128xf32>
    %259 = arith.addf %258, %257 : vector<16x128xf32>
    %260 = arith.divf %258, %259 : vector<16x128xf32>
    %261 = vector.extract_strided_slice %250 {offsets = [0, 128], sizes = [16, 128], strides = [1, 1]} : vector<16x384xf32> to vector<16x128xf32>
    %262 = vector.extract_strided_slice %252 {offsets = [0, 128], sizes = [16, 128], strides = [1, 1]} : vector<16x384xf32> to vector<16x128xf32>
    %263 = arith.addf %261, %262 : vector<16x128xf32>
    %264 = arith.negf %263 : vector<16x128xf32>
    %265 = math.exp %264 : vector<16x128xf32>
    %cst_70 = arith.constant 1.000000e+00 : f32
    %266 = vector.broadcast %cst_70 : f32 to vector<16x128xf32>
    %267 = arith.addf %266, %265 : vector<16x128xf32>
    %268 = arith.divf %266, %267 : vector<16x128xf32>
    %269 = vector.extract_strided_slice %250 {offsets = [0, 256], sizes = [16, 128], strides = [1, 1]} : vector<16x384xf32> to vector<16x128xf32>
    %270 = vector.extract_strided_slice %252 {offsets = [0, 256], sizes = [16, 128], strides = [1, 1]} : vector<16x384xf32> to vector<16x128xf32>
    %271 = arith.addf %270, %3 : vector<16x128xf32>
    %272 = arith.mulf %260, %271 : vector<16x128xf32>
    %273 = arith.addf %269, %272 : vector<16x128xf32>
    %274 = math.tanh %273 : vector<16x128xf32>
    %cst_71 = arith.constant 1.000000e+00 : f32
    %275 = vector.broadcast %cst_71 : f32 to vector<16x128xf32>
    %276 = arith.subf %275, %268 : vector<16x128xf32>
    %277 = arith.mulf %276, %274 : vector<16x128xf32>
    %278 = arith.mulf %268, %240 : vector<16x128xf32>
    %279 = arith.addf %277, %278 : vector<16x128xf32>
    %c0_i32_72 = arith.constant 0 : i32
    %280 = arith.addi %c0_i32_72, %c6_i32 : i32
    %c16_i32_73 = arith.constant 16 : i32
    %281 = arith.muli %280, %c16_i32_73 : i32
    %282 = tpu.assume_multiple %281, 16 : i32
    %283 = arith.truncf %279 : vector<16x128xf32> to vector<16x128xbf16>
    %284 = arith.index_cast %282 : i32 to index
    %c0_74 = arith.constant 0 : index
    %285 = vector.load %arg14[%284, %c0_74] : memref<128x128xbf16, #tpu.memory_space<vmem>>, vector<16x128xbf16>
    tpu.vector_store %arg14[%284, %c0_74], %283 {strides = array<i32>} : memref<128x128xbf16, #tpu.memory_space<vmem>>, vector<16x128xbf16>,
    %c7_i32 = arith.constant 7 : i32
    %c16_i32_75 = arith.constant 16 : i32
    %286 = arith.muli %c7_i32, %c16_i32_75 : i32
    %287 = tpu.assume_multiple %286, 16 : i32
    %288 = arith.index_cast %287 : i32 to index
    %c0_76 = arith.constant 0 : index
    %289 = vector.load %arg13[%288, %c0_76] : memref<128x384xf32, #tpu.memory_space<vmem>>, vector<16x384xf32>
    %290 = arith.truncf %279 : vector<16x128xf32> to vector<16x128xbf16>
    %cst_77 = arith.constant dense<0.000000e+00> : vector<16x384xf32>
    %291 = tpu.matmul %290, %4, %cst_77 {dimension_numbers = #tpu.dot_dimension_numbers<[1], [0], [0], [1], [0, 0, 1, 1], [], []>} : vector<16x128xbf16>, vector<128x384xbf16>, vector<16x384xf32> -> vector<16x384xf32>
    %292 = vector.extract_strided_slice %289 {offsets = [0, 0], sizes = [16, 128], strides = [1, 1]} : vector<16x384xf32> to vector<16x128xf32>
    %293 = vector.extract_strided_slice %291 {offsets = [0, 0], sizes = [16, 128], strides = [1, 1]} : vector<16x384xf32> to vector<16x128xf32>
    %294 = arith.addf %292, %293 : vector<16x128xf32>
    %295 = arith.negf %294 : vector<16x128xf32>
    %296 = math.exp %295 : vector<16x128xf32>
    %cst_78 = arith.constant 1.000000e+00 : f32
    %297 = vector.broadcast %cst_78 : f32 to vector<16x128xf32>
    %298 = arith.addf %297, %296 : vector<16x128xf32>
    %299 = arith.divf %297, %298 : vector<16x128xf32>
    %300 = vector.extract_strided_slice %289 {offsets = [0, 128], sizes = [16, 128], strides = [1, 1]} : vector<16x384xf32> to vector<16x128xf32>
    %301 = vector.extract_strided_slice %291 {offsets = [0, 128], sizes = [16, 128], strides = [1, 1]} : vector<16x384xf32> to vector<16x128xf32>
    %302 = arith.addf %300, %301 : vector<16x128xf32>
    %303 = arith.negf %302 : vector<16x128xf32>
    %304 = math.exp %303 : vector<16x128xf32>
    %cst_79 = arith.constant 1.000000e+00 : f32
    %305 = vector.broadcast %cst_79 : f32 to vector<16x128xf32>
    %306 = arith.addf %305, %304 : vector<16x128xf32>
    %307 = arith.divf %305, %306 : vector<16x128xf32>
    %308 = vector.extract_strided_slice %289 {offsets = [0, 256], sizes = [16, 128], strides = [1, 1]} : vector<16x384xf32> to vector<16x128xf32>
    %309 = vector.extract_strided_slice %291 {offsets = [0, 256], sizes = [16, 128], strides = [1, 1]} : vector<16x384xf32> to vector<16x128xf32>
    %310 = arith.addf %309, %3 : vector<16x128xf32>
    %311 = arith.mulf %299, %310 : vector<16x128xf32>
    %312 = arith.addf %308, %311 : vector<16x128xf32>
    %313 = math.tanh %312 : vector<16x128xf32>
    %cst_80 = arith.constant 1.000000e+00 : f32
    %314 = vector.broadcast %cst_80 : f32 to vector<16x128xf32>
    %315 = arith.subf %314, %307 : vector<16x128xf32>
    %316 = arith.mulf %315, %313 : vector<16x128xf32>
    %317 = arith.mulf %307, %279 : vector<16x128xf32>
    %318 = arith.addf %316, %317 : vector<16x128xf32>
    %c0_i32_81 = arith.constant 0 : i32
    %319 = arith.addi %c0_i32_81, %c7_i32 : i32
    %c16_i32_82 = arith.constant 16 : i32
    %320 = arith.muli %319, %c16_i32_82 : i32
    %321 = tpu.assume_multiple %320, 16 : i32
    %322 = arith.truncf %318 : vector<16x128xf32> to vector<16x128xbf16>
    %323 = arith.index_cast %321 : i32 to index
    %c0_83 = arith.constant 0 : index
    %324 = vector.load %arg14[%323, %c0_83] : memref<128x128xbf16, #tpu.memory_space<vmem>>, vector<16x128xbf16>
    tpu.vector_store %arg14[%323, %c0_83], %322 {strides = array<i32>} : memref<128x128xbf16, #tpu.memory_space<vmem>>, vector<16x128xbf16>,
    %c8_i32 = arith.constant 8 : i32
    %c0_84 = arith.constant 0 : index
    %c0_85 = arith.constant 0 : index
    %325 = vector.load %arg8[%c0_84, %c0_85] : memref<1x384xf32, #tpu.memory_space<vmem>>, vector<1x384xf32>
    %c0_86 = arith.constant 0 : index
    %c0_87 = arith.constant 0 : index
    %326 = vector.load %arg9[%c0_86, %c0_87] : memref<1x128xf32, #tpu.memory_space<vmem>>, vector<1x128xf32>
    %327 = vector.shape_cast %326 : vector<1x128xf32> to vector<1x128xf32>
    %328 = vector.broadcast %327 : vector<1x128xf32> to vector<16x128xf32>
    %c0_88 = arith.constant 0 : index
    %c0_89 = arith.constant 0 : index
    %329 = vector.load %arg7[%c0_88, %c0_89] : memref<128x384xbf16, #tpu.memory_space<vmem>>, vector<128x384xbf16>
    %cst_90 = arith.constant 0.000000e+00 : f32
    %330 = vector.broadcast %cst_90 : f32 to vector<16x128xf32>
    %c0_91 = arith.constant 0 : index
    %c0_92 = arith.constant 0 : index
    %331 = vector.load %arg14[%c0_91, %c0_92] : memref<128x128xbf16, #tpu.memory_space<vmem>>, vector<128x128xbf16>
    %c0_93 = arith.constant 0 : index
    %c0_94 = arith.constant 0 : index
    %332 = vector.load %arg6[%c0_93, %c0_94] : memref<128x384xbf16, #tpu.memory_space<vmem>>, vector<128x384xbf16>
    %cst_95 = arith.constant dense<0.000000e+00> : vector<128x384xf32>
    %333 = tpu.matmul %331, %332, %cst_95 {dimension_numbers = #tpu.dot_dimension_numbers<[1], [0], [0], [1], [0, 0, 1, 1], [], []>} : vector<128x128xbf16>, vector<128x384xbf16>, vector<128x384xf32> -> vector<128x384xf32>
    %334 = vector.broadcast %325 : vector<1x384xf32> to vector<128x384xf32>
    %335 = arith.addf %333, %334 : vector<128x384xf32>
    %c0_96 = arith.constant 0 : index
    %c0_97 = arith.constant 0 : index
    %336 = vector.load %arg13[%c0_96, %c0_97] : memref<128x384xf32, #tpu.memory_space<vmem>>, vector<128x384xf32>
    tpu.vector_store %arg13[%c0_96, %c0_97], %335 {strides = array<i32>} : memref<128x384xf32, #tpu.memory_space<vmem>>, vector<128x384xf32>,
    %c0_i32_98 = arith.constant 0 : i32
    %c16_i32_99 = arith.constant 16 : i32
    %337 = arith.muli %c0_i32_98, %c16_i32_99 : i32
    %338 = tpu.assume_multiple %337, 16 : i32
    %339 = arith.index_cast %338 : i32 to index
    %c0_100 = arith.constant 0 : index
    %340 = vector.load %arg13[%339, %c0_100] : memref<128x384xf32, #tpu.memory_space<vmem>>, vector<16x384xf32>
    %341 = arith.truncf %330 : vector<16x128xf32> to vector<16x128xbf16>
    %cst_101 = arith.constant dense<0.000000e+00> : vector<16x384xf32>
    %342 = tpu.matmul %341, %329, %cst_101 {dimension_numbers = #tpu.dot_dimension_numbers<[1], [0], [0], [1], [0, 0, 1, 1], [], []>} : vector<16x128xbf16>, vector<128x384xbf16>, vector<16x384xf32> -> vector<16x384xf32>
    %343 = vector.extract_strided_slice %340 {offsets = [0, 0], sizes = [16, 128], strides = [1, 1]} : vector<16x384xf32> to vector<16x128xf32>
    %344 = vector.extract_strided_slice %342 {offsets = [0, 0], sizes = [16, 128], strides = [1, 1]} : vector<16x384xf32> to vector<16x128xf32>
    %345 = arith.addf %343, %344 : vector<16x128xf32>
    %346 = arith.negf %345 : vector<16x128xf32>
    %347 = math.exp %346 : vector<16x128xf32>
    %cst_102 = arith.constant 1.000000e+00 : f32
    %348 = vector.broadcast %cst_102 : f32 to vector<16x128xf32>
    %349 = arith.addf %348, %347 : vector<16x128xf32>
    %350 = arith.divf %348, %349 : vector<16x128xf32>
    %351 = vector.extract_strided_slice %340 {offsets = [0, 128], sizes = [16, 128], strides = [1, 1]} : vector<16x384xf32> to vector<16x128xf32>
    %352 = vector.extract_strided_slice %342 {offsets = [0, 128], sizes = [16, 128], strides = [1, 1]} : vector<16x384xf32> to vector<16x128xf32>
    %353 = arith.addf %351, %352 : vector<16x128xf32>
    %354 = arith.negf %353 : vector<16x128xf32>
    %355 = math.exp %354 : vector<16x128xf32>
    %cst_103 = arith.constant 1.000000e+00 : f32
    %356 = vector.broadcast %cst_103 : f32 to vector<16x128xf32>
    %357 = arith.addf %356, %355 : vector<16x128xf32>
    %358 = arith.divf %356, %357 : vector<16x128xf32>
    %359 = vector.extract_strided_slice %340 {offsets = [0, 256], sizes = [16, 128], strides = [1, 1]} : vector<16x384xf32> to vector<16x128xf32>
    %360 = vector.extract_strided_slice %342 {offsets = [0, 256], sizes = [16, 128], strides = [1, 1]} : vector<16x384xf32> to vector<16x128xf32>
    %361 = arith.addf %360, %328 : vector<16x128xf32>
    %362 = arith.mulf %350, %361 : vector<16x128xf32>
    %363 = arith.addf %359, %362 : vector<16x128xf32>
    %364 = math.tanh %363 : vector<16x128xf32>
    %cst_104 = arith.constant 1.000000e+00 : f32
    %365 = vector.broadcast %cst_104 : f32 to vector<16x128xf32>
    %366 = arith.subf %365, %358 : vector<16x128xf32>
    %367 = arith.mulf %366, %364 : vector<16x128xf32>
    %368 = arith.mulf %358, %330 : vector<16x128xf32>
    %369 = arith.addf %367, %368 : vector<16x128xf32>
    %c0_i32_105 = arith.constant 0 : i32
    %370 = arith.addi %c0_i32_105, %c0_i32_98 : i32
    %c16_i32_106 = arith.constant 16 : i32
    %371 = arith.muli %370, %c16_i32_106 : i32
    %372 = tpu.assume_multiple %371, 16 : i32
    %373 = arith.truncf %369 : vector<16x128xf32> to vector<16x128xbf16>
    %374 = arith.index_cast %372 : i32 to index
    %c0_107 = arith.constant 0 : index
    %375 = vector.load %arg14[%374, %c0_107] : memref<128x128xbf16, #tpu.memory_space<vmem>>, vector<16x128xbf16>
    tpu.vector_store %arg14[%374, %c0_107], %373 {strides = array<i32>} : memref<128x128xbf16, #tpu.memory_space<vmem>>, vector<16x128xbf16>,
    %c1_i32_108 = arith.constant 1 : i32
    %c16_i32_109 = arith.constant 16 : i32
    %376 = arith.muli %c1_i32_108, %c16_i32_109 : i32
    %377 = tpu.assume_multiple %376, 16 : i32
    %378 = arith.index_cast %377 : i32 to index
    %c0_110 = arith.constant 0 : index
    %379 = vector.load %arg13[%378, %c0_110] : memref<128x384xf32, #tpu.memory_space<vmem>>, vector<16x384xf32>
    %380 = arith.truncf %369 : vector<16x128xf32> to vector<16x128xbf16>
    %cst_111 = arith.constant dense<0.000000e+00> : vector<16x384xf32>
    %381 = tpu.matmul %380, %329, %cst_111 {dimension_numbers = #tpu.dot_dimension_numbers<[1], [0], [0], [1], [0, 0, 1, 1], [], []>} : vector<16x128xbf16>, vector<128x384xbf16>, vector<16x384xf32> -> vector<16x384xf32>
    %382 = vector.extract_strided_slice %379 {offsets = [0, 0], sizes = [16, 128], strides = [1, 1]} : vector<16x384xf32> to vector<16x128xf32>
    %383 = vector.extract_strided_slice %381 {offsets = [0, 0], sizes = [16, 128], strides = [1, 1]} : vector<16x384xf32> to vector<16x128xf32>
    %384 = arith.addf %382, %383 : vector<16x128xf32>
    %385 = arith.negf %384 : vector<16x128xf32>
    %386 = math.exp %385 : vector<16x128xf32>
    %cst_112 = arith.constant 1.000000e+00 : f32
    %387 = vector.broadcast %cst_112 : f32 to vector<16x128xf32>
    %388 = arith.addf %387, %386 : vector<16x128xf32>
    %389 = arith.divf %387, %388 : vector<16x128xf32>
    %390 = vector.extract_strided_slice %379 {offsets = [0, 128], sizes = [16, 128], strides = [1, 1]} : vector<16x384xf32> to vector<16x128xf32>
    %391 = vector.extract_strided_slice %381 {offsets = [0, 128], sizes = [16, 128], strides = [1, 1]} : vector<16x384xf32> to vector<16x128xf32>
    %392 = arith.addf %390, %391 : vector<16x128xf32>
    %393 = arith.negf %392 : vector<16x128xf32>
    %394 = math.exp %393 : vector<16x128xf32>
    %cst_113 = arith.constant 1.000000e+00 : f32
    %395 = vector.broadcast %cst_113 : f32 to vector<16x128xf32>
    %396 = arith.addf %395, %394 : vector<16x128xf32>
    %397 = arith.divf %395, %396 : vector<16x128xf32>
    %398 = vector.extract_strided_slice %379 {offsets = [0, 256], sizes = [16, 128], strides = [1, 1]} : vector<16x384xf32> to vector<16x128xf32>
    %399 = vector.extract_strided_slice %381 {offsets = [0, 256], sizes = [16, 128], strides = [1, 1]} : vector<16x384xf32> to vector<16x128xf32>
    %400 = arith.addf %399, %328 : vector<16x128xf32>
    %401 = arith.mulf %389, %400 : vector<16x128xf32>
    %402 = arith.addf %398, %401 : vector<16x128xf32>
    %403 = math.tanh %402 : vector<16x128xf32>
    %cst_114 = arith.constant 1.000000e+00 : f32
    %404 = vector.broadcast %cst_114 : f32 to vector<16x128xf32>
    %405 = arith.subf %404, %397 : vector<16x128xf32>
    %406 = arith.mulf %405, %403 : vector<16x128xf32>
    %407 = arith.mulf %397, %369 : vector<16x128xf32>
    %408 = arith.addf %406, %407 : vector<16x128xf32>
    %c0_i32_115 = arith.constant 0 : i32
    %409 = arith.addi %c0_i32_115, %c1_i32_108 : i32
    %c16_i32_116 = arith.constant 16 : i32
    %410 = arith.muli %409, %c16_i32_116 : i32
    %411 = tpu.assume_multiple %410, 16 : i32
    %412 = arith.truncf %408 : vector<16x128xf32> to vector<16x128xbf16>
    %413 = arith.index_cast %411 : i32 to index
    %c0_117 = arith.constant 0 : index
    %414 = vector.load %arg14[%413, %c0_117] : memref<128x128xbf16, #tpu.memory_space<vmem>>, vector<16x128xbf16>
    tpu.vector_store %arg14[%413, %c0_117], %412 {strides = array<i32>} : memref<128x128xbf16, #tpu.memory_space<vmem>>, vector<16x128xbf16>,
    %c2_i32_118 = arith.constant 2 : i32
    %c16_i32_119 = arith.constant 16 : i32
    %415 = arith.muli %c2_i32_118, %c16_i32_119 : i32
    %416 = tpu.assume_multiple %415, 16 : i32
    %417 = arith.index_cast %416 : i32 to index
    %c0_120 = arith.constant 0 : index
    %418 = vector.load %arg13[%417, %c0_120] : memref<128x384xf32, #tpu.memory_space<vmem>>, vector<16x384xf32>
    %419 = arith.truncf %408 : vector<16x128xf32> to vector<16x128xbf16>
    %cst_121 = arith.constant dense<0.000000e+00> : vector<16x384xf32>
    %420 = tpu.matmul %419, %329, %cst_121 {dimension_numbers = #tpu.dot_dimension_numbers<[1], [0], [0], [1], [0, 0, 1, 1], [], []>} : vector<16x128xbf16>, vector<128x384xbf16>, vector<16x384xf32> -> vector<16x384xf32>
    %421 = vector.extract_strided_slice %418 {offsets = [0, 0], sizes = [16, 128], strides = [1, 1]} : vector<16x384xf32> to vector<16x128xf32>
    %422 = vector.extract_strided_slice %420 {offsets = [0, 0], sizes = [16, 128], strides = [1, 1]} : vector<16x384xf32> to vector<16x128xf32>
    %423 = arith.addf %421, %422 : vector<16x128xf32>
    %424 = arith.negf %423 : vector<16x128xf32>
    %425 = math.exp %424 : vector<16x128xf32>
    %cst_122 = arith.constant 1.000000e+00 : f32
    %426 = vector.broadcast %cst_122 : f32 to vector<16x128xf32>
    %427 = arith.addf %426, %425 : vector<16x128xf32>
    %428 = arith.divf %426, %427 : vector<16x128xf32>
    %429 = vector.extract_strided_slice %418 {offsets = [0, 128], sizes = [16, 128], strides = [1, 1]} : vector<16x384xf32> to vector<16x128xf32>
    %430 = vector.extract_strided_slice %420 {offsets = [0, 128], sizes = [16, 128], strides = [1, 1]} : vector<16x384xf32> to vector<16x128xf32>
    %431 = arith.addf %429, %430 : vector<16x128xf32>
    %432 = arith.negf %431 : vector<16x128xf32>
    %433 = math.exp %432 : vector<16x128xf32>
    %cst_123 = arith.constant 1.000000e+00 : f32
    %434 = vector.broadcast %cst_123 : f32 to vector<16x128xf32>
    %435 = arith.addf %434, %433 : vector<16x128xf32>
    %436 = arith.divf %434, %435 : vector<16x128xf32>
    %437 = vector.extract_strided_slice %418 {offsets = [0, 256], sizes = [16, 128], strides = [1, 1]} : vector<16x384xf32> to vector<16x128xf32>
    %438 = vector.extract_strided_slice %420 {offsets = [0, 256], sizes = [16, 128], strides = [1, 1]} : vector<16x384xf32> to vector<16x128xf32>
    %439 = arith.addf %438, %328 : vector<16x128xf32>
    %440 = arith.mulf %428, %439 : vector<16x128xf32>
    %441 = arith.addf %437, %440 : vector<16x128xf32>
    %442 = math.tanh %441 : vector<16x128xf32>
    %cst_124 = arith.constant 1.000000e+00 : f32
    %443 = vector.broadcast %cst_124 : f32 to vector<16x128xf32>
    %444 = arith.subf %443, %436 : vector<16x128xf32>
    %445 = arith.mulf %444, %442 : vector<16x128xf32>
    %446 = arith.mulf %436, %408 : vector<16x128xf32>
    %447 = arith.addf %445, %446 : vector<16x128xf32>
    %c0_i32_125 = arith.constant 0 : i32
    %448 = arith.addi %c0_i32_125, %c2_i32_118 : i32
    %c16_i32_126 = arith.constant 16 : i32
    %449 = arith.muli %448, %c16_i32_126 : i32
    %450 = tpu.assume_multiple %449, 16 : i32
    %451 = arith.truncf %447 : vector<16x128xf32> to vector<16x128xbf16>
    %452 = arith.index_cast %450 : i32 to index
    %c0_127 = arith.constant 0 : index
    %453 = vector.load %arg14[%452, %c0_127] : memref<128x128xbf16, #tpu.memory_space<vmem>>, vector<16x128xbf16>
    tpu.vector_store %arg14[%452, %c0_127], %451 {strides = array<i32>} : memref<128x128xbf16, #tpu.memory_space<vmem>>, vector<16x128xbf16>,
    %c3_i32_128 = arith.constant 3 : i32
    %c16_i32_129 = arith.constant 16 : i32
    %454 = arith.muli %c3_i32_128, %c16_i32_129 : i32
    %455 = tpu.assume_multiple %454, 16 : i32
    %456 = arith.index_cast %455 : i32 to index
    %c0_130 = arith.constant 0 : index
    %457 = vector.load %arg13[%456, %c0_130] : memref<128x384xf32, #tpu.memory_space<vmem>>, vector<16x384xf32>
    %458 = arith.truncf %447 : vector<16x128xf32> to vector<16x128xbf16>
    %cst_131 = arith.constant dense<0.000000e+00> : vector<16x384xf32>
    %459 = tpu.matmul %458, %329, %cst_131 {dimension_numbers = #tpu.dot_dimension_numbers<[1], [0], [0], [1], [0, 0, 1, 1], [], []>} : vector<16x128xbf16>, vector<128x384xbf16>, vector<16x384xf32> -> vector<16x384xf32>
    %460 = vector.extract_strided_slice %457 {offsets = [0, 0], sizes = [16, 128], strides = [1, 1]} : vector<16x384xf32> to vector<16x128xf32>
    %461 = vector.extract_strided_slice %459 {offsets = [0, 0], sizes = [16, 128], strides = [1, 1]} : vector<16x384xf32> to vector<16x128xf32>
    %462 = arith.addf %460, %461 : vector<16x128xf32>
    %463 = arith.negf %462 : vector<16x128xf32>
    %464 = math.exp %463 : vector<16x128xf32>
    %cst_132 = arith.constant 1.000000e+00 : f32
    %465 = vector.broadcast %cst_132 : f32 to vector<16x128xf32>
    %466 = arith.addf %465, %464 : vector<16x128xf32>
    %467 = arith.divf %465, %466 : vector<16x128xf32>
    %468 = vector.extract_strided_slice %457 {offsets = [0, 128], sizes = [16, 128], strides = [1, 1]} : vector<16x384xf32> to vector<16x128xf32>
    %469 = vector.extract_strided_slice %459 {offsets = [0, 128], sizes = [16, 128], strides = [1, 1]} : vector<16x384xf32> to vector<16x128xf32>
    %470 = arith.addf %468, %469 : vector<16x128xf32>
    %471 = arith.negf %470 : vector<16x128xf32>
    %472 = math.exp %471 : vector<16x128xf32>
    %cst_133 = arith.constant 1.000000e+00 : f32
    %473 = vector.broadcast %cst_133 : f32 to vector<16x128xf32>
    %474 = arith.addf %473, %472 : vector<16x128xf32>
    %475 = arith.divf %473, %474 : vector<16x128xf32>
    %476 = vector.extract_strided_slice %457 {offsets = [0, 256], sizes = [16, 128], strides = [1, 1]} : vector<16x384xf32> to vector<16x128xf32>
    %477 = vector.extract_strided_slice %459 {offsets = [0, 256], sizes = [16, 128], strides = [1, 1]} : vector<16x384xf32> to vector<16x128xf32>
    %478 = arith.addf %477, %328 : vector<16x128xf32>
    %479 = arith.mulf %467, %478 : vector<16x128xf32>
    %480 = arith.addf %476, %479 : vector<16x128xf32>
    %481 = math.tanh %480 : vector<16x128xf32>
    %cst_134 = arith.constant 1.000000e+00 : f32
    %482 = vector.broadcast %cst_134 : f32 to vector<16x128xf32>
    %483 = arith.subf %482, %475 : vector<16x128xf32>
    %484 = arith.mulf %483, %481 : vector<16x128xf32>
    %485 = arith.mulf %475, %447 : vector<16x128xf32>
    %486 = arith.addf %484, %485 : vector<16x128xf32>
    %c0_i32_135 = arith.constant 0 : i32
    %487 = arith.addi %c0_i32_135, %c3_i32_128 : i32
    %c16_i32_136 = arith.constant 16 : i32
    %488 = arith.muli %487, %c16_i32_136 : i32
    %489 = tpu.assume_multiple %488, 16 : i32
    %490 = arith.truncf %486 : vector<16x128xf32> to vector<16x128xbf16>
    %491 = arith.index_cast %489 : i32 to index
    %c0_137 = arith.constant 0 : index
    %492 = vector.load %arg14[%491, %c0_137] : memref<128x128xbf16, #tpu.memory_space<vmem>>, vector<16x128xbf16>
    tpu.vector_store %arg14[%491, %c0_137], %490 {strides = array<i32>} : memref<128x128xbf16, #tpu.memory_space<vmem>>, vector<16x128xbf16>,
    %c4_i32_138 = arith.constant 4 : i32
    %c16_i32_139 = arith.constant 16 : i32
    %493 = arith.muli %c4_i32_138, %c16_i32_139 : i32
    %494 = tpu.assume_multiple %493, 16 : i32
    %495 = arith.index_cast %494 : i32 to index
    %c0_140 = arith.constant 0 : index
    %496 = vector.load %arg13[%495, %c0_140] : memref<128x384xf32, #tpu.memory_space<vmem>>, vector<16x384xf32>
    %497 = arith.truncf %486 : vector<16x128xf32> to vector<16x128xbf16>
    %cst_141 = arith.constant dense<0.000000e+00> : vector<16x384xf32>
    %498 = tpu.matmul %497, %329, %cst_141 {dimension_numbers = #tpu.dot_dimension_numbers<[1], [0], [0], [1], [0, 0, 1, 1], [], []>} : vector<16x128xbf16>, vector<128x384xbf16>, vector<16x384xf32> -> vector<16x384xf32>
    %499 = vector.extract_strided_slice %496 {offsets = [0, 0], sizes = [16, 128], strides = [1, 1]} : vector<16x384xf32> to vector<16x128xf32>
    %500 = vector.extract_strided_slice %498 {offsets = [0, 0], sizes = [16, 128], strides = [1, 1]} : vector<16x384xf32> to vector<16x128xf32>
    %501 = arith.addf %499, %500 : vector<16x128xf32>
    %502 = arith.negf %501 : vector<16x128xf32>
    %503 = math.exp %502 : vector<16x128xf32>
    %cst_142 = arith.constant 1.000000e+00 : f32
    %504 = vector.broadcast %cst_142 : f32 to vector<16x128xf32>
    %505 = arith.addf %504, %503 : vector<16x128xf32>
    %506 = arith.divf %504, %505 : vector<16x128xf32>
    %507 = vector.extract_strided_slice %496 {offsets = [0, 128], sizes = [16, 128], strides = [1, 1]} : vector<16x384xf32> to vector<16x128xf32>
    %508 = vector.extract_strided_slice %498 {offsets = [0, 128], sizes = [16, 128], strides = [1, 1]} : vector<16x384xf32> to vector<16x128xf32>
    %509 = arith.addf %507, %508 : vector<16x128xf32>
    %510 = arith.negf %509 : vector<16x128xf32>
    %511 = math.exp %510 : vector<16x128xf32>
    %cst_143 = arith.constant 1.000000e+00 : f32
    %512 = vector.broadcast %cst_143 : f32 to vector<16x128xf32>
    %513 = arith.addf %512, %511 : vector<16x128xf32>
    %514 = arith.divf %512, %513 : vector<16x128xf32>
    %515 = vector.extract_strided_slice %496 {offsets = [0, 256], sizes = [16, 128], strides = [1, 1]} : vector<16x384xf32> to vector<16x128xf32>
    %516 = vector.extract_strided_slice %498 {offsets = [0, 256], sizes = [16, 128], strides = [1, 1]} : vector<16x384xf32> to vector<16x128xf32>
    %517 = arith.addf %516, %328 : vector<16x128xf32>
    %518 = arith.mulf %506, %517 : vector<16x128xf32>
    %519 = arith.addf %515, %518 : vector<16x128xf32>
    %520 = math.tanh %519 : vector<16x128xf32>
    %cst_144 = arith.constant 1.000000e+00 : f32
    %521 = vector.broadcast %cst_144 : f32 to vector<16x128xf32>
    %522 = arith.subf %521, %514 : vector<16x128xf32>
    %523 = arith.mulf %522, %520 : vector<16x128xf32>
    %524 = arith.mulf %514, %486 : vector<16x128xf32>
    %525 = arith.addf %523, %524 : vector<16x128xf32>
    %c0_i32_145 = arith.constant 0 : i32
    %526 = arith.addi %c0_i32_145, %c4_i32_138 : i32
    %c16_i32_146 = arith.constant 16 : i32
    %527 = arith.muli %526, %c16_i32_146 : i32
    %528 = tpu.assume_multiple %527, 16 : i32
    %529 = arith.truncf %525 : vector<16x128xf32> to vector<16x128xbf16>
    %530 = arith.index_cast %528 : i32 to index
    %c0_147 = arith.constant 0 : index
    %531 = vector.load %arg14[%530, %c0_147] : memref<128x128xbf16, #tpu.memory_space<vmem>>, vector<16x128xbf16>
    tpu.vector_store %arg14[%530, %c0_147], %529 {strides = array<i32>} : memref<128x128xbf16, #tpu.memory_space<vmem>>, vector<16x128xbf16>,
    %c5_i32_148 = arith.constant 5 : i32
    %c16_i32_149 = arith.constant 16 : i32
    %532 = arith.muli %c5_i32_148, %c16_i32_149 : i32
    %533 = tpu.assume_multiple %532, 16 : i32
    %534 = arith.index_cast %533 : i32 to index
    %c0_150 = arith.constant 0 : index
    %535 = vector.load %arg13[%534, %c0_150] : memref<128x384xf32, #tpu.memory_space<vmem>>, vector<16x384xf32>
    %536 = arith.truncf %525 : vector<16x128xf32> to vector<16x128xbf16>
    %cst_151 = arith.constant dense<0.000000e+00> : vector<16x384xf32>
    %537 = tpu.matmul %536, %329, %cst_151 {dimension_numbers = #tpu.dot_dimension_numbers<[1], [0], [0], [1], [0, 0, 1, 1], [], []>} : vector<16x128xbf16>, vector<128x384xbf16>, vector<16x384xf32> -> vector<16x384xf32>
    %538 = vector.extract_strided_slice %535 {offsets = [0, 0], sizes = [16, 128], strides = [1, 1]} : vector<16x384xf32> to vector<16x128xf32>
    %539 = vector.extract_strided_slice %537 {offsets = [0, 0], sizes = [16, 128], strides = [1, 1]} : vector<16x384xf32> to vector<16x128xf32>
    %540 = arith.addf %538, %539 : vector<16x128xf32>
    %541 = arith.negf %540 : vector<16x128xf32>
    %542 = math.exp %541 : vector<16x128xf32>
    %cst_152 = arith.constant 1.000000e+00 : f32
    %543 = vector.broadcast %cst_152 : f32 to vector<16x128xf32>
    %544 = arith.addf %543, %542 : vector<16x128xf32>
    %545 = arith.divf %543, %544 : vector<16x128xf32>
    %546 = vector.extract_strided_slice %535 {offsets = [0, 128], sizes = [16, 128], strides = [1, 1]} : vector<16x384xf32> to vector<16x128xf32>
    %547 = vector.extract_strided_slice %537 {offsets = [0, 128], sizes = [16, 128], strides = [1, 1]} : vector<16x384xf32> to vector<16x128xf32>
    %548 = arith.addf %546, %547 : vector<16x128xf32>
    %549 = arith.negf %548 : vector<16x128xf32>
    %550 = math.exp %549 : vector<16x128xf32>
    %cst_153 = arith.constant 1.000000e+00 : f32
    %551 = vector.broadcast %cst_153 : f32 to vector<16x128xf32>
    %552 = arith.addf %551, %550 : vector<16x128xf32>
    %553 = arith.divf %551, %552 : vector<16x128xf32>
    %554 = vector.extract_strided_slice %535 {offsets = [0, 256], sizes = [16, 128], strides = [1, 1]} : vector<16x384xf32> to vector<16x128xf32>
    %555 = vector.extract_strided_slice %537 {offsets = [0, 256], sizes = [16, 128], strides = [1, 1]} : vector<16x384xf32> to vector<16x128xf32>
    %556 = arith.addf %555, %328 : vector<16x128xf32>
    %557 = arith.mulf %545, %556 : vector<16x128xf32>
    %558 = arith.addf %554, %557 : vector<16x128xf32>
    %559 = math.tanh %558 : vector<16x128xf32>
    %cst_154 = arith.constant 1.000000e+00 : f32
    %560 = vector.broadcast %cst_154 : f32 to vector<16x128xf32>
    %561 = arith.subf %560, %553 : vector<16x128xf32>
    %562 = arith.mulf %561, %559 : vector<16x128xf32>
    %563 = arith.mulf %553, %525 : vector<16x128xf32>
    %564 = arith.addf %562, %563 : vector<16x128xf32>
    %c0_i32_155 = arith.constant 0 : i32
    %565 = arith.addi %c0_i32_155, %c5_i32_148 : i32
    %c16_i32_156 = arith.constant 16 : i32
    %566 = arith.muli %565, %c16_i32_156 : i32
    %567 = tpu.assume_multiple %566, 16 : i32
    %568 = arith.truncf %564 : vector<16x128xf32> to vector<16x128xbf16>
    %569 = arith.index_cast %567 : i32 to index
    %c0_157 = arith.constant 0 : index
    %570 = vector.load %arg14[%569, %c0_157] : memref<128x128xbf16, #tpu.memory_space<vmem>>, vector<16x128xbf16>
    tpu.vector_store %arg14[%569, %c0_157], %568 {strides = array<i32>} : memref<128x128xbf16, #tpu.memory_space<vmem>>, vector<16x128xbf16>,
    %c6_i32_158 = arith.constant 6 : i32
    %c16_i32_159 = arith.constant 16 : i32
    %571 = arith.muli %c6_i32_158, %c16_i32_159 : i32
    %572 = tpu.assume_multiple %571, 16 : i32
    %573 = arith.index_cast %572 : i32 to index
    %c0_160 = arith.constant 0 : index
    %574 = vector.load %arg13[%573, %c0_160] : memref<128x384xf32, #tpu.memory_space<vmem>>, vector<16x384xf32>
    %575 = arith.truncf %564 : vector<16x128xf32> to vector<16x128xbf16>
    %cst_161 = arith.constant dense<0.000000e+00> : vector<16x384xf32>
    %576 = tpu.matmul %575, %329, %cst_161 {dimension_numbers = #tpu.dot_dimension_numbers<[1], [0], [0], [1], [0, 0, 1, 1], [], []>} : vector<16x128xbf16>, vector<128x384xbf16>, vector<16x384xf32> -> vector<16x384xf32>
    %577 = vector.extract_strided_slice %574 {offsets = [0, 0], sizes = [16, 128], strides = [1, 1]} : vector<16x384xf32> to vector<16x128xf32>
    %578 = vector.extract_strided_slice %576 {offsets = [0, 0], sizes = [16, 128], strides = [1, 1]} : vector<16x384xf32> to vector<16x128xf32>
    %579 = arith.addf %577, %578 : vector<16x128xf32>
    %580 = arith.negf %579 : vector<16x128xf32>
    %581 = math.exp %580 : vector<16x128xf32>
    %cst_162 = arith.constant 1.000000e+00 : f32
    %582 = vector.broadcast %cst_162 : f32 to vector<16x128xf32>
    %583 = arith.addf %582, %581 : vector<16x128xf32>
    %584 = arith.divf %582, %583 : vector<16x128xf32>
    %585 = vector.extract_strided_slice %574 {offsets = [0, 128], sizes = [16, 128], strides = [1, 1]} : vector<16x384xf32> to vector<16x128xf32>
    %586 = vector.extract_strided_slice %576 {offsets = [0, 128], sizes = [16, 128], strides = [1, 1]} : vector<16x384xf32> to vector<16x128xf32>
    %587 = arith.addf %585, %586 : vector<16x128xf32>
    %588 = arith.negf %587 : vector<16x128xf32>
    %589 = math.exp %588 : vector<16x128xf32>
    %cst_163 = arith.constant 1.000000e+00 : f32
    %590 = vector.broadcast %cst_163 : f32 to vector<16x128xf32>
    %591 = arith.addf %590, %589 : vector<16x128xf32>
    %592 = arith.divf %590, %591 : vector<16x128xf32>
    %593 = vector.extract_strided_slice %574 {offsets = [0, 256], sizes = [16, 128], strides = [1, 1]} : vector<16x384xf32> to vector<16x128xf32>
    %594 = vector.extract_strided_slice %576 {offsets = [0, 256], sizes = [16, 128], strides = [1, 1]} : vector<16x384xf32> to vector<16x128xf32>
    %595 = arith.addf %594, %328 : vector<16x128xf32>
    %596 = arith.mulf %584, %595 : vector<16x128xf32>
    %597 = arith.addf %593, %596 : vector<16x128xf32>
    %598 = math.tanh %597 : vector<16x128xf32>
    %cst_164 = arith.constant 1.000000e+00 : f32
    %599 = vector.broadcast %cst_164 : f32 to vector<16x128xf32>
    %600 = arith.subf %599, %592 : vector<16x128xf32>
    %601 = arith.mulf %600, %598 : vector<16x128xf32>
    %602 = arith.mulf %592, %564 : vector<16x128xf32>
    %603 = arith.addf %601, %602 : vector<16x128xf32>
    %c0_i32_165 = arith.constant 0 : i32
    %604 = arith.addi %c0_i32_165, %c6_i32_158 : i32
    %c16_i32_166 = arith.constant 16 : i32
    %605 = arith.muli %604, %c16_i32_166 : i32
    %606 = tpu.assume_multiple %605, 16 : i32
    %607 = arith.truncf %603 : vector<16x128xf32> to vector<16x128xbf16>
    %608 = arith.index_cast %606 : i32 to index
    %c0_167 = arith.constant 0 : index
    %609 = vector.load %arg14[%608, %c0_167] : memref<128x128xbf16, #tpu.memory_space<vmem>>, vector<16x128xbf16>
    tpu.vector_store %arg14[%608, %c0_167], %607 {strides = array<i32>} : memref<128x128xbf16, #tpu.memory_space<vmem>>, vector<16x128xbf16>,
    %c7_i32_168 = arith.constant 7 : i32
    %c16_i32_169 = arith.constant 16 : i32
    %610 = arith.muli %c7_i32_168, %c16_i32_169 : i32
    %611 = tpu.assume_multiple %610, 16 : i32
    %612 = arith.index_cast %611 : i32 to index
    %c0_170 = arith.constant 0 : index
    %613 = vector.load %arg13[%612, %c0_170] : memref<128x384xf32, #tpu.memory_space<vmem>>, vector<16x384xf32>
    %614 = arith.truncf %603 : vector<16x128xf32> to vector<16x128xbf16>
    %cst_171 = arith.constant dense<0.000000e+00> : vector<16x384xf32>
    %615 = tpu.matmul %614, %329, %cst_171 {dimension_numbers = #tpu.dot_dimension_numbers<[1], [0], [0], [1], [0, 0, 1, 1], [], []>} : vector<16x128xbf16>, vector<128x384xbf16>, vector<16x384xf32> -> vector<16x384xf32>
    %616 = vector.extract_strided_slice %613 {offsets = [0, 0], sizes = [16, 128], strides = [1, 1]} : vector<16x384xf32> to vector<16x128xf32>
    %617 = vector.extract_strided_slice %615 {offsets = [0, 0], sizes = [16, 128], strides = [1, 1]} : vector<16x384xf32> to vector<16x128xf32>
    %618 = arith.addf %616, %617 : vector<16x128xf32>
    %619 = arith.negf %618 : vector<16x128xf32>
    %620 = math.exp %619 : vector<16x128xf32>
    %cst_172 = arith.constant 1.000000e+00 : f32
    %621 = vector.broadcast %cst_172 : f32 to vector<16x128xf32>
    %622 = arith.addf %621, %620 : vector<16x128xf32>
    %623 = arith.divf %621, %622 : vector<16x128xf32>
    %624 = vector.extract_strided_slice %613 {offsets = [0, 128], sizes = [16, 128], strides = [1, 1]} : vector<16x384xf32> to vector<16x128xf32>
    %625 = vector.extract_strided_slice %615 {offsets = [0, 128], sizes = [16, 128], strides = [1, 1]} : vector<16x384xf32> to vector<16x128xf32>
    %626 = arith.addf %624, %625 : vector<16x128xf32>
    %627 = arith.negf %626 : vector<16x128xf32>
    %628 = math.exp %627 : vector<16x128xf32>
    %cst_173 = arith.constant 1.000000e+00 : f32
    %629 = vector.broadcast %cst_173 : f32 to vector<16x128xf32>
    %630 = arith.addf %629, %628 : vector<16x128xf32>
    %631 = arith.divf %629, %630 : vector<16x128xf32>
    %632 = vector.extract_strided_slice %613 {offsets = [0, 256], sizes = [16, 128], strides = [1, 1]} : vector<16x384xf32> to vector<16x128xf32>
    %633 = vector.extract_strided_slice %615 {offsets = [0, 256], sizes = [16, 128], strides = [1, 1]} : vector<16x384xf32> to vector<16x128xf32>
    %634 = arith.addf %633, %328 : vector<16x128xf32>
    %635 = arith.mulf %623, %634 : vector<16x128xf32>
    %636 = arith.addf %632, %635 : vector<16x128xf32>
    %637 = math.tanh %636 : vector<16x128xf32>
    %cst_174 = arith.constant 1.000000e+00 : f32
    %638 = vector.broadcast %cst_174 : f32 to vector<16x128xf32>
    %639 = arith.subf %638, %631 : vector<16x128xf32>
    %640 = arith.mulf %639, %637 : vector<16x128xf32>
    %641 = arith.mulf %631, %603 : vector<16x128xf32>
    %642 = arith.addf %640, %641 : vector<16x128xf32>
    %c0_i32_175 = arith.constant 0 : i32
    %643 = arith.addi %c0_i32_175, %c7_i32_168 : i32
    %c16_i32_176 = arith.constant 16 : i32
    %644 = arith.muli %643, %c16_i32_176 : i32
    %645 = tpu.assume_multiple %644, 16 : i32
    %646 = arith.truncf %642 : vector<16x128xf32> to vector<16x128xbf16>
    %647 = arith.index_cast %645 : i32 to index
    %c0_177 = arith.constant 0 : index
    %648 = vector.load %arg14[%647, %c0_177] : memref<128x128xbf16, #tpu.memory_space<vmem>>, vector<16x128xbf16>
    tpu.vector_store %arg14[%647, %c0_177], %646 {strides = array<i32>} : memref<128x128xbf16, #tpu.memory_space<vmem>>, vector<16x128xbf16>,
    %c8_i32_178 = arith.constant 8 : i32
    %c80 = arith.constant 80 : index
    %c0_179 = arith.constant 0 : index
    %649 = vector.load %arg14[%c80, %c0_179] : memref<128x128xbf16, #tpu.memory_space<vmem>>, vector<48x128xbf16>
    %c0_180 = arith.constant 0 : index
    %c0_181 = arith.constant 0 : index
    %650 = vector.load %arg10[%c0_180, %c0_181] : memref<128x128xbf16, #tpu.memory_space<vmem>>, vector<128x128xbf16>
    %cst_182 = arith.constant dense<0.000000e+00> : vector<48x128xf32>
    %651 = tpu.matmul %649, %650, %cst_182 {dimension_numbers = #tpu.dot_dimension_numbers<[1], [0], [0], [1], [0, 0, 1, 1], [], []>} : vector<48x128xbf16>, vector<128x128xbf16>, vector<48x128xf32> -> vector<48x128xf32>
    %c0_183 = arith.constant 0 : index
    %c0_184 = arith.constant 0 : index
    %652 = vector.load %arg11[%c0_183, %c0_184] : memref<1x128xf32, #tpu.memory_space<vmem>>, vector<1x128xf32>
    %653 = vector.broadcast %652 : vector<1x128xf32> to vector<48x128xf32>
    %654 = arith.addf %651, %653 : vector<48x128xf32>
    %c0_185 = arith.constant 0 : index
    %c0_186 = arith.constant 0 : index
    %c0_187 = arith.constant 0 : index
    %655 = vector.load %arg12[%c0_185, %c0_186, %c0_187] : memref<1x48x128xf32, #tpu.memory_space<vmem>>, vector<1x48x128xf32>
    %656 = vector.shape_cast %655 : vector<1x48x128xf32> to vector<48x128xf32>
    %657 = vector.shape_cast %654 : vector<48x128xf32> to vector<1x48x128xf32>
    tpu.vector_store %arg12[%c0_185, %c0_186, %c0_187], %657 {strides = array<i32>} : memref<1x48x128xf32, #tpu.memory_space<vmem>>, vector<1x48x128xf32>,
    return
  }
  func.func @transform_0(%arg0: i32) -> (i32, i32, i32) {
    %c0_i32 = arith.constant 0 : i32
    %c0_i32_0 = arith.constant 0 : i32
    %c0_i32_1 = arith.constant 0 : i32
    return %arg0, %c0_i32, %c0_i32_0 : i32, i32, i32
  }
  func.func @transform_1(%arg0: i32) -> (i32, i32) {
    %c0_i32 = arith.constant 0 : i32
    %c0_i32_0 = arith.constant 0 : i32
    %c0_i32_1 = arith.constant 0 : i32
    return %c0_i32, %c0_i32_0 : i32, i32
  }
  func.func @transform_2(%arg0: i32) -> (i32, i32) {
    %c0_i32 = arith.constant 0 : i32
    %c0_i32_0 = arith.constant 0 : i32
    %c0_i32_1 = arith.constant 0 : i32
    return %c0_i32, %c0_i32_0 : i32, i32
  }
  func.func @transform_3(%arg0: i32) -> (i32, i32) {
    %c0_i32 = arith.constant 0 : i32
    %c0_i32_0 = arith.constant 0 : i32
    %c0_i32_1 = arith.constant 0 : i32
    return %c0_i32, %c0_i32_0 : i32, i32
  }
  func.func @transform_4(%arg0: i32) -> (i32, i32) {
    %c0_i32 = arith.constant 0 : i32
    %c0_i32_0 = arith.constant 0 : i32
    %c0_i32_1 = arith.constant 0 : i32
    return %c0_i32, %c0_i32_0 : i32, i32
  }
  func.func @transform_5(%arg0: i32) -> (i32, i32) {
    %c0_i32 = arith.constant 0 : i32
    %c0_i32_0 = arith.constant 0 : i32
    %c0_i32_1 = arith.constant 0 : i32
    return %c0_i32, %c0_i32_0 : i32, i32
  }
  func.func @transform_6(%arg0: i32) -> (i32, i32) {
    %c0_i32 = arith.constant 0 : i32
    %c0_i32_0 = arith.constant 0 : i32
    %c0_i32_1 = arith.constant 0 : i32
    return %c0_i32, %c0_i32_0 : i32, i32
  }
  func.func @transform_7(%arg0: i32) -> (i32, i32) {
    %c0_i32 = arith.constant 0 : i32
    %c0_i32_0 = arith.constant 0 : i32
    %c0_i32_1 = arith.constant 0 : i32
    return %c0_i32, %c0_i32_0 : i32, i32
  }
  func.func @transform_8(%arg0: i32) -> (i32, i32) {
    %c0_i32 = arith.constant 0 : i32
    %c0_i32_0 = arith.constant 0 : i32
    %c0_i32_1 = arith.constant 0 : i32
    return %c0_i32, %c0_i32_0 : i32, i32
  }
  func.func @transform_9(%arg0: i32) -> (i32, i32) {
    %c0_i32 = arith.constant 0 : i32
    %c0_i32_0 = arith.constant 0 : i32
    %c0_i32_1 = arith.constant 0 : i32
    return %c0_i32, %c0_i32_0 : i32, i32
  }
  func.func @transform_10(%arg0: i32) -> (i32, i32) {
    %c0_i32 = arith.constant 0 : i32
    %c0_i32_0 = arith.constant 0 : i32
    %c0_i32_1 = arith.constant 0 : i32
    return %c0_i32, %c0_i32_0 : i32, i32
  }
  func.func @transform_11(%arg0: i32) -> (i32, i32, i32) {
    %c0_i32 = arith.constant 0 : i32
    %c0_i32_0 = arith.constant 0 : i32
    %c0_i32_1 = arith.constant 0 : i32
    return %arg0, %c0_i32, %c0_i32_0 : i32, i32, i32
  }
}

</mosaic_0001>

<bundles_post_ra>
// kernel: vanilla_gru_forward.1
= control target key start
LH: loop header
LB: loop body
LE: loop exit
PB: predicated region body
PF: predicated region fallthrough
CT: control target
= control target key end

     0   :  { %v6978_v1 = vmov 0   ;;  %v6980_v50 = vmov 0.0   ;;  %vm5111_vm0 = vmmov 0   ;;  %s6963_s1 = inlined_call_operand.vmem [shape: bf16[128,384], index: 1, kind: input, shape index: {}]   ;;  %s6964_s0 = inlined_call_operand.vmem [shape: bf16[1,128,128], index: 0, kind: input, shape index: {}]   ;;  %s6965_s2 = inlined_call_operand.vmem [shape: bf16[128,384], index: 2, kind: input, shape index: {}]   ;;  %s6966_s3 = inlined_call_operand.vmem [shape: f32[1,384], index: 3, kind: input, shape index: {}]   ;;  %s6967_s4 = inlined_call_operand.vmem [shape: f32[1,128], index: 4, kind: input, shape index: {}]   ;;  %s6968_s5 = inlined_call_operand.vmem [shape: bf16[128,384], index: 5, kind: input, shape index: {}]   ;;  %s6969_s6 = inlined_call_operand.vmem [shape: bf16[128,384], index: 6, kind: input, shape index: {}]   ;;  %s6970_s7 = inlined_call_operand.vmem [shape: f32[1,384], index: 7, kind: input, shape index: {}]   ;;  %s6971_s8 = inlined_call_operand.vmem [shape: f32[1,128], index: 8, kind: input, shape index: {}]   ;;  %s6972_s9 = inlined_call_operand.vmem [shape: bf16[128,128], index: 9, kind: input, shape index: {}]   ;;  %s6973_s10 = inlined_call_operand.vmem [shape: f32[1,128], index: 10, kind: input, shape index: {}]   ;;  %s6974_s11 = inlined_call_operand.vmem [shape: f32[1,48,128], index: 11, kind: output, shape index: {}]  }
   0x1   :  { %v4595_v0 = vld [vmem:[%s6963_s1 + $0x4] ss:$12 sps:$4 sm:$0xff]   ;;  %351 = vmatprep.mubr.bf16.mxu0 %v6978_v1  ;;  %391 = vmatprep.mubr.bf16.mxu1 %v6978_v1  ;;  %v4597_v2 = vld [vmem:[%s6963_s1] ss:$12 sps:$4 sm:$0xff]   ;;  %v4598_v3 = vld [vmem:[%s6963_s1 + $0x1c] ss:$12 sps:$4 sm:$0xff]  }
   0x2   :  { %319 = vmatprep.subr.bf16.mxu0 %v4595_v0  ;;  %4448 = vmatprep.subr.bf16.mxu1 %v4595_v0  ;;  %v4600_v4 = vld [vmem:[%s6963_s1 + $0x18] ss:$12 sps:$4 sm:$0xff]   ;;  %v4601_v5 = vld [vmem:[%s6963_s1 + $0x34] ss:$12 sps:$4 sm:$0xff]   ;;  %v4603_v6 = vld [vmem:[%s6963_s1 + $0x30] ss:$12 sps:$4 sm:$0xff]  }
   0x3   :  { %320 = vmatpush1.bf16.msra.mxu0 %v4597_v2  ;;  %4456 = vmatpush1.bf16.msra.mxu1 %v4597_v2  ;;  %v4604_v7 = vld [vmem:[%s6963_s1 + $0x4c] ss:$12 sps:$4 sm:$0xff]   ;;  %v4606_v8 = vld [vmem:[%s6963_s1 + $0x48] ss:$12 sps:$4 sm:$0xff]   ;;  %v4607_v9 = vld [vmem:[%s6963_s1 + $0x64] ss:$12 sps:$4 sm:$0xff]  }
   0x4   :  { %321 = vmatprep.subr.bf16.mxu0 %v4598_v3  ;;  %4449 = vmatprep.subr.bf16.mxu1 %v4598_v3  ;;  %v4609_v10 = vld [vmem:[%s6963_s1 + $0x60] ss:$12 sps:$4 sm:$0xff]   ;;  %v4610_v11 = vld [vmem:[%s6963_s1 + $0x7c] ss:$12 sps:$4 sm:$0xff]   ;;  %v4612_v12 = vld [vmem:[%s6963_s1 + $0x78] ss:$12 sps:$4 sm:$0xff]  }
   0x5   :  { %v4613_v13 = vld [vmem:[%s6963_s1 + $0x94] ss:$12 sps:$4 sm:$0xff]   ;;  %v4615_v14 = vld [vmem:[%s6963_s1 + $0x90] ss:$12 sps:$4 sm:$0xff]   ;;  %v4616_v15 = vld [vmem:[%s6963_s1 + $0xac] ss:$12 sps:$4 sm:$0xff]  }
   0x6   :  { %v4618_v16 = vld [vmem:[%s6963_s1 + $0xa8] ss:$12 sps:$4 sm:$0xff]   ;;  %v5228_v18 = vld [vmem:[%s6965_s2 + $0x4] ss:$12 sps:$4 sm:$0xff]   ;;  %v5243_v21 = vld [vmem:[%s6965_s2] ss:$12 sps:$4 sm:$0xff]  }
   0x7   :  { %322 = vmatpush1.bf16.msra.mxu0 %v4600_v4  ;;  %4457 = vmatpush1.bf16.msra.mxu1 %v4600_v4  ;;  %v4621_v17 = vld [vmem:[%s6963_s1 + $0x8] ss:$12 sps:$4 sm:$0xff]   ;;  %v5233_v19 = vld [vmem:[%s6964_s0] sm:$0xff]   ;;  %v5286_v29 = vld [vmem:[%s6965_s2 + $0x30] ss:$12 sps:$4 sm:$0xff]  }
   0x8   :  { %323 = vmatprep.subr.bf16.mxu0 %v4601_v5  ;;  %4450 = vmatprep.subr.bf16.mxu1 %v4601_v5  ;;  %v5238_v20 = vld [vmem:[%s6964_s0 + $0x20] sm:$0xff]   ;;  %v5252_v23 = vld [vmem:[%s6965_s2 + $0x1c] ss:$12 sps:$4 sm:$0xff]   ;;  %v5296_v31 = vld [vmem:[%s6965_s2 + $0x4c] ss:$12 sps:$4 sm:$0xff]  }
   0x9   :  { %v4625_v22 = vld [vmem:[%s6963_s1 + $0x20] ss:$12 sps:$4 sm:$0xff]   ;;  %v5259_v24 = vld [vmem:[%s6965_s2 + $0x18] ss:$12 sps:$4 sm:$0xff]   ;;  %v4635_v30 = vld [vmem:[%s6963_s1 + $0x50] ss:$12 sps:$4 sm:$0xff]  }
   0xa   :  { %v4631_v25 = vld [vmem:[%s6963_s1 + $0x38] ss:$12 sps:$4 sm:$0xff]   ;;  %v5269_v26 = vld [vmem:[%s6964_s0 + $0x8] sm:$0xff]   ;;  %v5274_v27 = vld [vmem:[%s6965_s2 + $0x34] ss:$12 sps:$4 sm:$0xff]  }
   0xb   :  { %324 = vmatpush1.bf16.msra.mxu0 %v4603_v6  ;;  %4458 = vmatpush1.bf16.msra.mxu1 %v4603_v6  ;;  %v5281_v28 = vld [vmem:[%s6964_s0 + $0x28] sm:$0xff]   ;;  %v5313_v34 = vld [vmem:[%s6965_s2 + $0x64] ss:$12 sps:$4 sm:$0xff]   ;;  %v5354_v42 = vld [vmem:[%s6965_s2 + $0x94] ss:$12 sps:$4 sm:$0xff]   ;;  %v128_v6 = vlaneseq }
   0xc   :  { %325 = vmatprep.subr.bf16.mxu0 %v4604_v7  ;;  %4451 = vmatprep.subr.bf16.mxu1 %v4604_v7  ;;  %v5303_v32 = vld [vmem:[%s6965_s2 + $0x48] ss:$12 sps:$4 sm:$0xff]   ;;  %v5329_v37 = vld [vmem:[%s6965_s2 + $0x60] ss:$12 sps:$4 sm:$0xff]   ;;  %v5345_v40 = vld [vmem:[%s6965_s2 + $0x78] ss:$12 sps:$4 sm:$0xff]  }
   0xd   :  { %v4641_v33 = vld [vmem:[%s6963_s1 + $0x68] ss:$12 sps:$4 sm:$0xff]   ;;  %v4645_v38 = vld [vmem:[%s6963_s1 + $0x80] ss:$12 sps:$4 sm:$0xff]   ;;  %v4651_v41 = vld [vmem:[%s6963_s1 + $0x98] ss:$12 sps:$4 sm:$0xff]  }
   0xe   :  { %v4639_v35 = vld [vmem:[%s6964_s0 + $0x10] sm:$0xff]   ;;  %v5338_v39 = vld [vmem:[%s6965_s2 + $0x7c] ss:$12 sps:$4 sm:$0xff]   ;;  %v5377_v47 = vld [vmem:[%s6965_s2 + $0xac] ss:$12 sps:$4 sm:$0xff]  }
   0xf   :  { %326 = vmatpush1.bf16.msra.mxu0 %v4606_v8  ;;  %4459 = vmatpush1.bf16.msra.mxu1 %v4606_v8  ;;  %v5323_v36 = vld [vmem:[%s6964_s0 + $0x30] sm:$0xff]   ;;  %v4649_v43 = vld [vmem:[%s6964_s0 + $0x18] sm:$0xff]   ;;  %v5402_v51 = vld [vmem:[%s6965_s2 + $0x20] ss:$12 sps:$4 sm:$0xff]   ;;  %v5514_v8 = vshrl.u32 %v128_v6, 7 }
  0x10   :  { %327 = vmatprep.subr.bf16.mxu0 %v4607_v9  ;;  %4452 = vmatprep.subr.bf16.mxu1 %v4607_v9  ;;  %v4650_v44 = vld [vmem:[%s6964_s0 + $0x38] sm:$0xff]   ;;  %v5383_v48 = vld [vmem:[%s6965_s2 + $0xa8] ss:$12 sps:$4 sm:$0xff]   ;;  %v5441_v55 = vld [vmem:[%s6965_s2 + $0x80] ss:$12 sps:$4 sm:$0xff]  }
  0x11   :  { %v5368_v45 = vld [vmem:[%s6965_s2 + $0x90] ss:$12 sps:$4 sm:$0xff]   ;;  %v5392_v49 = vld [vmem:[%s6965_s2 + $0x8] ss:$12 sps:$4 sm:$0xff]   ;;  %v5412_v52 = vld [vmem:[%s6965_s2 + $0x38] ss:$12 sps:$4 sm:$0xff]  }
  0x12   :  { %v4655_v46 = vld [vmem:[%s6963_s1 + $0xb0] ss:$12 sps:$4 sm:$0xff]   ;;  %v5431_v54 = vld [vmem:[%s6965_s2 + $0x68] ss:$12 sps:$4 sm:$0xff]   ;;  %v5451_v56 = vld [vmem:[%s6965_s2 + $0x98] ss:$12 sps:$4 sm:$0xff]  }
  0x13   :  { %328 = vmatpush1.bf16.msra.mxu0 %v4609_v10  ;;  %4460 = vmatpush1.bf16.msra.mxu1 %v4609_v10  ;;  %v5421_v53 = vld [vmem:[%s6965_s2 + $0x50] ss:$12 sps:$4 sm:$0xff]   ;;  %6992 = vst [vmem:[#allocation10_spill] sm:$0xff] %v5514_v8 }
  0x14   :  { %329 = vmatprep.subr.bf16.mxu0 %v4610_v11  ;;  %4453 = vmatprep.subr.bf16.mxu1 %v4610_v11  ;;  %v5460_v57 = vld [vmem:[%s6965_s2 + $0xb0] ss:$12 sps:$4 sm:$0xff]   ;;  %v6975_v11 = vsub.s32 2, %v5514_v8 }
  0x17   :  { %330 = vmatpush1.bf16.msra.mxu0 %v4612_v12  ;;  %4461 = vmatpush1.bf16.msra.mxu1 %v4612_v12 }
  0x18   :  { %331 = vmatprep.subr.bf16.mxu0 %v4613_v13  ;;  %4454 = vmatprep.subr.bf16.mxu1 %v4613_v13  ;;  %v6976_v13 = vsub.s32 0, %v5514_v8 }
  0x1b   :  { %332 = vmatpush1.bf16.msra.mxu0 %v4615_v14  ;;  %4462 = vmatpush1.bf16.msra.mxu1 %v4615_v14 }
  0x1c   :  { %333 = vmatprep.subr.bf16.mxu0 %v4616_v15  ;;  %4455 = vmatprep.subr.bf16.mxu1 %v4616_v15  ;;  %v39_v15 = vld [vmem:[%s6966_s3] sm:$0x7] }
  0x1f   :  { %334 = vmatpush1.bf16.msra.mxu0 %v4618_v16  ;;  %4463 = vmatpush1.bf16.msra.mxu1 %v4618_v16  ;;  %v5531_v16 = vrot.slane %v39_v15, %v6975_v11 }
  0x20   :  { %4036 = vmatprep.subr.bf16.mxu1 %v4621_v17  ;;  %714 = vmatprep.subr.bf16.mxu0 %v5228_v18 }
  0x22   :  { %352 = vmatmul.mubr.bf16.vlgmr.msra.gmra.mrb[0].mxu0 %v5233_v19  ;;  %392 = vmatmul.mubr.bf16.vlgmr.msra.gmra.mrb[0].mxu1 %v5238_v20 }
  0x23   :  { %4037 = vmatpush3.bf16.msra.mxu1 %v4621_v17  ;;  %715 = vmatpush1.bf16.msra.mxu0 %v5243_v21  ;;  %v5535_v17 = vrot.slane %v39_v15, %v6976_v13 }
  0x24   :  { %4038 = vmatprep.subr.bf16.mxu1 %v4625_v22  ;;  %716 = vmatprep.subr.bf16.mxu0 %v5252_v23 }
  0x25   :  { %361 = vmatprep.mubr.bf16.mxu0 %v6978_v1  ;;  %401 = vmatprep.mubr.bf16.mxu1 %v6978_v1 }
  0x27   :  { %4039 = vmatpush3.bf16.msra.mxu1 %v4625_v22  ;;  %717 = vmatpush1.bf16.msra.mxu0 %v5259_v24 }
  0x28   :  { %4040 = vmatprep.subr.bf16.mxu1 %v4631_v25  ;;  %718 = vmatprep.subr.bf16.mxu0 %v5274_v27 }
  0x2a   :  { %362 = vmatmul.mubr.bf16.gmra.mrb[4].mxu0 %v5269_v26  ;;  %402 = vmatmul.mubr.bf16.gmra.mrb[4].mxu1 %v5281_v28 }
  0x2b   :  { %4041 = vmatpush3.bf16.msra.mxu1 %v4631_v25  ;;  %719 = vmatpush1.bf16.msra.mxu0 %v5286_v29 }
  0x2c   :  { %4042 = vmatprep.subr.bf16.mxu1 %v4635_v30  ;;  %720 = vmatprep.subr.bf16.mxu0 %v5296_v31 }
  0x2d   :  { %371 = vmatprep.mubr.bf16.mxu0 %v6978_v1  ;;  %411 = vmatprep.mubr.bf16.mxu1 %v6978_v1 }
  0x2f   :  { %4043 = vmatpush3.bf16.msra.mxu1 %v4635_v30  ;;  %721 = vmatpush1.bf16.msra.mxu0 %v5303_v32 }
  0x30   :  { %4044 = vmatprep.subr.bf16.mxu1 %v4641_v33  ;;  %722 = vmatprep.subr.bf16.mxu0 %v5313_v34 }
  0x32   :  { %372 = vmatmul.mubr.bf16.gmra.mrb[8].mxu0 %v4639_v35  ;;  %412 = vmatmul.mubr.bf16.gmra.mrb[8].mxu1 %v5323_v36 }
  0x33   :  { %4045 = vmatpush3.bf16.msra.mxu1 %v4641_v33  ;;  %723 = vmatpush1.bf16.msra.mxu0 %v5329_v37 }
  0x34   :  { %4046 = vmatprep.subr.bf16.mxu1 %v4645_v38  ;;  %724 = vmatprep.subr.bf16.mxu0 %v5338_v39 }
  0x35   :  { %381 = vmatprep.mubr.bf16.mxu0 %v6978_v1  ;;  %421 = vmatprep.mubr.bf16.mxu1 %v6978_v1 }
  0x37   :  { %4047 = vmatpush3.bf16.msra.mxu1 %v4645_v38  ;;  %725 = vmatpush1.bf16.msra.mxu0 %v5345_v40 }
  0x38   :  { %4048 = vmatprep.subr.bf16.mxu1 %v4651_v41  ;;  %726 = vmatprep.subr.bf16.mxu0 %v5354_v42 }
  0x3a   :  { %382 = vmatmul.mubr.bf16.gmra.mrb[12].mxu0 %v4649_v43  ;;  %422 = vmatmul.mubr.bf16.gmra.mrb[12].mxu1 %v4650_v44 }
  0x3b   :  { %4049 = vmatpush3.bf16.msra.mxu1 %v4651_v41  ;;  %727 = vmatpush1.bf16.msra.mxu0 %v5368_v45 }
  0x3c   :  { %4050 = vmatprep.subr.bf16.mxu1 %v4655_v46  ;;  %728 = vmatprep.subr.bf16.mxu0 %v5377_v47 }
  0x3d   :  { %4052 = vmatprep.mubr.bf16.mxu1 %v5233_v19  ;;  %746 = vmatprep.mubr.bf16.mxu0 %v6978_v1 }
  0x3f   :  { %4051 = vmatpush3.bf16.msra.mxu1 %v4655_v46  ;;  %729 = vmatpush1.bf16.msra.mxu0 %v5383_v48 }
  0x40   :  { %4068 = vmatprep.subr.bf16.mxu1 %v6980_v50  ;;  %853 = vmatprep.subr.bf16.mxu0 %v5228_v18 }
  0x42   :  { %4053 = vmatmul.mubr.bf16.vlgmr.msra.gmra.mrb[16].mxu1 %v5269_v26  ;;  %747 = vmatmul.mubr.bf16.vlgmr.msra.gmra.mrb[0].mxu0 %v6978_v1 }
  0x43   :  { %4069 = vmatpush3.bf16.msra.mxu1 %v5392_v49  ;;  %4056 = vmatprep.mubr.bf16.mxu1 %v4639_v35 }
  0x44   :  { %4070 = vmatprep.subr.bf16.mxu1 %v6980_v50  ;;  %854 = vmatpush1.bf16.msra.mxu0 %v5243_v21 }
  0x45   :  { %855 = vmatprep.subr.bf16.mxu0 %v5252_v23  ;;  %885 = vmatprep.mubr.bf16.mxu0 %v6978_v1 }
  0x47   :  { %4071 = vmatpush3.bf16.msra.mxu1 %v5402_v51 }
  0x48   :  { %4072 = vmatprep.subr.bf16.mxu1 %v6980_v50  ;;  %856 = vmatpush1.bf16.msra.mxu0 %v5259_v24 }
  0x49   :  { %857 = vmatprep.subr.bf16.mxu0 %v5274_v27 }
  0x4a   :  { %4057 = vmatmul.mubr.bf16.gmra.mrb[20].mxu1 %v4649_v43 }
  0x4b   :  { %4073 = vmatpush3.bf16.msra.mxu1 %v5412_v52  ;;  %4060 = vmatprep.mubr.bf16.mxu1 %v5238_v20 }
  0x4c   :  { %4074 = vmatprep.subr.bf16.mxu1 %v6980_v50  ;;  %858 = vmatpush1.bf16.msra.mxu0 %v5286_v29 }
  0x4d   :  { %859 = vmatprep.subr.bf16.mxu0 %v5296_v31 }
  0x4f   :  { %4075 = vmatpush3.bf16.msra.mxu1 %v5421_v53 }
  0x50   :  { %4076 = vmatprep.subr.bf16.mxu1 %v6980_v50  ;;  %860 = vmatpush1.bf16.msra.mxu0 %v5303_v32 }
  0x51   :  { %861 = vmatprep.subr.bf16.mxu0 %v5313_v34 }
  0x52   :  { %4061 = vmatmul.mubr.bf16.gmra.mrb[24].mxu1 %v5281_v28 }
  0x53   :  { %4077 = vmatpush3.bf16.msra.mxu1 %v5431_v54  ;;  %4064 = vmatprep.mubr.bf16.mxu1 %v5323_v36 }
  0x54   :  { %4078 = vmatprep.subr.bf16.mxu1 %v6980_v50  ;;  %862 = vmatpush1.bf16.msra.mxu0 %v5329_v37 }
  0x55   :  { %863 = vmatprep.subr.bf16.mxu0 %v5338_v39 }
  0x57   :  { %4079 = vmatpush3.bf16.msra.mxu1 %v5441_v55 }
  0x58   :  { %4080 = vmatprep.subr.bf16.mxu1 %v6980_v50  ;;  %864 = vmatpush1.bf16.msra.mxu0 %v5345_v40 }
  0x59   :  { %865 = vmatprep.subr.bf16.mxu0 %v5354_v42 }
  0x5a   :  { %4065 = vmatmul.mubr.bf16.gmra.mrb[28].mxu1 %v4650_v44  ;;  %v6977_v44 = vsub.s32 1, %v5514_v8 }
  0x5b   :  { %4081 = vmatpush3.bf16.msra.mxu1 %v5451_v56  ;;  %4084 = vmatprep.mubr.msk.bf16.mxu1 %vm5111_vm0, %v6980_v50 }
  0x5c   :  { %4082 = vmatprep.subr.bf16.mxu1 %v6980_v50  ;;  %866 = vmatpush1.bf16.msra.mxu0 %v5368_v45  ;;  %v5548_v6 = vrot.slane %v39_v15, %v6977_v44 }
  0x5d   :  { %867 = vmatprep.subr.bf16.mxu0 %v5377_v47 }
  0x5f   :  { %4083 = vmatpush3.bf16.msra.mxu1 %v5460_v57 }
  0x60   :  { %4088 = vmatprep.subr.bf16.mxu1 %v6980_v50  ;;  %868 = vmatpush1.bf16.msra.mxu0 %v5383_v48 }
  0x61   :  { %993 = vmatprep.subr.bf16.mxu0 %v5228_v18 }
  0x62   :  { %4085 = vmatmul.mubr.bf16.vlgmr.msra.gmra.mrb[32].mxu1 %v6978_v1 }
  0x63   :  { %4089 = vmatpush3.bf16.msra.mxu1 %v5392_v49  ;;  %4104 = vmatprep.mubr.msk.bf16.mxu1 %vm5111_vm0, %v6980_v50 }
  0x64   :  { %4090 = vmatprep.subr.bf16.mxu1 %v6980_v50 }
  0x67   :  { %4091 = vmatpush3.bf16.msra.mxu1 %v5402_v51 }
  0x68   :  { %4092 = vmatprep.subr.bf16.mxu1 %v6980_v50 }
  0x6b   :  { %4093 = vmatpush3.bf16.msra.mxu1 %v5412_v52 }
  0x6c   :  { %4094 = vmatprep.subr.bf16.mxu1 %v6980_v50 }
  0x6f   :  { %4095 = vmatpush3.bf16.msra.mxu1 %v5421_v53 }
  0x70   :  { %4096 = vmatprep.subr.bf16.mxu1 %v6980_v50 }
  0x73   :  { %4097 = vmatpush3.bf16.msra.mxu1 %v5431_v54 }
  0x74   :  { %4098 = vmatprep.subr.bf16.mxu1 %v6980_v50 }
  0x77   :  { %4099 = vmatpush3.bf16.msra.mxu1 %v5441_v55 }
  0x78   :  { %4100 = vmatprep.subr.bf16.mxu1 %v6980_v50 }
  0x7b   :  { %4101 = vmatpush3.bf16.msra.mxu1 %v5451_v56 }
  0x7c   :  { %4102 = vmatprep.subr.bf16.mxu1 %v6980_v50 }
  0x7f   :  { %4103 = vmatpush3.bf16.msra.mxu1 %v5460_v57 }
  0x80   :  { %4108 = vmatprep.subr.bf16.mxu1 %v6980_v50 }
  0xf5   :  { %v5490_v58 = vpop.f32.mrb[0].mxu1 }
  0xf6   :  { %v5492_v59 = vpop.f32.mrb[1].mxu1 }
  0xf7   :  { %v5494_v60 = vpop.f32.mrb[2].mxu1 }
  0xf8   :  { %v5496_v61 = vpop.f32.mrb[3].mxu1 }
  0xfd   :  { %v5498_v62 = vpop.f32.mrb[4].mxu1 }
  0xfe   :  { %v5500_v63 = vpop.f32.mrb[5].mxu1 }
  0xff   :  { %v5502_v0 = vpop.f32.mrb[6].mxu1 }
 0x100   :  { %6986 = vst [vmem:[#allocation4_spill] sm:$0xff] %v5502_v0  ;;  %v5504_v2 = vpop.f32.mrb[7].mxu1 }
 0x101   :  { %6987 = vst [vmem:[#allocation5_spill] sm:$0xff] %v5504_v2 }
 0x105   :  { %v5506_v3 = vpop.f32.mrb[8].mxu1 }
 0x106   :  { %6988 = vst [vmem:[#allocation6_spill] sm:$0xff] %v5506_v3  ;;  %v5508_v4 = vpop.f32.mrb[9].mxu1 }
 0x107   :  { %6989 = vst [vmem:[#allocation7_spill] sm:$0xff] %v5508_v4  ;;  %v5510_v5 = vpop.f32.mrb[10].mxu1 }
 0x108   :  { %6990 = vst [vmem:[#allocation8_spill] sm:$0xff] %v5510_v5  ;;  %v5512_v7 = vpop.f32.mrb[11].mxu1 }
 0x109   :  { %6991 = vst [vmem:[#allocation9_spill] sm:$0xff] %v5512_v7 }
 0x10d   :  { %v5516_v9 = vpop.f32.mrb[12].mxu1 }
 0x10e   :  { %6993 = vst [vmem:[#allocation11_spill] sm:$0xff] %v5516_v9  ;;  %v5518_v10 = vpop.f32.mrb[13].mxu1 }
 0x10f   :  { %6994 = vst [vmem:[#allocation12_spill] sm:$0xff] %v5518_v10  ;;  %v5521_v12 = vpop.f32.mrb[14].mxu1 }
 0x110   :  { %6995 = vst [vmem:[#allocation13_spill] sm:$0xff] %v5521_v12  ;;  %v5524_v14 = vpop.f32.mrb[15].mxu1 }
 0x111   :  { %6996 = vst [vmem:[#allocation14_spill] sm:$0xff] %v5524_v14 }
 0x115   :  { %v4054_v19 = vpop.f32.mrb[16].mxu1  ;;  %v748_v20 = vpop.f32.mrb[0].mxu0 }
 0x116   :  { %v5538_v22 = vadd.f32 %v4054_v19, %v5531_v16  ;;  %v4464_v25 = vadd.f32 %v748_v20, %v5535_v17  ;;  %v466_v26 = vpop.f32.mrb[17].mxu1  ;;  %v750_v28 = vpop.f32.mrb[1].mxu0 }
 0x117   :  { %v4055_v30 = vpop.f32.mrb[18].mxu1  ;;  %v752_v33 = vpop.f32.mrb[2].mxu0 }
 0x118   :  { %v3727_v35 = vmul.f32 -1.442695, %v4464_v25  ;;  %v5542_v36 = vadd.f32 %v4055_v30, %v5531_v16  ;;  %v4466_v38 = vadd.f32 %v752_v33, %v5535_v17  ;;  %v469_v41 = vpop.f32.mrb[19].mxu1  ;;  %v754_v43 = vpop.f32.mrb[3].mxu0  ;;  %v4465_v30 = vadd.f32 %v750_v28, %v5548_v6 }
 0x119   :  { %v470_v4 = vadd.f32 %v469_v41, %v5531_v16 }
 0x11a   :  { %v3728_v46 = vmul.f32 -1.442695, %v4466_v38  ;;  %4739 = vpow2.f32 %v3727_v35  ;;  %v4467_v38 = vadd.f32 %v754_v43, %v5548_v6 }
 0x11c   :  { %4741 = vpow2.f32 %v3728_v46  ;;  %v3729_v46 = vmul.f32 -1.442695, %v4465_v30  ;;  %v3730_v44 = vmul.f32 -1.442695, %v4467_v38 }
 0x11d   :  { %v4058_v19 = vpop.f32.mrb[20].mxu1 }
 0x11e   :  { %v5551_v20 = vadd.f32 %v4058_v19, %v5531_v16  ;;  %v482_v25 = vpop.f32.mrb[21].mxu1  ;;  %4743 = vpow2.f32 %v3729_v46 }
 0x11f   :  { %v5555_v33 = vadd.f32 %v482_v25, %v5531_v16  ;;  %v4059_v11 = vpop.f32.mrb[22].mxu1  ;;  %4745 = vpow2.f32 %v3730_v44 }
 0x120   :  { %v5558_v13 = vadd.f32 %v4059_v11, %v5531_v16  ;;  %v485_v35 = vpop.f32.mrb[23].mxu1 }
 0x121   :  { %v5562_v15 = vadd.f32 %v485_v35, %v5531_v16 }
 0x124   :  { %v4740_v1 = vpop.eup %4739 }
 0x125   :  { %v4062_v19 = vpop.f32.mrb[24].mxu1  ;;  %v806_v35 = vadd.f32 1.0, %v4740_v1 }
 0x126   :  { %v5565_v50 = vadd.f32 %v4062_v19, %v5531_v16  ;;  %v498_v28 = vpop.f32.mrb[25].mxu1  ;;  %v4742_v8 = vpop.eup %4741 }
 0x127   :  { %v5568_v25 = vadd.f32 %v498_v28, %v5531_v16  ;;  %v4063_v11 = vpop.f32.mrb[26].mxu1  ;;  %v807_v38 = vadd.f32 1.0, %v4742_v8  ;;  %4747 = vrcp.f32 %v806_v35  ;;  %v5591_v35 = vld [vmem:[%s6967_s4] ss:$0 sm:$0xff] }
 0x128   :  { %6997 = vst [vmem:[#allocation15_spill] sm:$0xff] %v5565_v50  ;;  %v5571_v14 = vadd.f32 %v4063_v11, %v5531_v16  ;;  %v501_v43 = vpop.f32.mrb[27].mxu1  ;;  %v4744_v44 = vpop.eup %4743 }
 0x129   :  { %v5574_v30 = vadd.f32 %v501_v43, %v5531_v16  ;;  %4749 = vrcp.f32 %v807_v38  ;;  %v4746_v8 = vpop.eup %4745 }
 0x12a   :  { %6998 = vst [vmem:[#allocation16_spill] sm:$0xff] %v5571_v14 }
 0x12d   :  { %v4066_v19 = vpop.f32.mrb[28].mxu1 }
 0x12e   :  { %v5577_v12 = vadd.f32 %v4066_v19, %v5531_v16  ;;  %v514_v46 = vpop.f32.mrb[29].mxu1  ;;  %v820_v19 = vadd.f32 1.0, %v4744_v44 }
 0x12f   :  { %v5580_v28 = vadd.f32 %v514_v46, %v5531_v16  ;;  %v4067_v10 = vpop.f32.mrb[30].mxu1 }
 0x130   :  { %6999 = vst [vmem:[#allocation17_spill] sm:$0xff] %v5577_v12  ;;  %v5583_v11 = vadd.f32 %v4067_v10, %v5531_v16  ;;  %v517_v1 = vpop.f32.mrb[31].mxu1  ;;  %v821_v12 = vadd.f32 1.0, %v4746_v8  ;;  %4751 = vrcp.f32 %v820_v19 }
 0x131   :  { %7000 = vst [vmem:[#allocation18_spill] sm:$0xff] %v5580_v28  ;;  %v5586_v43 = vadd.f32 %v517_v1, %v5531_v16  ;;  %v4748_v28 = vpop.eup %4747 }
 0x132   :  { %7001 = vst [vmem:[#allocation19_spill] sm:$0xff] %v5583_v11  ;;  %v467_v11 = vadd.f32 %v466_v26, %v5531_v16  ;;  %4753 = vrcp.f32 %v821_v12 }
 0x133   :  { %7002 = vst [vmem:[#allocation20_spill] sm:$0xff] %v5586_v43  ;;  %v4750_v5 = vpop.eup %4749 }
 0x135   :  { %v791_v38 = vpop.f32.mrb[32].mxu1 }
 0x136   :  { %v826_v46 = vadd.f32 %v5591_v35, %v791_v38  ;;  %v4086_v9 = vpop.f32.mrb[33].mxu1 }
 0x137   :  { %v794_v10 = vpop.f32.mrb[34].mxu1 }
 0x138   :  { %v828_v7 = vmul.f32 %v4748_v28, %v826_v46  ;;  %v827_v1 = vadd.f32 %v5591_v35, %v794_v10  ;;  %v4087_v43 = vpop.f32.mrb[35].mxu1 }
 0x13a   :  { %v830_v3 = vadd.f32 %v828_v7, %v467_v11  ;;  %v829_v44 = vmul.f32 %v4750_v5, %v827_v1  ;;  %v4752_v38 = vpop.eup %4751 }
 0x13b   :  { %v834_v14 = vsub.f32 1.0, %v4752_v38  ;;  %v838_v19 = vmul.f32 0.0, %v4752_v38 }
 0x13c   :  { %4755 = vtanh.f32 %v830_v3  ;;  %v831_v8 = vadd.f32 %v829_v44, %v470_v4  ;;  %v4754_v9 = vpop.eup %4753 }
 0x13d   :  { %v835_v2 = vsub.f32 1.0, %v4754_v9  ;;  %v839_v10 = vmul.f32 0.0, %v4754_v9 }
 0x13e   :  { %4757 = vtanh.f32 %v831_v8 }
 0x146   :  { %v4756_v50 = vpop.eup %4755 }
 0x147   :  { %v836_v26 = vmul.f32 %v4756_v50, %v834_v14  ;;  %v7004_v50 = vmov 0.0  }
 0x148   :  { %v4758_v28 = vpop.eup %4757 }
 0x149   :  { %v837_v46 = vmul.f32 %v4758_v28, %v835_v2  ;;  %v5597_v43 = vadd.f32 %v838_v19, %v836_v26  ;;  %v7005_v2 = vmov 0  }
 0x14b   :  { %v5599_v0 = vadd.f32 %v839_v10, %v837_v46 }
 0x14d   :  { %v5603_v5 = vpack.c.bf16 %v5599_v0, %v5597_v43 }
 0x14f   :  { %7003 = vst [vmem:[#allocation21_spill] sm:$0xff] %v5603_v5  ;;  %886 = vmatmul.mubr.bf16.vlgmr.msra.gmra.mrb[4].mxu0 %v5603_v5  ;;  %4105 = vmatmul.mubr.bf16.vlgmr.msra.gmra.mrb[36].mxu1 %v5603_v5 }
 0x150   :  { %994 = vmatpush1.bf16.msra.mxu0 %v5243_v21  ;;  %4109 = vmatpush3.bf16.msra.mxu1 %v5392_v49 }
 0x151   :  { %995 = vmatprep.subr.bf16.mxu0 %v5252_v23  ;;  %4110 = vmatprep.subr.bf16.mxu1 %v7004_v50 }
 0x152   :  { %1025 = vmatprep.mubr.bf16.mxu0 %v7005_v2  ;;  %4124 = vmatprep.mubr.msk.bf16.mxu1 %vm5111_vm0, %v7004_v50 }
 0x154   :  { %996 = vmatpush1.bf16.msra.mxu0 %v5259_v24  ;;  %4111 = vmatpush3.bf16.msra.mxu1 %v5402_v51 }
 0x155   :  { %997 = vmatprep.subr.bf16.mxu0 %v5274_v27  ;;  %4112 = vmatprep.subr.bf16.mxu1 %v7004_v50 }
 0x158   :  { %998 = vmatpush1.bf16.msra.mxu0 %v5286_v29  ;;  %4113 = vmatpush3.bf16.msra.mxu1 %v5412_v52 }
 0x159   :  { %999 = vmatprep.subr.bf16.mxu0 %v5296_v31  ;;  %4114 = vmatprep.subr.bf16.mxu1 %v7004_v50 }
 0x15c   :  { %1000 = vmatpush1.bf16.msra.mxu0 %v5303_v32  ;;  %4115 = vmatpush3.bf16.msra.mxu1 %v5421_v53 }
 0x15d   :  { %1001 = vmatprep.subr.bf16.mxu0 %v5313_v34  ;;  %4116 = vmatprep.subr.bf16.mxu1 %v7004_v50 }
 0x160   :  { %1002 = vmatpush1.bf16.msra.mxu0 %v5329_v37  ;;  %4117 = vmatpush3.bf16.msra.mxu1 %v5431_v54 }
 0x161   :  { %1003 = vmatprep.subr.bf16.mxu0 %v5338_v39  ;;  %4118 = vmatprep.subr.bf16.mxu1 %v7004_v50 }
 0x164   :  { %1004 = vmatpush1.bf16.msra.mxu0 %v5345_v40  ;;  %4119 = vmatpush3.bf16.msra.mxu1 %v5441_v55 }
 0x165   :  { %1005 = vmatprep.subr.bf16.mxu0 %v5354_v42  ;;  %4120 = vmatprep.subr.bf16.mxu1 %v7004_v50 }
 0x168   :  { %1006 = vmatpush1.bf16.msra.mxu0 %v5368_v45  ;;  %4121 = vmatpush3.bf16.msra.mxu1 %v5451_v56 }
 0x169   :  { %1007 = vmatprep.subr.bf16.mxu0 %v5377_v47  ;;  %4122 = vmatprep.subr.bf16.mxu1 %v7004_v50 }
 0x16c   :  { %1008 = vmatpush1.bf16.msra.mxu0 %v5383_v48  ;;  %4123 = vmatpush3.bf16.msra.mxu1 %v5460_v57 }
 0x16d   :  { %1133 = vmatprep.subr.bf16.mxu0 %v5228_v18  ;;  %4128 = vmatprep.subr.bf16.mxu1 %v7004_v50 }
 0x222   :  { %v887_v3 = vpop.f32.mrb[4].mxu0  ;;  %v930_v4 = vpop.f32.mrb[36].mxu1 }
 0x223   :  { %v4468_v7 = vadd.f32 %v887_v3, %v5535_v17  ;;  %v889_v12 = vpop.f32.mrb[5].mxu0  ;;  %v4106_v14 = vpop.f32.mrb[37].mxu1 }
 0x224   :  { %v891_v16 = vpop.f32.mrb[6].mxu0  ;;  %v933_v41 = vpop.f32.mrb[38].mxu1  ;;  %v4469_v38 = vadd.f32 %v889_v12, %v5548_v6  ;;  %v965_v12 = vadd.f32 %v5591_v35, %v930_v4 }
 0x225   :  { %v3731_v11 = vmul.f32 -1.442695, %v4468_v7  ;;  %v4470_v1 = vadd.f32 %v891_v16, %v5535_v17  ;;  %v893_v44 = vpop.f32.mrb[7].mxu0  ;;  %v4107_v8 = vpop.f32.mrb[39].mxu1 }
 0x226   :  { %v4471_v26 = vadd.f32 %v893_v44, %v5548_v6  ;;  %v3733_v19 = vmul.f32 -1.442695, %v4469_v38  ;;  %v966_v44 = vadd.f32 %v5591_v35, %v933_v41 }
 0x227   :  { %4759 = vpow2.f32 %v3731_v11  ;;  %v3732_v9 = vmul.f32 -1.442695, %v4470_v1 }
 0x228   :  { %v3734_v28 = vmul.f32 -1.442695, %v4471_v26 }
 0x229   :  { %4761 = vpow2.f32 %v3732_v9 }
 0x22a   :  { %4763 = vpow2.f32 %v3733_v19 }
 0x22b   :  { %4765 = vpow2.f32 %v3734_v28 }
 0x231   :  { %v4760_v46 = vpop.eup %4759 }
 0x232   :  { %v945_v10 = vadd.f32 1.0, %v4760_v46 }
 0x233   :  { %v4762_v3 = vpop.eup %4761 }
 0x234   :  { %4767 = vrcp.f32 %v945_v10  ;;  %v946_v7 = vadd.f32 1.0, %v4762_v3  ;;  %v4764_v14 = vpop.eup %4763 }
 0x235   :  { %v4766_v16 = vpop.eup %4765  ;;  %v959_v8 = vadd.f32 1.0, %v4764_v14 }
 0x236   :  { %4769 = vrcp.f32 %v946_v7  ;;  %v960_v11 = vadd.f32 1.0, %v4766_v16 }
 0x237   :  { %4771 = vrcp.f32 %v959_v8 }
 0x238   :  { %4773 = vrcp.f32 %v960_v11 }
 0x23e   :  { %v4768_v1 = vpop.eup %4767 }
 0x23f   :  { %v967_v5 = vmul.f32 %v4768_v1, %v965_v12 }
 0x240   :  { %v4770_v38 = vpop.eup %4769 }
 0x241   :  { %v969_v9 = vadd.f32 %v967_v5, %v5538_v22  ;;  %v968_v26 = vmul.f32 %v4770_v38, %v966_v44  ;;  %v4772_v28 = vpop.eup %4771 }
 0x242   :  { %v4774_v46 = vpop.eup %4773  ;;  %v973_v10 = vsub.f32 1.0, %v4772_v28  ;;  %v977_v14 = vmul.f32 %v4772_v28, %v5597_v43 }
 0x243   :  { %4775 = vtanh.f32 %v969_v9  ;;  %v970_v19 = vadd.f32 %v968_v26, %v5542_v36  ;;  %v974_v4 = vsub.f32 1.0, %v4774_v46  ;;  %v978_v41 = vmul.f32 %v4774_v46, %v5599_v0 }
 0x245   :  { %4777 = vtanh.f32 %v970_v19 }
 0x24d   :  { %v4776_v3 = vpop.eup %4775 }
 0x24e   :  { %v975_v7 = vmul.f32 %v4776_v3, %v973_v10 }
 0x24f   :  { %v4778_v16 = vpop.eup %4777 }
 0x250   :  { %v976_v8 = vmul.f32 %v4778_v16, %v974_v4  ;;  %v5652_v12 = vadd.f32 %v977_v14, %v975_v7 }
 0x252   :  { %v5654_v22 = vadd.f32 %v978_v41, %v976_v8 }
 0x254   :  { %v5658_v36 = vpack.c.bf16 %v5654_v22, %v5652_v12 }
 0x256   :  { %1026 = vmatmul.mubr.bf16.vlgmr.msra.gmra.mrb[8].mxu0 %v5658_v36  ;;  %4125 = vmatmul.mubr.bf16.vlgmr.msra.gmra.mrb[40].mxu1 %v5658_v36 }
 0x257   :  { %1134 = vmatpush1.bf16.msra.mxu0 %v5243_v21  ;;  %4129 = vmatpush3.bf16.msra.mxu1 %v5392_v49 }
 0x258   :  { %1135 = vmatprep.subr.bf16.mxu0 %v5252_v23  ;;  %4130 = vmatprep.subr.bf16.mxu1 %v7004_v50 }
 0x259   :  { %1165 = vmatprep.mubr.bf16.mxu0 %v7005_v2  ;;  %4144 = vmatprep.mubr.msk.bf16.mxu1 %vm5111_vm0, %v7004_v50 }
 0x25b   :  { %1136 = vmatpush1.bf16.msra.mxu0 %v5259_v24  ;;  %4131 = vmatpush3.bf16.msra.mxu1 %v5402_v51 }
 0x25c   :  { %1137 = vmatprep.subr.bf16.mxu0 %v5274_v27  ;;  %4132 = vmatprep.subr.bf16.mxu1 %v7004_v50 }
 0x25f   :  { %1138 = vmatpush1.bf16.msra.mxu0 %v5286_v29  ;;  %4133 = vmatpush3.bf16.msra.mxu1 %v5412_v52 }
 0x260   :  { %1139 = vmatprep.subr.bf16.mxu0 %v5296_v31  ;;  %4134 = vmatprep.subr.bf16.mxu1 %v7004_v50 }
 0x263   :  { %1140 = vmatpush1.bf16.msra.mxu0 %v5303_v32  ;;  %4135 = vmatpush3.bf16.msra.mxu1 %v5421_v53 }
 0x264   :  { %1141 = vmatprep.subr.bf16.mxu0 %v5313_v34  ;;  %4136 = vmatprep.subr.bf16.mxu1 %v7004_v50 }
 0x267   :  { %1142 = vmatpush1.bf16.msra.mxu0 %v5329_v37  ;;  %4137 = vmatpush3.bf16.msra.mxu1 %v5431_v54 }
 0x268   :  { %1143 = vmatprep.subr.bf16.mxu0 %v5338_v39  ;;  %4138 = vmatprep.subr.bf16.mxu1 %v7004_v50 }
 0x26b   :  { %1144 = vmatpush1.bf16.msra.mxu0 %v5345_v40  ;;  %4139 = vmatpush3.bf16.msra.mxu1 %v5441_v55 }
 0x26c   :  { %1145 = vmatprep.subr.bf16.mxu0 %v5354_v42  ;;  %4140 = vmatprep.subr.bf16.mxu1 %v7004_v50 }
 0x26f   :  { %1146 = vmatpush1.bf16.msra.mxu0 %v5368_v45  ;;  %4141 = vmatpush3.bf16.msra.mxu1 %v5451_v56 }
 0x270   :  { %1147 = vmatprep.subr.bf16.mxu0 %v5377_v47  ;;  %4142 = vmatprep.subr.bf16.mxu1 %v7004_v50 }
 0x273   :  { %1148 = vmatpush1.bf16.msra.mxu0 %v5383_v48  ;;  %4143 = vmatpush3.bf16.msra.mxu1 %v5460_v57 }
 0x274   :  { %1273 = vmatprep.subr.bf16.mxu0 %v5228_v18  ;;  %4148 = vmatprep.subr.bf16.mxu1 %v7004_v50 }
 0x329   :  { %v1027_v0 = vpop.f32.mrb[8].mxu0  ;;  %v1070_v43 = vpop.f32.mrb[40].mxu1 }
 0x32a   :  { %v4472_v5 = vadd.f32 %v1027_v0, %v5535_v17  ;;  %v1029_v11 = vpop.f32.mrb[9].mxu0  ;;  %v4126_v1 = vpop.f32.mrb[41].mxu1 }
 0x32b   :  { %v1031_v44 = vpop.f32.mrb[10].mxu0  ;;  %v1073_v38 = vpop.f32.mrb[42].mxu1  ;;  %v4473_v46 = vadd.f32 %v1029_v11, %v5548_v6  ;;  %v1105_v11 = vadd.f32 %v5591_v35, %v1070_v43 }
 0x32c   :  { %v3735_v9 = vmul.f32 -1.442695, %v4472_v5  ;;  %v4474_v26 = vadd.f32 %v1031_v44, %v5535_v17  ;;  %v1033_v19 = vpop.f32.mrb[11].mxu0  ;;  %v4127_v28 = vpop.f32.mrb[43].mxu1 }
 0x32d   :  { %v4475_v18 = vadd.f32 %v1033_v19, %v5548_v6  ;;  %v3737_v3 = vmul.f32 -1.442695, %v4473_v46 }
 0x32e   :  { %4779 = vpow2.f32 %v3735_v9  ;;  %v3736_v10 = vmul.f32 -1.442695, %v4474_v26  ;;  %v1106_v26 = vadd.f32 %v5591_v35, %v1073_v38 }
 0x32f   :  { %v3738_v4 = vmul.f32 -1.442695, %v4475_v18 }
 0x330   :  { %4781 = vpow2.f32 %v3736_v10 }
 0x331   :  { %4783 = vpow2.f32 %v3737_v3 }
 0x332   :  { %4785 = vpow2.f32 %v3738_v4 }
 0x338   :  { %v4780_v7 = vpop.eup %4779 }
 0x339   :  { %v1085_v14 = vadd.f32 1.0, %v4780_v7 }
 0x33a   :  { %v4782_v16 = vpop.eup %4781 }
 0x33b   :  { %4787 = vrcp.f32 %v1085_v14  ;;  %v1086_v8 = vadd.f32 1.0, %v4782_v16  ;;  %v4784_v41 = vpop.eup %4783 }
 0x33c   :  { %v4786_v0 = vpop.eup %4785  ;;  %v1099_v5 = vadd.f32 1.0, %v4784_v41 }
 0x33d   :  { %4789 = vrcp.f32 %v1086_v8  ;;  %v1100_v1 = vadd.f32 1.0, %v4786_v0 }
 0x33e   :  { %4791 = vrcp.f32 %v1099_v5 }
 0x33f   :  { %4793 = vrcp.f32 %v1100_v1 }
 0x345   :  { %v4788_v44 = vpop.eup %4787 }
 0x346   :  { %v1107_v9 = vmul.f32 %v4788_v44, %v1105_v11 }
 0x347   :  { %v4790_v19 = vpop.eup %4789 }
 0x348   :  { %v1109_v28 = vadd.f32 %v1107_v9, %v5555_v33  ;;  %v1108_v46 = vmul.f32 %v4790_v19, %v1106_v26  ;;  %v4792_v18 = vpop.eup %4791 }
 0x349   :  { %v4794_v3 = vpop.eup %4793  ;;  %v1113_v4 = vsub.f32 1.0, %v4792_v18  ;;  %v1117_v16 = vmul.f32 %v4792_v18, %v5652_v12 }
 0x34a   :  { %4795 = vtanh.f32 %v1109_v28  ;;  %v1110_v10 = vadd.f32 %v1108_v46, %v5562_v15  ;;  %v1114_v43 = vsub.f32 1.0, %v4794_v3  ;;  %v1118_v38 = vmul.f32 %v4794_v3, %v5654_v22 }
 0x34c   :  { %4797 = vtanh.f32 %v1110_v10 }
 0x354   :  { %v4796_v7 = vpop.eup %4795 }
 0x355   :  { %v1115_v14 = vmul.f32 %v4796_v7, %v1113_v4 }
 0x356   :  { %v4798_v8 = vpop.eup %4797 }
 0x357   :  { %v1116_v41 = vmul.f32 %v4798_v8, %v1114_v43  ;;  %v5707_v0 = vadd.f32 %v1117_v16, %v1115_v14 }
 0x359   :  { %v5709_v33 = vadd.f32 %v1118_v38, %v1116_v41 }
 0x35b   :  { %v5713_v15 = vpack.c.bf16 %v5709_v33, %v5707_v0 }
 0x35d   :  { %1166 = vmatmul.mubr.bf16.vlgmr.msra.gmra.mrb[12].mxu0 %v5713_v15  ;;  %4145 = vmatmul.mubr.bf16.vlgmr.msra.gmra.mrb[44].mxu1 %v5713_v15 }
 0x35e   :  { %1274 = vmatpush1.bf16.msra.mxu0 %v5243_v21  ;;  %4149 = vmatpush3.bf16.msra.mxu1 %v5392_v49  ;;  %v5753_v21 = vld [vmem:[%s6965_s2 + $0x4] ss:$12 sps:$4 sm:$0xff]  }
 0x35f   :  { %1275 = vmatprep.subr.bf16.mxu0 %v5252_v23  ;;  %4150 = vmatprep.subr.bf16.mxu1 %v7004_v50 }
 0x360   :  { %1305 = vmatprep.mubr.bf16.mxu0 %v7005_v2  ;;  %4164 = vmatprep.mubr.msk.bf16.mxu1 %vm5111_vm0, %v7004_v50 }
 0x362   :  { %1276 = vmatpush1.bf16.msra.mxu0 %v5259_v24  ;;  %4151 = vmatpush3.bf16.msra.mxu1 %v5402_v51 }
 0x363   :  { %1277 = vmatprep.subr.bf16.mxu0 %v5274_v27  ;;  %4152 = vmatprep.subr.bf16.mxu1 %v7004_v50 }
 0x366   :  { %1278 = vmatpush1.bf16.msra.mxu0 %v5286_v29  ;;  %4153 = vmatpush3.bf16.msra.mxu1 %v5412_v52 }
 0x367   :  { %1279 = vmatprep.subr.bf16.mxu0 %v5296_v31  ;;  %4154 = vmatprep.subr.bf16.mxu1 %v7004_v50 }
 0x36a   :  { %1280 = vmatpush1.bf16.msra.mxu0 %v5303_v32  ;;  %4155 = vmatpush3.bf16.msra.mxu1 %v5421_v53 }
 0x36b   :  { %1281 = vmatprep.subr.bf16.mxu0 %v5313_v34  ;;  %4156 = vmatprep.subr.bf16.mxu1 %v7004_v50 }
 0x36e   :  { %1282 = vmatpush1.bf16.msra.mxu0 %v5329_v37  ;;  %4157 = vmatpush3.bf16.msra.mxu1 %v5431_v54 }
 0x36f   :  { %1283 = vmatprep.subr.bf16.mxu0 %v5338_v39  ;;  %4158 = vmatprep.subr.bf16.mxu1 %v7004_v50 }
 0x372   :  { %1284 = vmatpush1.bf16.msra.mxu0 %v5345_v40  ;;  %4159 = vmatpush3.bf16.msra.mxu1 %v5441_v55 }
 0x373   :  { %1285 = vmatprep.subr.bf16.mxu0 %v5354_v42  ;;  %4160 = vmatprep.subr.bf16.mxu1 %v7004_v50 }
 0x376   :  { %1286 = vmatpush1.bf16.msra.mxu0 %v5368_v45  ;;  %4161 = vmatpush3.bf16.msra.mxu1 %v5451_v56 }
 0x377   :  { %1287 = vmatprep.subr.bf16.mxu0 %v5377_v47  ;;  %4162 = vmatprep.subr.bf16.mxu1 %v7004_v50 }
 0x37a   :  { %1288 = vmatpush1.bf16.msra.mxu0 %v5383_v48  ;;  %4163 = vmatpush3.bf16.msra.mxu1 %v5460_v57 }
 0x37b   :  { %1413 = vmatprep.subr.bf16.mxu0 %v5753_v21  ;;  %4168 = vmatprep.subr.bf16.mxu1 %v7004_v50 }
 0x430   :  { %v1167_v23 = vpop.f32.mrb[12].mxu0  ;;  %v1210_v24 = vpop.f32.mrb[44].mxu1 }
 0x431   :  { %v4476_v27 = vadd.f32 %v1167_v23, %v5535_v17  ;;  %v1169_v29 = vpop.f32.mrb[13].mxu0  ;;  %v4146_v31 = vpop.f32.mrb[45].mxu1  ;;  %v1245_v4 = vadd.f32 %v5591_v35, %v1210_v24 }
 0x432   :  { %v1171_v32 = vpop.f32.mrb[14].mxu0  ;;  %v1213_v34 = vpop.f32.mrb[46].mxu1  ;;  %v4477_v5 = vadd.f32 %v1169_v29, %v5548_v6 }
 0x433   :  { %v3739_v37 = vmul.f32 -1.442695, %v4476_v27  ;;  %v4478_v39 = vadd.f32 %v1171_v32, %v5535_v17  ;;  %v1173_v12 = vpop.f32.mrb[15].mxu0  ;;  %v4147_v22 = vpop.f32.mrb[47].mxu1  ;;  %v1246_v16 = vadd.f32 %v5591_v35, %v1213_v34 }
 0x434   :  { %v4479_v1 = vadd.f32 %v1173_v12, %v5548_v6  ;;  %v3741_v44 = vmul.f32 -1.442695, %v4477_v5 }
 0x435   :  { %4799 = vpow2.f32 %v3739_v37  ;;  %v3740_v11 = vmul.f32 -1.442695, %v4478_v39 }
 0x436   :  { %v3742_v9 = vmul.f32 -1.442695, %v4479_v1  ;;  %v5811_v1 = vld [vmem:[%s6965_s2 + $0x30] ss:$12 sps:$4 sm:$0xff]  }
 0x437   :  { %4801 = vpow2.f32 %v3740_v11  ;;  %v5797_v11 = vld [vmem:[%s6965_s2 + $0x18] ss:$12 sps:$4 sm:$0xff]  }
 0x438   :  { %4803 = vpow2.f32 %v3741_v44  ;;  %v5825_v44 = vld [vmem:[%s6965_s2 + $0x48] ss:$12 sps:$4 sm:$0xff]  }
 0x439   :  { %4805 = vpow2.f32 %v3742_v9  ;;  %v5839_v9 = vld [vmem:[%s6965_s2 + $0x60] ss:$12 sps:$4 sm:$0xff]  }
 0x43f   :  { %v4800_v26 = vpop.eup %4799 }
 0x440   :  { %v1225_v19 = vadd.f32 1.0, %v4800_v26 }
 0x441   :  { %v4802_v28 = vpop.eup %4801 }
 0x442   :  { %4807 = vrcp.f32 %v1225_v19  ;;  %v1226_v46 = vadd.f32 1.0, %v4802_v28  ;;  %v4804_v10 = vpop.eup %4803 }
 0x443   :  { %v4806_v18 = vpop.eup %4805  ;;  %v1239_v3 = vadd.f32 1.0, %v4804_v10 }
 0x444   :  { %4809 = vrcp.f32 %v1226_v46  ;;  %v1240_v7 = vadd.f32 1.0, %v4806_v18 }
 0x445   :  { %4811 = vrcp.f32 %v1239_v3 }
 0x446   :  { %4813 = vrcp.f32 %v1240_v7 }
 0x44c   :  { %v4808_v43 = vpop.eup %4807 }
 0x44d   :  { %v1247_v14 = vmul.f32 %v4808_v43, %v1245_v4 }
 0x44e   :  { %v4810_v8 = vpop.eup %4809 }
 0x44f   :  { %v1249_v41 = vadd.f32 %v1247_v14, %v5551_v20  ;;  %v1248_v38 = vmul.f32 %v4810_v8, %v1246_v16  ;;  %v4812_v27 = vpop.eup %4811 }
 0x450   :  { %v4814_v29 = vpop.eup %4813  ;;  %v1253_v31 = vsub.f32 1.0, %v4812_v27  ;;  %v1257_v39 = vmul.f32 %v4812_v27, %v5707_v0  ;;  %v5780_v0 = vld [vmem:[%s6965_s2] ss:$12 sps:$4 sm:$0xff]  }
 0x451   :  { %4815 = vtanh.f32 %v1249_v41  ;;  %v1250_v23 = vadd.f32 %v1248_v38, %v5558_v13  ;;  %v1254_v24 = vsub.f32 1.0, %v4814_v29  ;;  %v1258_v34 = vmul.f32 %v4814_v29, %v5709_v33  ;;  %v5787_v33 = vld [vmem:[%s6965_s2 + $0x1c] ss:$12 sps:$4 sm:$0xff]  }
 0x453   :  { %4817 = vtanh.f32 %v1250_v23 }
 0x45b   :  { %v4816_v32 = vpop.eup %4815 }
 0x45c   :  { %v1255_v37 = vmul.f32 %v4816_v32, %v1253_v31 }
 0x45d   :  { %v4818_v12 = vpop.eup %4817 }
 0x45e   :  { %v1256_v22 = vmul.f32 %v4818_v12, %v1254_v24  ;;  %v5767_v5 = vadd.f32 %v1257_v39, %v1255_v37 }
 0x460   :  { %v5769_v20 = vadd.f32 %v1258_v34, %v1256_v22 }
 0x462   :  { %v5773_v13 = vpack.c.bf16 %v5769_v20, %v5767_v5 }
 0x464   :  { %1306 = vmatmul.mubr.bf16.vlgmr.msra.gmra.mrb[16].mxu0 %v5773_v13  ;;  %4165 = vmatmul.mubr.bf16.vlgmr.msra.gmra.mrb[48].mxu1 %v5773_v13 }
 0x465   :  { %1414 = vmatpush1.bf16.msra.mxu0 %v5780_v0  ;;  %4169 = vmatpush3.bf16.msra.mxu1 %v5392_v49  ;;  %v5804_v49 = vld [vmem:[%s6965_s2 + $0x34] ss:$12 sps:$4 sm:$0xff]  }
 0x466   :  { %1415 = vmatprep.subr.bf16.mxu0 %v5787_v33  ;;  %4170 = vmatprep.subr.bf16.mxu1 %v7004_v50 }
 0x467   :  { %1445 = vmatprep.mubr.bf16.mxu0 %v7005_v2  ;;  %4184 = vmatprep.mubr.msk.bf16.mxu1 %vm5111_vm0, %v7004_v50 }
 0x469   :  { %1416 = vmatpush1.bf16.msra.mxu0 %v5797_v11  ;;  %4171 = vmatpush3.bf16.msra.mxu1 %v5402_v51  ;;  %v5818_v51 = vld [vmem:[%s6965_s2 + $0x4c] ss:$12 sps:$4 sm:$0xff]  }
 0x46a   :  { %1417 = vmatprep.subr.bf16.mxu0 %v5804_v49  ;;  %4172 = vmatprep.subr.bf16.mxu1 %v7004_v50 }
 0x46d   :  { %1418 = vmatpush1.bf16.msra.mxu0 %v5811_v1  ;;  %4173 = vmatpush3.bf16.msra.mxu1 %v5412_v52  ;;  %v5832_v52 = vld [vmem:[%s6965_s2 + $0x64] ss:$12 sps:$4 sm:$0xff]  }
 0x46e   :  { %1419 = vmatprep.subr.bf16.mxu0 %v5818_v51  ;;  %4174 = vmatprep.subr.bf16.mxu1 %v7004_v50 }
 0x471   :  { %1420 = vmatpush1.bf16.msra.mxu0 %v5825_v44  ;;  %4175 = vmatpush3.bf16.msra.mxu1 %v5421_v53  ;;  %v5846_v53 = vld [vmem:[%s6965_s2 + $0x7c] ss:$12 sps:$4 sm:$0xff]  }
 0x472   :  { %1421 = vmatprep.subr.bf16.mxu0 %v5832_v52  ;;  %4176 = vmatprep.subr.bf16.mxu1 %v7004_v50 }
 0x475   :  { %1422 = vmatpush1.bf16.msra.mxu0 %v5839_v9  ;;  %4177 = vmatpush3.bf16.msra.mxu1 %v5431_v54 }
 0x476   :  { %1423 = vmatprep.subr.bf16.mxu0 %v5846_v53  ;;  %4178 = vmatprep.subr.bf16.mxu1 %v7004_v50 }
 0x479   :  { %1424 = vmatpush1.bf16.msra.mxu0 %v5345_v40  ;;  %4179 = vmatpush3.bf16.msra.mxu1 %v5441_v55  ;;  %v394_v40 = vadd.f32 %v5490_v58, %v5535_v17 }
 0x47a   :  { %1425 = vmatprep.subr.bf16.mxu0 %v5354_v42  ;;  %4180 = vmatprep.subr.bf16.mxu1 %v7004_v50  ;;  %v396_v42 = vadd.f32 %v5492_v59, %v5548_v6 }
 0x47d   :  { %1426 = vmatpush1.bf16.msra.mxu0 %v5368_v45  ;;  %4181 = vmatpush3.bf16.msra.mxu1 %v5451_v56 }
 0x47e   :  { %1427 = vmatprep.subr.bf16.mxu0 %v5377_v47  ;;  %4182 = vmatprep.subr.bf16.mxu1 %v7004_v50  ;;  %v398_v47 = vadd.f32 %v5494_v60, %v5535_v17 }
 0x481   :  { %1428 = vmatpush1.bf16.msra.mxu0 %v5383_v48  ;;  %4183 = vmatpush3.bf16.msra.mxu1 %v5460_v57  ;;  %v400_v57 = vadd.f32 %v5496_v61, %v5548_v6 }
 0x482   :  { %1553 = vmatprep.subr.bf16.mxu0 %v5753_v21  ;;  %4188 = vmatprep.subr.bf16.mxu1 %v7004_v50 }
 0x537   :  { %v1307_v45 = vpop.f32.mrb[16].mxu0  ;;  %v1350_v54 = vpop.f32.mrb[48].mxu1 }
 0x538   :  { %v1357_v55 = vadd.f32 %v1307_v45, %v394_v40  ;;  %v1309_v56 = vpop.f32.mrb[17].mxu0  ;;  %v4166_v48 = vpop.f32.mrb[49].mxu1  ;;  %v1385_v38 = vadd.f32 %v5591_v35, %v1350_v54 }
 0x539   :  { %v1371_v26 = vadd.f32 %v1309_v56, %v396_v42  ;;  %v1311_v19 = vpop.f32.mrb[18].mxu0  ;;  %v1353_v28 = vpop.f32.mrb[50].mxu1 }
 0x53a   :  { %v3743_v46 = vmul.f32 -1.442695, %v1357_v55  ;;  %v1358_v10 = vadd.f32 %v1311_v19, %v398_v47  ;;  %v1313_v58 = vpop.f32.mrb[19].mxu0  ;;  %v4167_v18 = vpop.f32.mrb[51].mxu1  ;;  %v1386_v31 = vadd.f32 %v5591_v35, %v1353_v28  ;;  %v5929_v19 = vld [vmem:[%s6965_s2 + $0x68] ss:$12 sps:$4 sm:$0xff]  }
 0x53b   :  { %v1372_v3 = vadd.f32 %v1313_v58, %v400_v57  ;;  %v3745_v4 = vmul.f32 -1.442695, %v1371_v26  ;;  %v5911_v57 = vld [vmem:[%s6965_s2 + $0x38] ss:$12 sps:$4 sm:$0xff]   ;;  %v5920_v26 = vld [vmem:[%s6965_s2 + $0x50] ss:$12 sps:$4 sm:$0xff]  }
 0x53c   :  { %4819 = vpow2.f32 %v3743_v46  ;;  %v3744_v59 = vmul.f32 -1.442695, %v1358_v10  ;;  %v5937_v28 = vld [vmem:[%s6965_s2 + $0x78] ss:$12 sps:$4 sm:$0xff]   ;;  %v5943_v46 = vld [vmem:[%s6965_s2 + $0x80] ss:$12 sps:$4 sm:$0xff]  }
 0x53d   :  { %v3746_v7 = vmul.f32 -1.442695, %v1372_v3  ;;  %v5949_v10 = vld [vmem:[%s6965_s2 + $0x94] ss:$12 sps:$4 sm:$0xff]   ;;  %v5956_v58 = vld [vmem:[%s6965_s2 + $0x90] ss:$12 sps:$4 sm:$0xff]  }
 0x53e   :  { %4821 = vpow2.f32 %v3744_v59  ;;  %v5962_v18 = vld [vmem:[%s6965_s2 + $0x98] ss:$12 sps:$4 sm:$0xff]   ;;  %v5975_v59 = vld [vmem:[%s6965_s2 + $0xa8] ss:$12 sps:$4 sm:$0xff]  }
 0x53f   :  { %4823 = vpow2.f32 %v3745_v4  ;;  %v5968_v3 = vld [vmem:[%s6965_s2 + $0xac] ss:$12 sps:$4 sm:$0xff]   ;;  %v5981_v4 = vld [vmem:[%s6965_s2 + $0xb0] ss:$12 sps:$4 sm:$0xff]  }
 0x540   :  { %4825 = vpow2.f32 %v3746_v7  ;;  %v404_v7 = vadd.f32 %v5498_v62, %v5535_v17 }
 0x546   :  { %v4820_v60 = vpop.eup %4819 }
 0x547   :  { %v1365_v43 = vadd.f32 1.0, %v4820_v60  ;;  %v406_v60 = vadd.f32 %v5500_v63, %v5548_v6 }
 0x548   :  { %v4822_v14 = vpop.eup %4821 }
 0x549   :  { %4827 = vrcp.f32 %v1365_v43  ;;  %v1366_v61 = vadd.f32 1.0, %v4822_v14  ;;  %v4824_v16 = vpop.eup %4823 }
 0x54a   :  { %v4826_v8 = vpop.eup %4825  ;;  %v1379_v41 = vadd.f32 1.0, %v4824_v16 }
 0x54b   :  { %4829 = vrcp.f32 %v1366_v61  ;;  %v1380_v23 = vadd.f32 1.0, %v4826_v8  ;;  %v7006_v61 = vld [vmem:[#allocation4_spill] sm:$0xff] }
 0x54c   :  { %4831 = vrcp.f32 %v1379_v41  ;;  %v408_v16 = vadd.f32 %v7006_v61, %v5535_v17 }
 0x54d   :  { %4833 = vrcp.f32 %v1380_v23  ;;  %v7007_v23 = vld [vmem:[#allocation5_spill] sm:$0xff] }
 0x553   :  { %v4828_v27 = vpop.eup %4827 }
 0x554   :  { %v1387_v29 = vmul.f32 %v4828_v27, %v1385_v38  ;;  %v410_v27 = vadd.f32 %v7007_v23, %v5548_v6  ;;  %v7009_v23 = vld [vmem:[#allocation16_spill] sm:$0xff] }
 0x555   :  { %v4830_v32 = vpop.eup %4829 }
 0x556   :  { %v1389_v24 = vadd.f32 %v1387_v29, %v5568_v25  ;;  %v1388_v37 = vmul.f32 %v4830_v32, %v1386_v31  ;;  %v4832_v12 = vpop.eup %4831 }
 0x557   :  { %v4834_v22 = vpop.eup %4833  ;;  %v1393_v34 = vsub.f32 1.0, %v4832_v12  ;;  %v1397_v54 = vmul.f32 %v4832_v12, %v5767_v5  ;;  %v5890_v5 = vld [vmem:[%s6965_s2 + $0x8] ss:$12 sps:$4 sm:$0xff]  }
 0x558   :  { %4835 = vtanh.f32 %v1389_v24  ;;  %v1390_v39 = vadd.f32 %v1388_v37, %v5574_v30  ;;  %v1394_v42 = vsub.f32 1.0, %v4834_v22  ;;  %v1398_v56 = vmul.f32 %v4834_v22, %v5769_v20  ;;  %v5902_v20 = vld [vmem:[%s6965_s2 + $0x20] ss:$12 sps:$4 sm:$0xff]  }
 0x55a   :  { %4837 = vtanh.f32 %v1390_v39 }
 0x562   :  { %v4836_v40 = vpop.eup %4835 }
 0x563   :  { %v1395_v45 = vmul.f32 %v4836_v40, %v1393_v34 }
 0x564   :  { %v4838_v47 = vpop.eup %4837 }
 0x565   :  { %v1396_v55 = vmul.f32 %v4838_v47, %v1394_v42  ;;  %v5876_v48 = vadd.f32 %v1397_v54, %v1395_v45 }
 0x567   :  { %v5878_v25 = vadd.f32 %v1398_v56, %v1396_v55 }
 0x569   :  { %v5882_v30 = vpack.c.bf16 %v5878_v25, %v5876_v48 }
 0x56b   :  { %1446 = vmatmul.mubr.bf16.vlgmr.msra.gmra.mrb[20].mxu0 %v5882_v30  ;;  %4185 = vmatmul.mubr.bf16.vlgmr.msra.gmra.mrb[52].mxu1 %v5882_v30 }
 0x56c   :  { %1554 = vmatpush1.bf16.msra.mxu0 %v5780_v0  ;;  %4189 = vmatpush3.bf16.msra.mxu1 %v5890_v5 }
 0x56d   :  { %1555 = vmatprep.subr.bf16.mxu0 %v5787_v33  ;;  %4190 = vmatprep.subr.bf16.mxu1 %v7004_v50 }
 0x56e   :  { %1585 = vmatprep.mubr.bf16.mxu0 %v7005_v2  ;;  %4204 = vmatprep.mubr.msk.bf16.mxu1 %vm5111_vm0, %v7004_v50 }
 0x570   :  { %1556 = vmatpush1.bf16.msra.mxu0 %v5797_v11  ;;  %4191 = vmatpush3.bf16.msra.mxu1 %v5902_v20 }
 0x571   :  { %1557 = vmatprep.subr.bf16.mxu0 %v5804_v49  ;;  %4192 = vmatprep.subr.bf16.mxu1 %v7004_v50 }
 0x574   :  { %1558 = vmatpush1.bf16.msra.mxu0 %v5811_v1  ;;  %4193 = vmatpush3.bf16.msra.mxu1 %v5911_v57 }
 0x575   :  { %1559 = vmatprep.subr.bf16.mxu0 %v5818_v51  ;;  %4194 = vmatprep.subr.bf16.mxu1 %v7004_v50 }
 0x578   :  { %1560 = vmatpush1.bf16.msra.mxu0 %v5825_v44  ;;  %4195 = vmatpush3.bf16.msra.mxu1 %v5920_v26 }
 0x579   :  { %1561 = vmatprep.subr.bf16.mxu0 %v5832_v52  ;;  %4196 = vmatprep.subr.bf16.mxu1 %v7004_v50 }
 0x57c   :  { %1562 = vmatpush1.bf16.msra.mxu0 %v5839_v9  ;;  %4197 = vmatpush3.bf16.msra.mxu1 %v5929_v19 }
 0x57d   :  { %1563 = vmatprep.subr.bf16.mxu0 %v5846_v53  ;;  %4198 = vmatprep.subr.bf16.mxu1 %v7004_v50 }
 0x580   :  { %1564 = vmatpush1.bf16.msra.mxu0 %v5937_v28  ;;  %4199 = vmatpush3.bf16.msra.mxu1 %v5943_v46 }
 0x581   :  { %1565 = vmatprep.subr.bf16.mxu0 %v5949_v10  ;;  %4200 = vmatprep.subr.bf16.mxu1 %v7004_v50 }
 0x584   :  { %1566 = vmatpush1.bf16.msra.mxu0 %v5956_v58  ;;  %4201 = vmatpush3.bf16.msra.mxu1 %v5962_v18 }
 0x585   :  { %1567 = vmatprep.subr.bf16.mxu0 %v5968_v3  ;;  %4202 = vmatprep.subr.bf16.mxu1 %v7004_v50 }
 0x588   :  { %1568 = vmatpush1.bf16.msra.mxu0 %v5975_v59  ;;  %4203 = vmatpush3.bf16.msra.mxu1 %v5981_v4 }
 0x589   :  { %1693 = vmatprep.subr.bf16.mxu0 %v5753_v21  ;;  %4208 = vmatprep.subr.bf16.mxu1 %v7004_v50 }
 0x63e   :  { %v1447_v43 = vpop.f32.mrb[20].mxu0  ;;  %v1490_v14 = vpop.f32.mrb[52].mxu1 }
 0x63f   :  { %v1497_v8 = vadd.f32 %v1447_v43, %v404_v7  ;;  %v1449_v41 = vpop.f32.mrb[21].mxu0  ;;  %v4186_v38 = vpop.f32.mrb[53].mxu1  ;;  %v1525_v56 = vadd.f32 %v5591_v35, %v1490_v14 }
 0x640   :  { %v1511_v21 = vadd.f32 %v1449_v41, %v406_v60  ;;  %v1451_v29 = vpop.f32.mrb[22].mxu0  ;;  %v1493_v31 = vpop.f32.mrb[54].mxu1 }
 0x641   :  { %v3747_v32 = vmul.f32 -1.442695, %v1497_v8  ;;  %v1498_v24 = vadd.f32 %v1451_v29, %v408_v16  ;;  %v1453_v62 = vpop.f32.mrb[23].mxu0  ;;  %v4187_v37 = vpop.f32.mrb[55].mxu1  ;;  %v1526_v61 = vadd.f32 %v5591_v35, %v1493_v31  ;;  %v7008_v8 = vld [vmem:[#allocation15_spill] sm:$0xff] }
 0x642   :  { %v1512_v39 = vadd.f32 %v1453_v62, %v410_v27  ;;  %v3749_v12 = vmul.f32 -1.442695, %v1511_v21 }
 0x643   :  { %4839 = vpow2.f32 %v3747_v32  ;;  %v3748_v63 = vmul.f32 -1.442695, %v1498_v24 }
 0x644   :  { %v3750_v22 = vmul.f32 -1.442695, %v1512_v39 }
 0x645   :  { %4841 = vpow2.f32 %v3748_v63 }
 0x646   :  { %4843 = vpow2.f32 %v3749_v12 }
 0x647   :  { %4845 = vpow2.f32 %v3750_v22 }
 0x64d   :  { %v4840_v34 = vpop.eup %4839 }
 0x64e   :  { %v1505_v40 = vadd.f32 1.0, %v4840_v34 }
 0x64f   :  { %v4842_v42 = vpop.eup %4841 }
 0x650   :  { %4847 = vrcp.f32 %v1505_v40  ;;  %v1506_v45 = vadd.f32 1.0, %v4842_v42  ;;  %v4844_v54 = vpop.eup %4843 }
 0x651   :  { %v4846_v47 = vpop.eup %4845  ;;  %v1519_v55 = vadd.f32 1.0, %v4844_v54 }
 0x652   :  { %4849 = vrcp.f32 %v1506_v45  ;;  %v1520_v7 = vadd.f32 1.0, %v4846_v47 }
 0x653   :  { %4851 = vrcp.f32 %v1519_v55 }
 0x654   :  { %4853 = vrcp.f32 %v1520_v7  ;;  %v6063_v7 = vld [vmem:[%s6967_s4] ss:$0 sm:$0xff] }
 0x65a   :  { %v4848_v60 = vpop.eup %4847 }
 0x65b   :  { %v1527_v43 = vmul.f32 %v4848_v60, %v1525_v56 }
 0x65c   :  { %v4850_v16 = vpop.eup %4849 }
 0x65d   :  { %v1529_v41 = vadd.f32 %v1527_v43, %v7008_v8  ;;  %v1528_v38 = vmul.f32 %v4850_v16, %v1526_v61  ;;  %v4852_v21 = vpop.eup %4851 }
 0x65e   :  { %v4854_v29 = vpop.eup %4853  ;;  %v1533_v32 = vsub.f32 1.0, %v4852_v21  ;;  %v1537_v37 = vmul.f32 %v4852_v21, %v5876_v48  ;;  %v7015_v21 = vld [vmem:[#allocation20_spill] sm:$0xff] }
 0x65f   :  { %4855 = vtanh.f32 %v1529_v41  ;;  %v1530_v27 = vadd.f32 %v1528_v38, %v7009_v23  ;;  %v1534_v14 = vsub.f32 1.0, %v4854_v29  ;;  %v1538_v35 = vmul.f32 %v4854_v29, %v5878_v25  ;;  %v7014_v38 = vld [vmem:[#allocation18_spill] sm:$0xff] }
 0x661   :  { %4857 = vtanh.f32 %v1530_v27 }
 0x669   :  { %v4856_v24 = vpop.eup %4855 }
 0x66a   :  { %v1535_v62 = vmul.f32 %v4856_v24, %v1533_v32 }
 0x66b   :  { %v4858_v39 = vpop.eup %4857 }
 0x66c   :  { %v1536_v63 = vmul.f32 %v4858_v39, %v1534_v14  ;;  %v6000_v31 = vadd.f32 %v1537_v37, %v1535_v62 }
 0x66e   :  { %v6002_v12 = vadd.f32 %v1538_v35, %v1536_v63 }
 0x670   :  { %v6006_v22 = vpack.c.bf16 %v6002_v12, %v6000_v31 }
 0x672   :  { %1586 = vmatmul.mubr.bf16.vlgmr.msra.gmra.mrb[24].mxu0 %v6006_v22  ;;  %4205 = vmatmul.mubr.bf16.vlgmr.msra.gmra.mrb[56].mxu1 %v6006_v22 }
 0x673   :  { %1694 = vmatpush1.bf16.msra.mxu0 %v5780_v0  ;;  %4209 = vmatpush3.bf16.msra.mxu1 %v5890_v5  ;;  %v4669_v0 = vld [vmem:[%s6968_s5 + $0x4] ss:$12 sps:$4 sm:$0xff]  }
 0x674   :  { %1695 = vmatprep.subr.bf16.mxu0 %v5787_v33  ;;  %4210 = vmatprep.subr.bf16.mxu1 %v7004_v50  ;;  %v6049_v33 = vld [vmem:[%s6968_s5 + $0x8] ss:$12 sps:$4 sm:$0xff]  }
 0x675   :  { %1725 = vmatprep.mubr.bf16.mxu0 %v7005_v2  ;;  %4224 = vmatprep.mubr.msk.bf16.mxu1 %vm5111_vm0, %v7004_v50 }
 0x677   :  { %1696 = vmatpush1.bf16.msra.mxu0 %v5797_v11  ;;  %4211 = vmatpush3.bf16.msra.mxu1 %v5902_v20  ;;  %v7010_v11 = vld [vmem:[#allocation6_spill] sm:$0xff]  ;;  %v7013_v20 = vld [vmem:[#allocation9_spill] sm:$0xff] }
 0x678   :  { %1697 = vmatprep.subr.bf16.mxu0 %v5804_v49  ;;  %4212 = vmatprep.subr.bf16.mxu1 %v7004_v50  ;;  %v414_v49 = vadd.f32 %v7010_v11, %v5535_v17 }
 0x67b   :  { %1698 = vmatpush1.bf16.msra.mxu0 %v5811_v1  ;;  %4213 = vmatpush3.bf16.msra.mxu1 %v5911_v57  ;;  %v7011_v1 = vld [vmem:[#allocation7_spill] sm:$0xff]  ;;  %v420_v57 = vadd.f32 %v7013_v20, %v5548_v6  ;;  %v4679_v20 = vld [vmem:[%s6968_s5 + $0x48] ss:$12 sps:$4 sm:$0xff]  }
 0x67c   :  { %1699 = vmatprep.subr.bf16.mxu0 %v5818_v51  ;;  %4214 = vmatprep.subr.bf16.mxu1 %v7004_v50  ;;  %v416_v51 = vadd.f32 %v7011_v1, %v5548_v6 }
 0x67f   :  { %1700 = vmatpush1.bf16.msra.mxu0 %v5825_v44  ;;  %4215 = vmatpush3.bf16.msra.mxu1 %v5920_v26 }
 0x680   :  { %1701 = vmatprep.subr.bf16.mxu0 %v5832_v52  ;;  %4216 = vmatprep.subr.bf16.mxu1 %v7004_v50 }
 0x683   :  { %1702 = vmatpush1.bf16.msra.mxu0 %v5839_v9  ;;  %4217 = vmatpush3.bf16.msra.mxu1 %v5929_v19  ;;  %v7012_v9 = vld [vmem:[#allocation8_spill] sm:$0xff] }
 0x684   :  { %1703 = vmatprep.subr.bf16.mxu0 %v5846_v53  ;;  %4218 = vmatprep.subr.bf16.mxu1 %v7004_v50  ;;  %v418_v53 = vadd.f32 %v7012_v9, %v5535_v17  ;;  %v7016_v9 = vld [vmem:[#allocation21_spill] sm:$0xff] }
 0x687   :  { %1704 = vmatpush1.bf16.msra.mxu0 %v5937_v28  ;;  %4219 = vmatpush3.bf16.msra.mxu1 %v5943_v46 }
 0x688   :  { %1705 = vmatprep.subr.bf16.mxu0 %v5949_v10  ;;  %4220 = vmatprep.subr.bf16.mxu1 %v7004_v50 }
 0x68b   :  { %1706 = vmatpush1.bf16.msra.mxu0 %v5956_v58  ;;  %4221 = vmatpush3.bf16.msra.mxu1 %v5962_v18 }
 0x68c   :  { %1707 = vmatprep.subr.bf16.mxu0 %v5968_v3  ;;  %4222 = vmatprep.subr.bf16.mxu1 %v7004_v50 }
 0x68f   :  { %1708 = vmatpush1.bf16.msra.mxu0 %v5975_v59  ;;  %4223 = vmatpush3.bf16.msra.mxu1 %v5981_v4 }
 0x690   :  { %2048 = vmatprep.subr.bf16.mxu1 %v4669_v0  ;;  %4228 = vmatprep.subr.bf16.mxu0 %v6049_v33 }
 0x745   :  { %v1587_v44 = vpop.f32.mrb[24].mxu0  ;;  %v1630_v52 = vpop.f32.mrb[56].mxu1 }
 0x746   :  { %v1637_v48 = vadd.f32 %v1587_v44, %v414_v49  ;;  %v1589_v25 = vpop.f32.mrb[25].mxu0  ;;  %v4206_v5 = vpop.f32.mrb[57].mxu1  ;;  %v1665_v60 = vadd.f32 %v6063_v7, %v1630_v52  ;;  %v4671_v52 = vld [vmem:[%s6968_s5 + $0x18] ss:$12 sps:$4 sm:$0xff]  }
 0x747   :  { %v1651_v26 = vadd.f32 %v1589_v25, %v416_v51  ;;  %v1591_v19 = vpop.f32.mrb[26].mxu0  ;;  %v1633_v28 = vpop.f32.mrb[58].mxu1  ;;  %v4667_v51 = vld [vmem:[%s6968_s5] ss:$12 sps:$4 sm:$0xff]   ;;  %v4682_v5 = vld [vmem:[%s6968_s5 + $0x50] ss:$12 sps:$4 sm:$0xff]  }
 0x748   :  { %v3751_v46 = vmul.f32 -1.442695, %v1637_v48  ;;  %v1638_v10 = vadd.f32 %v1591_v19, %v418_v53  ;;  %v1593_v58 = vpop.f32.mrb[27].mxu0  ;;  %v4207_v18 = vpop.f32.mrb[59].mxu1  ;;  %v1666_v8 = vadd.f32 %v6063_v7, %v1633_v28  ;;  %v4677_v53 = vld [vmem:[%s6968_s5 + $0x34] ss:$12 sps:$4 sm:$0xff]  }
 0x749   :  { %v1652_v3 = vadd.f32 %v1593_v58, %v420_v57  ;;  %v3753_v4 = vmul.f32 -1.442695, %v1651_v26  ;;  %v4678_v48 = vld [vmem:[%s6968_s5 + $0x38] ss:$12 sps:$4 sm:$0xff]   ;;  %v4686_v26 = vld [vmem:[%s6968_s5 + $0x68] ss:$12 sps:$4 sm:$0xff]  }
 0x74a   :  { %4859 = vpow2.f32 %v3751_v46  ;;  %v3752_v59 = vmul.f32 -1.442695, %v1638_v10  ;;  %v4681_v25 = vld [vmem:[%s6968_s5 + $0x4c] ss:$12 sps:$4 sm:$0xff]   ;;  %v4685_v57 = vld [vmem:[%s6968_s5 + $0x64] ss:$12 sps:$4 sm:$0xff]  }
 0x74b   :  { %v3754_v34 = vmul.f32 -1.442695, %v1652_v3  ;;  %v4683_v19 = vld [vmem:[%s6968_s5 + $0x60] ss:$12 sps:$4 sm:$0xff]   ;;  %v4689_v28 = vld [vmem:[%s6968_s5 + $0x7c] ss:$12 sps:$4 sm:$0xff]  }
 0x74c   :  { %4861 = vpow2.f32 %v3752_v59  ;;  %v4690_v46 = vld [vmem:[%s6968_s5 + $0x80] ss:$12 sps:$4 sm:$0xff]   ;;  %v4687_v10 = vld [vmem:[%s6968_s5 + $0x78] ss:$12 sps:$4 sm:$0xff]   ;;  %v4691_v3 = vld [vmem:[%s6968_s5 + $0x90] ss:$12 sps:$4 sm:$0xff]  }
 0x74d   :  { %4863 = vpow2.f32 %v3753_v4  ;;  %v4693_v58 = vld [vmem:[%s6968_s5 + $0x94] ss:$12 sps:$4 sm:$0xff]   ;;  %v4694_v18 = vld [vmem:[%s6968_s5 + $0x98] ss:$12 sps:$4 sm:$0xff]   ;;  %v4698_v4 = vld [vmem:[%s6968_s5 + $0xb0] ss:$12 sps:$4 sm:$0xff]  }
 0x74e   :  { %4865 = vpow2.f32 %v3754_v34  ;;  %v4697_v59 = vld [vmem:[%s6968_s5 + $0xac] ss:$12 sps:$4 sm:$0xff]   ;;  %v4695_v34 = vld [vmem:[%s6968_s5 + $0xa8] ss:$12 sps:$4 sm:$0xff]  }
 0x754   :  { %v4860_v40 = vpop.eup %4859 }
 0x755   :  { %v1645_v42 = vadd.f32 1.0, %v4860_v40  ;;  %v6153_v40 = vld [vmem:[%s6969_s6 + $0x4] ss:$12 sps:$4 sm:$0xff]  }
 0x756   :  { %v4862_v45 = vpop.eup %4861 }
 0x757   :  { %4867 = vrcp.f32 %v1645_v42  ;;  %v1646_v54 = vadd.f32 1.0, %v4862_v45  ;;  %v4864_v47 = vpop.eup %4863  ;;  %v6159_v42 = vld [vmem:[%s6969_s6] ss:$12 sps:$4 sm:$0xff]   ;;  %v6215_v45 = vld [vmem:[%s6969_s6 + $0x48] ss:$12 sps:$4 sm:$0xff]  }
 0x758   :  { %v4866_v55 = vpop.eup %4865  ;;  %v1659_v56 = vadd.f32 1.0, %v4864_v47  ;;  %v6227_v47 = vld [vmem:[%s6969_s6 + $0x60] ss:$12 sps:$4 sm:$0xff]  }
 0x759   :  { %4869 = vrcp.f32 %v1646_v54  ;;  %v1660_v43 = vadd.f32 1.0, %v4866_v55  ;;  %v6221_v54 = vld [vmem:[%s6969_s6 + $0x64] ss:$12 sps:$4 sm:$0xff]   ;;  %v6233_v55 = vld [vmem:[%s6969_s6 + $0x7c] ss:$12 sps:$4 sm:$0xff]  }
 0x75a   :  { %4871 = vrcp.f32 %v1659_v56  ;;  %v6239_v56 = vld [vmem:[%s6969_s6 + $0x78] ss:$12 sps:$4 sm:$0xff]  }
 0x75b   :  { %4873 = vrcp.f32 %v1660_v43  ;;  %v6251_v43 = vld [vmem:[%s6969_s6 + $0x90] ss:$12 sps:$4 sm:$0xff]  }
 0x761   :  { %v4868_v61 = vpop.eup %4867 }
 0x762   :  { %v1667_v16 = vmul.f32 %v4868_v61, %v1665_v60  ;;  %v6245_v60 = vld [vmem:[%s6969_s6 + $0x94] ss:$12 sps:$4 sm:$0xff]  }
 0x763   :  { %v4870_v41 = vpop.eup %4869  ;;  %v6257_v61 = vld [vmem:[%s6969_s6 + $0x8] ss:$12 sps:$4 sm:$0xff]  }
 0x764   :  { %v1669_v23 = vadd.f32 %v1667_v16, %v7014_v38  ;;  %v1668_v27 = vmul.f32 %v4870_v41, %v1666_v8  ;;  %v4872_v32 = vpop.eup %4871  ;;  %v6262_v16 = vld [vmem:[%s6969_s6 + $0xac] ss:$12 sps:$4 sm:$0xff]   ;;  %v6274_v41 = vld [vmem:[%s6969_s6 + $0xa8] ss:$12 sps:$4 sm:$0xff]  }
 0x765   :  { %v4874_v24 = vpop.eup %4873  ;;  %v1673_v14 = vsub.f32 1.0, %v4872_v32  ;;  %v1677_v63 = vmul.f32 %v4872_v32, %v6000_v31  ;;  %v4673_v31 = vld [vmem:[%s6968_s5 + $0x1c] ss:$12 sps:$4 sm:$0xff]   ;;  %v6268_v8 = vld [vmem:[%s6969_s6 + $0x20] ss:$12 sps:$4 sm:$0xff]  }
 0x766   :  { %4875 = vtanh.f32 %v1669_v23  ;;  %v1670_v29 = vadd.f32 %v1668_v27, %v7015_v21  ;;  %v1674_v37 = vsub.f32 1.0, %v4874_v24  ;;  %v1678_v11 = vmul.f32 %v4874_v24, %v6002_v12  ;;  %v4674_v12 = vld [vmem:[%s6968_s5 + $0x20] ss:$12 sps:$4 sm:$0xff]   ;;  %v6284_v38 = vld [vmem:[%s6969_s6 + $0x38] ss:$12 sps:$4 sm:$0xff]  }
 0x767   :  { %v6291_v23 = vld [vmem:[%s6969_s6 + $0x50] ss:$12 sps:$4 sm:$0xff]   ;;  %v6298_v27 = vld [vmem:[%s6969_s6 + $0x68] ss:$12 sps:$4 sm:$0xff]   ;;  %v6305_v21 = vld [vmem:[%s6969_s6 + $0x80] ss:$12 sps:$4 sm:$0xff]  }
 0x768   :  { %4877 = vtanh.f32 %v1670_v29  ;;  %v6312_v29 = vld [vmem:[%s6969_s6 + $0x98] ss:$12 sps:$4 sm:$0xff]   ;;  %v6319_v32 = vld [vmem:[%s6969_s6 + $0xb0] ss:$12 sps:$4 sm:$0xff]  }
 0x769   :  { %v7017_v24 = vld [vmem:[#allocation11_spill] sm:$0xff] }
 0x770   :  { %v4876_v62 = vpop.eup %4875 }
 0x771   :  { %v1675_v39 = vmul.f32 %v4876_v62, %v1673_v14  ;;  %v424_v14 = vadd.f32 %v7017_v24, %v5535_v17  ;;  %v7018_v62 = vld [vmem:[#allocation12_spill] sm:$0xff] }
 0x772   :  { %v4878_v35 = vpop.eup %4877 }
 0x773   :  { %v1676_v0 = vmul.f32 %v4878_v35, %v1674_v37  ;;  %v6071_v49 = vadd.f32 %v1677_v63, %v1675_v39  ;;  %v426_v37 = vadd.f32 %v7018_v62, %v5548_v6  ;;  %v7019_v35 = vld [vmem:[#allocation13_spill] sm:$0xff] }
 0x774   :  { %v7021_v62 = vld [vmem:[#allocation17_spill] sm:$0xff] }
 0x775   :  { %v6073_v1 = vadd.f32 %v1678_v11, %v1676_v0  ;;  %v428_v0 = vadd.f32 %v7019_v35, %v5535_v17 }
 0x777   :  { %v6080_v44 = vpack.c.bf16 %v6073_v1, %v6071_v49 }
 0x779   :  { %1726 = vmatmul.mubr.bf16.vlgmr.msra.gmra.mrb[28].mxu0 %v6080_v44  ;;  %4225 = vmatmul.mubr.bf16.vlgmr.msra.gmra.mrb[60].mxu1 %v6080_v44 }
 0x77a   :  { %2049 = vmatpush1.bf16.msra.mxu1 %v4667_v51  ;;  %4229 = vmatpush3.bf16.msra.mxu0 %v6049_v33  ;;  %v4675_v33 = vld [vmem:[%s6968_s5 + $0x30] ss:$12 sps:$4 sm:$0xff]  }
 0x77b   :  { %4244 = vmatprep.mubr.bf16.mxu0 %v7016_v9  ;;  %2050 = vmatprep.subr.bf16.mxu1 %v4673_v31  ;;  %v7020_v31 = vld [vmem:[#allocation14_spill] sm:$0xff] }
 0x77c   :  { %4230 = vmatprep.subr.bf16.mxu0 %v4674_v12  ;;  %2080 = vmatprep.mubr.bf16.mxu1 %v7005_v2 }
 0x77e   :  { %2051 = vmatpush1.bf16.msra.mxu1 %v4671_v52  ;;  %4231 = vmatpush3.bf16.msra.mxu0 %v4674_v12  ;;  %v430_v12 = vadd.f32 %v7020_v31, %v5548_v6 }
 0x77f   :  { %2052 = vmatprep.subr.bf16.mxu1 %v4677_v53  ;;  %4232 = vmatprep.subr.bf16.mxu0 %v4678_v48 }
 0x782   :  { %2053 = vmatpush1.bf16.msra.mxu1 %v4675_v33  ;;  %4233 = vmatpush3.bf16.msra.mxu0 %v4678_v48 }
 0x783   :  { %2054 = vmatprep.subr.bf16.mxu1 %v4681_v25  ;;  %4234 = vmatprep.subr.bf16.mxu0 %v4682_v5 }
 0x786   :  { %2055 = vmatpush1.bf16.msra.mxu1 %v4679_v20  ;;  %4235 = vmatpush3.bf16.msra.mxu0 %v4682_v5 }
 0x787   :  { %2056 = vmatprep.subr.bf16.mxu1 %v4685_v57  ;;  %4236 = vmatprep.subr.bf16.mxu0 %v4686_v26 }
 0x78a   :  { %2057 = vmatpush1.bf16.msra.mxu1 %v4683_v19  ;;  %4237 = vmatpush3.bf16.msra.mxu0 %v4686_v26 }
 0x78b   :  { %2058 = vmatprep.subr.bf16.mxu1 %v4689_v28  ;;  %4238 = vmatprep.subr.bf16.mxu0 %v4690_v46 }
 0x78e   :  { %2059 = vmatpush1.bf16.msra.mxu1 %v4687_v10  ;;  %4239 = vmatpush3.bf16.msra.mxu0 %v4690_v46 }
 0x78f   :  { %2060 = vmatprep.subr.bf16.mxu1 %v4693_v58  ;;  %4240 = vmatprep.subr.bf16.mxu0 %v4694_v18 }
 0x792   :  { %2061 = vmatpush1.bf16.msra.mxu1 %v4691_v3  ;;  %4241 = vmatpush3.bf16.msra.mxu0 %v4694_v18 }
 0x793   :  { %2062 = vmatprep.subr.bf16.mxu1 %v4697_v59  ;;  %4242 = vmatprep.subr.bf16.mxu0 %v4698_v4 }
 0x796   :  { %2063 = vmatpush1.bf16.msra.mxu1 %v4695_v34  ;;  %4243 = vmatpush3.bf16.msra.mxu0 %v4698_v4 }
 0x797   :  { %2440 = vmatprep.subr.bf16.mxu1 %v6153_v40  ;;  %4260 = vmatprep.subr.bf16.mxu0 %v7004_v50 }
 0x799   :  { %2081 = vmatmul.mubr.bf16.vlgmr.msra.gmra.mrb[64].mxu1 %v7016_v9  ;;  %4245 = vmatmul.mubr.bf16.vlgmr.msra.gmra.mrb[32].mxu0 %v5658_v36 }
 0x79a   :  { %4248 = vmatprep.mubr.bf16.mxu0 %v5713_v15  ;;  %2090 = vmatprep.mubr.bf16.mxu1 %v7005_v2 }
 0x79b   :  { %2441 = vmatpush1.bf16.msra.mxu1 %v6159_v42  ;;  %4261 = vmatpush3.bf16.msra.mxu0 %v6257_v61 }
 0x79c   :  { %4262 = vmatprep.subr.bf16.mxu0 %v7004_v50 }
 0x79f   :  { %4263 = vmatpush3.bf16.msra.mxu0 %v6268_v8 }
 0x7a0   :  { %4264 = vmatprep.subr.bf16.mxu0 %v7004_v50 }
 0x7a1   :  { %2091 = vmatmul.mubr.bf16.gmra.mrb[68].mxu1 %v5658_v36  ;;  %4249 = vmatmul.mubr.bf16.gmra.mrb[36].mxu0 %v5773_v13  ;;  %v6186_v36 = vld [vmem:[%s6969_s6 + $0x1c] ss:$12 sps:$4 sm:$0xff]  }
 0x7a2   :  { %4252 = vmatprep.mubr.bf16.mxu0 %v5882_v30  ;;  %2100 = vmatprep.mubr.bf16.mxu1 %v7005_v2 }
 0x7a3   :  { %2442 = vmatprep.subr.bf16.mxu1 %v6186_v36  ;;  %4265 = vmatpush3.bf16.msra.mxu0 %v6284_v38 }
 0x7a4   :  { %4266 = vmatprep.subr.bf16.mxu0 %v7004_v50 }
 0x7a7   :  { %4267 = vmatpush3.bf16.msra.mxu0 %v6291_v23 }
 0x7a8   :  { %4268 = vmatprep.subr.bf16.mxu0 %v7004_v50 }
 0x7a9   :  { %2101 = vmatmul.mubr.bf16.gmra.mrb[72].mxu1 %v5713_v15  ;;  %4253 = vmatmul.mubr.bf16.gmra.mrb[40].mxu0 %v6006_v22  ;;  %v6191_v15 = vld [vmem:[%s6969_s6 + $0x18] ss:$12 sps:$4 sm:$0xff]  }
 0x7aa   :  { %4256 = vmatprep.mubr.bf16.mxu0 %v6080_v44  ;;  %2110 = vmatprep.mubr.bf16.mxu1 %v7005_v2 }
 0x7ab   :  { %2443 = vmatpush1.bf16.msra.mxu1 %v6191_v15  ;;  %4269 = vmatpush3.bf16.msra.mxu0 %v6298_v27 }
 0x7ac   :  { %4270 = vmatprep.subr.bf16.mxu0 %v7004_v50 }
 0x7af   :  { %4271 = vmatpush3.bf16.msra.mxu0 %v6305_v21 }
 0x7b0   :  { %4272 = vmatprep.subr.bf16.mxu0 %v7004_v50 }
 0x7b1   :  { %2111 = vmatmul.mubr.bf16.gmra.mrb[76].mxu1 %v5773_v13  ;;  %v6198_v13 = vld [vmem:[%s6969_s6 + $0x34] ss:$12 sps:$4 sm:$0xff]  }
 0x7b2   :  { %2120 = vmatprep.mubr.bf16.mxu1 %v7005_v2  ;;  %2444 = vmatprep.subr.bf16.mxu1 %v6198_v13 }
 0x7b3   :  { %4273 = vmatpush3.bf16.msra.mxu0 %v6312_v29 }
 0x7b4   :  { %4274 = vmatprep.subr.bf16.mxu0 %v7004_v50 }
 0x7b7   :  { %4275 = vmatpush3.bf16.msra.mxu0 %v6319_v32 }
 0x7b8   :  { %4280 = vmatprep.subr.bf16.mxu0 %v7004_v50 }
 0x7b9   :  { %2121 = vmatmul.mubr.bf16.gmra.mrb[80].mxu1 %v5882_v30  ;;  %v6203_v30 = vld [vmem:[%s6969_s6 + $0x30] ss:$12 sps:$4 sm:$0xff]  }
 0x7ba   :  { %2130 = vmatprep.mubr.bf16.mxu1 %v7005_v2  ;;  %2445 = vmatpush1.bf16.msra.mxu1 %v6203_v30 }
 0x7c1   :  { %2131 = vmatmul.mubr.bf16.gmra.mrb[84].mxu1 %v6006_v22  ;;  %v6208_v22 = vld [vmem:[%s6969_s6 + $0x4c] ss:$12 sps:$4 sm:$0xff]  }
 0x7c2   :  { %2140 = vmatprep.mubr.bf16.mxu1 %v7005_v2  ;;  %2446 = vmatprep.subr.bf16.mxu1 %v6208_v22 }
 0x7c3   :  { %2447 = vmatpush1.bf16.msra.mxu1 %v6215_v45 }
 0x7c4   :  { %2448 = vmatprep.subr.bf16.mxu1 %v6221_v54 }
 0x7c7   :  { %2449 = vmatpush1.bf16.msra.mxu1 %v6227_v47 }
 0x7c8   :  { %2450 = vmatprep.subr.bf16.mxu1 %v6233_v55 }
 0x7c9   :  { %2141 = vmatmul.mubr.bf16.gmra.mrb[88].mxu1 %v6080_v44 }
 0x7ca   :  { %2150 = vmatprep.mubr.bf16.mxu1 %v7005_v2 }
 0x7cb   :  { %2451 = vmatpush1.bf16.msra.mxu1 %v6239_v56 }
 0x7cc   :  { %2452 = vmatprep.subr.bf16.mxu1 %v6245_v60 }
 0x7cf   :  { %2453 = vmatpush1.bf16.msra.mxu1 %v6251_v43 }
 0x7d0   :  { %2454 = vmatprep.subr.bf16.mxu1 %v6262_v16 }
 0x7d3   :  { %2455 = vmatpush1.bf16.msra.mxu1 %v6274_v41 }
 0x7d4   :  { %2576 = vmatprep.subr.bf16.mxu1 %v6153_v40 }
 0x84c   :  { %v1727_v39 = vpop.f32.mrb[28].mxu0  ;;  %v1770_v63 = vpop.f32.mrb[60].mxu1 }
 0x84d   :  { %v1777_v11 = vadd.f32 %v1727_v39, %v424_v14  ;;  %v1729_v51 = vpop.f32.mrb[29].mxu0  ;;  %v4226_v44 = vpop.f32.mrb[61].mxu1  ;;  %v1805_v3 = vadd.f32 %v6063_v7, %v1770_v63 }
 0x84e   :  { %v1791_v52 = vadd.f32 %v1729_v51, %v426_v37  ;;  %v1731_v9 = vpop.f32.mrb[30].mxu0  ;;  %v1773_v53 = vpop.f32.mrb[62].mxu1 }
 0x84f   :  { %v3755_v48 = vmul.f32 -1.442695, %v1777_v11  ;;  %v1778_v33 = vadd.f32 %v1731_v9, %v428_v0  ;;  %v1733_v25 = vpop.f32.mrb[31].mxu0  ;;  %v4227_v5 = vpop.f32.mrb[63].mxu1  ;;  %v1806_v24 = vadd.f32 %v6063_v7, %v1773_v53  ;;  %v7022_v0 = vld [vmem:[#allocation19_spill] sm:$0xff] }
 0x850   :  { %v1792_v20 = vadd.f32 %v1733_v25, %v430_v12  ;;  %v3757_v26 = vmul.f32 -1.442695, %v1791_v52 }
 0x851   :  { %4879 = vpow2.f32 %v3755_v48  ;;  %v3756_v57 = vmul.f32 -1.442695, %v1778_v33 }
 0x852   :  { %v3758_v19 = vmul.f32 -1.442695, %v1792_v20 }
 0x853   :  { %4881 = vpow2.f32 %v3756_v57 }
 0x854   :  { %4883 = vpow2.f32 %v3757_v26 }
 0x855   :  { %4885 = vpow2.f32 %v3758_v19 }
 0x85b   :  { %v4880_v17 = vpop.eup %4879 }
 0x85c   :  { %v1785_v28 = vadd.f32 1.0, %v4880_v17 }
 0x85d   :  { %v4882_v46 = vpop.eup %4881 }
 0x85e   :  { %4887 = vrcp.f32 %v1785_v28  ;;  %v1786_v6 = vadd.f32 1.0, %v4882_v46  ;;  %v4884_v10 = vpop.eup %4883 }
 0x85f   :  { %v4886_v58 = vpop.eup %4885  ;;  %v1799_v18 = vadd.f32 1.0, %v4884_v10 }
 0x860   :  { %4889 = vrcp.f32 %v1786_v6  ;;  %v1800_v59 = vadd.f32 1.0, %v4886_v58 }
 0x861   :  { %4891 = vrcp.f32 %v1799_v18 }
 0x862   :  { %4893 = vrcp.f32 %v1800_v59 }
 0x868   :  { %v4888_v4 = vpop.eup %4887 }
 0x869   :  { %v1807_v34 = vmul.f32 %v4888_v4, %v1805_v3  ;;  %v1824_v4 = vld [vmem:[%s6970_s7] sm:$0x7] }
 0x86a   :  { %v4890_v14 = vpop.eup %4889 }
 0x86b   :  { %v1809_v37 = vadd.f32 %v1807_v34, %v7021_v62  ;;  %v1808_v39 = vmul.f32 %v4890_v14, %v1806_v24  ;;  %v4892_v31 = vpop.eup %4891  ;;  %v7025_v34 = vld [vmem:[#allocation10_spill] sm:$0xff] }
 0x86c   :  { %v6335_v35 = vpop.f32.mrb[32].mxu0  ;;  %v4894_v7 = vpop.eup %4893  ;;  %v1813_v53 = vsub.f32 1.0, %v4892_v31  ;;  %v1817_v20 = vmul.f32 %v4892_v31, %v6071_v49  ;;  %v7026_v24 = vsub.s32 0, %v7025_v34 }
 0x86d   :  { %4895 = vtanh.f32 %v1809_v37  ;;  %v1810_v11 = vadd.f32 %v1808_v39, %v7022_v0  ;;  %v6338_v51 = vpop.f32.mrb[33].mxu0  ;;  %v1814_v25 = vsub.f32 1.0, %v4894_v7  ;;  %v1818_v19 = vmul.f32 %v4894_v7, %v6073_v1 }
 0x86e   :  { %v6340_v44 = vpop.f32.mrb[34].mxu0  ;;  %v6415_v14 = vrot.slane %v1824_v4, %v7026_v24  ;;  %v7027_v37 = vsub.s32 1, %v7025_v34 }
 0x86f   :  { %4897 = vtanh.f32 %v1810_v11  ;;  %v6342_v63 = vpop.f32.mrb[35].mxu0 }
 0x870   :  { %v6419_v39 = vrot.slane %v1824_v4, %v7027_v37 }
 0x874   :  { %v6344_v12 = vpop.f32.mrb[36].mxu0 }
 0x875   :  { %v6346_v52 = vpop.f32.mrb[37].mxu0 }
 0x876   :  { %v6348_v9 = vpop.f32.mrb[38].mxu0 }
 0x877   :  { %v4896_v48 = vpop.eup %4895  ;;  %v6350_v33 = vpop.f32.mrb[39].mxu0 }
 0x878   :  { %v1815_v5 = vmul.f32 %v4896_v48, %v1813_v53 }
 0x879   :  { %v4898_v57 = vpop.eup %4897 }
 0x87a   :  { %v1816_v26 = vmul.f32 %v4898_v57, %v1814_v25  ;;  %v1819_v17 = vadd.f32 %v1817_v20, %v1815_v5 }
 0x87c   :  { %v6354_v28 = vpop.f32.mrb[40].mxu0  ;;  %v1820_v46 = vadd.f32 %v1818_v19, %v1816_v26 }
 0x87d   :  { %v6356_v6 = vpop.f32.mrb[41].mxu0 }
 0x87e   :  { %v6358_v10 = vpop.f32.mrb[42].mxu0  ;;  %v1821_v58 = vpack.c.bf16 %v1820_v46, %v1819_v17 }
 0x87f   :  { %v6360_v18 = vpop.f32.mrb[43].mxu0 }
 0x880   :  { %2151 = vmatmul.mubr.bf16.gmra.mrb[92].mxu1 %v1821_v58  ;;  %4257 = vmatmul.mubr.bf16.gmra.mrb[44].mxu0 %v1821_v58 }
 0x881   :  { %2472 = vmatprep.mubr.bf16.mxu1 %v7005_v2  ;;  %4276 = vmatprep.mubr.msk.bf16.mxu0 %vm5111_vm0, %v7004_v50 }
 0x888   :  { %2473 = vmatmul.mubr.bf16.vlgmr.msra.gmra.mrb[64].mxu1 %v7005_v2  ;;  %4277 = vmatmul.mubr.bf16.vlgmr.msra.gmra.mrb[48].mxu0 %v7005_v2 }
 0x889   :  { %2577 = vmatpush1.bf16.msra.mxu1 %v6159_v42  ;;  %4281 = vmatpush3.bf16.msra.mxu0 %v6257_v61 }
 0x88a   :  { %2578 = vmatprep.subr.bf16.mxu1 %v6186_v36  ;;  %4282 = vmatprep.subr.bf16.mxu0 %v7004_v50 }
 0x88b   :  { %2608 = vmatprep.mubr.bf16.mxu1 %v7005_v2  ;;  %4296 = vmatprep.mubr.msk.bf16.mxu0 %vm5111_vm0, %v7004_v50 }
 0x88d   :  { %2579 = vmatpush1.bf16.msra.mxu1 %v6191_v15  ;;  %4283 = vmatpush3.bf16.msra.mxu0 %v6268_v8 }
 0x88e   :  { %2580 = vmatprep.subr.bf16.mxu1 %v6198_v13  ;;  %4284 = vmatprep.subr.bf16.mxu0 %v7004_v50 }
 0x891   :  { %2581 = vmatpush1.bf16.msra.mxu1 %v6203_v30  ;;  %4285 = vmatpush3.bf16.msra.mxu0 %v6284_v38 }
 0x892   :  { %2582 = vmatprep.subr.bf16.mxu1 %v6208_v22  ;;  %4286 = vmatprep.subr.bf16.mxu0 %v7004_v50 }
 0x895   :  { %2583 = vmatpush1.bf16.msra.mxu1 %v6215_v45  ;;  %4287 = vmatpush3.bf16.msra.mxu0 %v6291_v23 }
 0x896   :  { %2584 = vmatprep.subr.bf16.mxu1 %v6221_v54  ;;  %4288 = vmatprep.subr.bf16.mxu0 %v7004_v50 }
 0x899   :  { %2585 = vmatpush1.bf16.msra.mxu1 %v6227_v47  ;;  %4289 = vmatpush3.bf16.msra.mxu0 %v6298_v27 }
 0x89a   :  { %2586 = vmatprep.subr.bf16.mxu1 %v6233_v55  ;;  %4290 = vmatprep.subr.bf16.mxu0 %v7004_v50 }
 0x89d   :  { %2587 = vmatpush1.bf16.msra.mxu1 %v6239_v56  ;;  %4291 = vmatpush3.bf16.msra.mxu0 %v6305_v21 }
 0x89e   :  { %2588 = vmatprep.subr.bf16.mxu1 %v6245_v60  ;;  %4292 = vmatprep.subr.bf16.mxu0 %v7004_v50 }
 0x8a1   :  { %2589 = vmatpush1.bf16.msra.mxu1 %v6251_v43  ;;  %4293 = vmatpush3.bf16.msra.mxu0 %v6312_v29 }
 0x8a2   :  { %2590 = vmatprep.subr.bf16.mxu1 %v6262_v16  ;;  %4294 = vmatprep.subr.bf16.mxu0 %v7004_v50 }
 0x8a5   :  { %2591 = vmatpush1.bf16.msra.mxu1 %v6274_v41  ;;  %4295 = vmatpush3.bf16.msra.mxu0 %v6319_v32 }
 0x8a6   :  { %2712 = vmatprep.subr.bf16.mxu1 %v6153_v40  ;;  %4300 = vmatprep.subr.bf16.mxu0 %v7004_v50 }
 0x953   :  { %v6402_v49 = vpop.f32.mrb[44].mxu0 }
 0x954   :  { %7023 = vst [vmem:[#allocation4_spill] sm:$0xff] %v6402_v49  ;;  %v6404_v1 = vpop.f32.mrb[45].mxu0 }
 0x955   :  { %v6406_v3 = vpop.f32.mrb[46].mxu0 }
 0x956   :  { %7024 = vst [vmem:[#allocation5_spill] sm:$0xff] %v6406_v3  ;;  %v6408_v59 = vpop.f32.mrb[47].mxu0 }
 0x95b   :  { %v2474_v62 = vpop.f32.mrb[64].mxu1  ;;  %v2517_v0 = vpop.f32.mrb[48].mxu0 }
 0x95c   :  { %v4512_v11 = vadd.f32 %v2474_v62, %v6415_v14  ;;  %v2476_v31 = vpop.f32.mrb[65].mxu1  ;;  %v4278_v7 = vpop.f32.mrb[49].mxu0 }
 0x95d   :  { %v2478_v53 = vpop.f32.mrb[66].mxu1  ;;  %v2520_v48 = vpop.f32.mrb[50].mxu0  ;;  %v4513_v26 = vadd.f32 %v2476_v31, %v6419_v39  ;;  %v6428_v31 = vld [vmem:[%s6971_s8] ss:$0 sm:$0xff] }
 0x95e   :  { %v3808_v25 = vmul.f32 -1.442695, %v4512_v11  ;;  %v4514_v5 = vadd.f32 %v2478_v53, %v6415_v14  ;;  %v2480_v20 = vpop.f32.mrb[67].mxu1  ;;  %v4279_v57 = vpop.f32.mrb[51].mxu0 }
 0x95f   :  { %v4515_v17 = vadd.f32 %v2480_v20, %v6419_v39  ;;  %v3810_v46 = vmul.f32 -1.442695, %v4513_v26  ;;  %v2552_v57 = vadd.f32 %v6428_v31, %v2517_v0 }
 0x960   :  { %4899 = vpow2.f32 %v3808_v25  ;;  %v3809_v19 = vmul.f32 -1.442695, %v4514_v5  ;;  %v7028_v25 = vsub.s32 2, %v7025_v34 }
 0x961   :  { %v3811_v58 = vmul.f32 -1.442695, %v4515_v17 }
 0x962   :  { %4901 = vpow2.f32 %v3809_v19  ;;  %v6432_v5 = vrot.slane %v1824_v4, %v7028_v25 }
 0x963   :  { %4903 = vpow2.f32 %v3810_v46 }
 0x964   :  { %4905 = vpow2.f32 %v3811_v58  ;;  %v2196_v17 = vadd.f32 %v6338_v51, %v6432_v5  ;;  %v2553_v58 = vadd.f32 %v6428_v31, %v2520_v48 }
 0x96a   :  { %v4900_v24 = vpop.eup %4899 }
 0x96b   :  { %v2532_v62 = vadd.f32 1.0, %v4900_v24 }
 0x96c   :  { %v4902_v37 = vpop.eup %4901 }
 0x96d   :  { %4907 = vrcp.f32 %v2532_v62  ;;  %v2533_v11 = vadd.f32 1.0, %v4902_v37  ;;  %v4904_v7 = vpop.eup %4903  ;;  %v2199_v62 = vadd.f32 %v6342_v63, %v6432_v5 }
 0x96e   :  { %v4906_v53 = vpop.eup %4905  ;;  %v2546_v20 = vadd.f32 1.0, %v4904_v7 }
 0x96f   :  { %4909 = vrcp.f32 %v2533_v11  ;;  %v2547_v26 = vadd.f32 1.0, %v4906_v53 }
 0x970   :  { %4911 = vrcp.f32 %v2546_v20 }
 0x971   :  { %4913 = vrcp.f32 %v2547_v26 }
 0x977   :  { %v4908_v19 = vpop.eup %4907 }
 0x978   :  { %v2554_v46 = vmul.f32 %v4908_v19, %v2552_v57 }
 0x979   :  { %v4910_v24 = vpop.eup %4909 }
 0x97a   :  { %v2556_v34 = vadd.f32 %v2554_v46, %v2196_v17  ;;  %v2555_v4 = vmul.f32 %v4910_v24, %v2553_v58  ;;  %v4912_v0 = vpop.eup %4911 }
 0x97b   :  { %v4914_v11 = vpop.eup %4913  ;;  %v2560_v7 = vsub.f32 1.0, %v4912_v0  ;;  %v2564_v20 = vmul.f32 0.0, %v4912_v0 }
 0x97c   :  { %4915 = vtanh.f32 %v2556_v34  ;;  %v2557_v37 = vadd.f32 %v2555_v4, %v2199_v62  ;;  %v2561_v25 = vsub.f32 1.0, %v4914_v11  ;;  %v2565_v48 = vmul.f32 0.0, %v4914_v11 }
 0x97e   :  { %4917 = vtanh.f32 %v2557_v37 }
 0x986   :  { %v4916_v53 = vpop.eup %4915 }
 0x987   :  { %v2562_v51 = vmul.f32 %v4916_v53, %v2560_v7 }
 0x988   :  { %v4918_v57 = vpop.eup %4917 }
 0x989   :  { %v2563_v19 = vmul.f32 %v4918_v57, %v2561_v25  ;;  %v6440_v3 = vadd.f32 %v2564_v20, %v2562_v51 }
 0x98b   :  { %v6442_v49 = vadd.f32 %v2565_v48, %v2563_v19 }
 0x98d   :  { %v2568_v63 = vpack.c.bf16 %v6442_v49, %v6440_v3 }
 0x98f   :  { %2609 = vmatmul.mubr.bf16.vlgmr.msra.gmra.mrb[68].mxu1 %v2568_v63  ;;  %4297 = vmatmul.mubr.bf16.vlgmr.msra.gmra.mrb[52].mxu0 %v2568_v63 }
 0x990   :  { %2713 = vmatpush1.bf16.msra.mxu1 %v6159_v42  ;;  %4301 = vmatpush3.bf16.msra.mxu0 %v6257_v61 }
 0x991   :  { %2714 = vmatprep.subr.bf16.mxu1 %v6186_v36  ;;  %4302 = vmatprep.subr.bf16.mxu0 %v7004_v50 }
 0x992   :  { %2744 = vmatprep.mubr.bf16.mxu1 %v7005_v2  ;;  %4316 = vmatprep.mubr.msk.bf16.mxu0 %vm5111_vm0, %v7004_v50 }
 0x994   :  { %2715 = vmatpush1.bf16.msra.mxu1 %v6191_v15  ;;  %4303 = vmatpush3.bf16.msra.mxu0 %v6268_v8 }
 0x995   :  { %2716 = vmatprep.subr.bf16.mxu1 %v6198_v13  ;;  %4304 = vmatprep.subr.bf16.mxu0 %v7004_v50 }
 0x998   :  { %2717 = vmatpush1.bf16.msra.mxu1 %v6203_v30  ;;  %4305 = vmatpush3.bf16.msra.mxu0 %v6284_v38 }
 0x999   :  { %2718 = vmatprep.subr.bf16.mxu1 %v6208_v22  ;;  %4306 = vmatprep.subr.bf16.mxu0 %v7004_v50 }
 0x99c   :  { %2719 = vmatpush1.bf16.msra.mxu1 %v6215_v45  ;;  %4307 = vmatpush3.bf16.msra.mxu0 %v6291_v23 }
 0x99d   :  { %2720 = vmatprep.subr.bf16.mxu1 %v6221_v54  ;;  %4308 = vmatprep.subr.bf16.mxu0 %v7004_v50 }
 0x9a0   :  { %2721 = vmatpush1.bf16.msra.mxu1 %v6227_v47  ;;  %4309 = vmatpush3.bf16.msra.mxu0 %v6298_v27 }
 0x9a1   :  { %2722 = vmatprep.subr.bf16.mxu1 %v6233_v55  ;;  %4310 = vmatprep.subr.bf16.mxu0 %v7004_v50 }
 0x9a4   :  { %2723 = vmatpush1.bf16.msra.mxu1 %v6239_v56  ;;  %4311 = vmatpush3.bf16.msra.mxu0 %v6305_v21 }
 0x9a5   :  { %2724 = vmatprep.subr.bf16.mxu1 %v6245_v60  ;;  %4312 = vmatprep.subr.bf16.mxu0 %v7004_v50 }
 0x9a8   :  { %2725 = vmatpush1.bf16.msra.mxu1 %v6251_v43  ;;  %4313 = vmatpush3.bf16.msra.mxu0 %v6312_v29 }
 0x9a9   :  { %2726 = vmatprep.subr.bf16.mxu1 %v6262_v16  ;;  %4314 = vmatprep.subr.bf16.mxu0 %v7004_v50 }
 0x9ac   :  { %2727 = vmatpush1.bf16.msra.mxu1 %v6274_v41  ;;  %4315 = vmatpush3.bf16.msra.mxu0 %v6319_v32 }
 0x9ad   :  { %2848 = vmatprep.subr.bf16.mxu1 %v6153_v40  ;;  %4320 = vmatprep.subr.bf16.mxu0 %v7004_v50 }
 0xa62   :  { %v2610_v26 = vpop.f32.mrb[68].mxu1  ;;  %v2653_v17 = vpop.f32.mrb[52].mxu0 }
 0xa63   :  { %v4516_v46 = vadd.f32 %v2610_v26, %v6415_v14  ;;  %v2612_v58 = vpop.f32.mrb[69].mxu1  ;;  %v4298_v24 = vpop.f32.mrb[53].mxu0 }
 0xa64   :  { %v2614_v62 = vpop.f32.mrb[70].mxu1  ;;  %v2656_v34 = vpop.f32.mrb[54].mxu0  ;;  %v4517_v7 = vadd.f32 %v2612_v58, %v6419_v39  ;;  %v2688_v58 = vadd.f32 %v6428_v31, %v2653_v17 }
 0xa65   :  { %v3812_v4 = vmul.f32 -1.442695, %v4516_v46  ;;  %v4518_v37 = vadd.f32 %v2614_v62, %v6415_v14  ;;  %v2616_v0 = vpop.f32.mrb[71].mxu1  ;;  %v4299_v11 = vpop.f32.mrb[55].mxu0 }
 0xa66   :  { %v4519_v25 = vadd.f32 %v2616_v0, %v6419_v39  ;;  %v3814_v51 = vmul.f32 -1.442695, %v4517_v7  ;;  %v2689_v11 = vadd.f32 %v6428_v31, %v2656_v34 }
 0xa67   :  { %4919 = vpow2.f32 %v3812_v4  ;;  %v3813_v53 = vmul.f32 -1.442695, %v4518_v37  ;;  %v2204_v37 = vadd.f32 %v6335_v35, %v6432_v5 }
 0xa68   :  { %v3815_v20 = vmul.f32 -1.442695, %v4519_v25 }
 0xa69   :  { %4921 = vpow2.f32 %v3813_v53  ;;  %v2207_v53 = vadd.f32 %v6340_v44, %v6432_v5 }
 0xa6a   :  { %4923 = vpow2.f32 %v3814_v51 }
 0xa6b   :  { %4925 = vpow2.f32 %v3815_v20 }
 0xa71   :  { %v4920_v57 = vpop.eup %4919 }
 0xa72   :  { %v2668_v19 = vadd.f32 1.0, %v4920_v57 }
 0xa73   :  { %v4922_v48 = vpop.eup %4921 }
 0xa74   :  { %4927 = vrcp.f32 %v2668_v19  ;;  %v2669_v63 = vadd.f32 1.0, %v4922_v48  ;;  %v4924_v26 = vpop.eup %4923 }
 0xa75   :  { %v4926_v46 = vpop.eup %4925  ;;  %v2682_v24 = vadd.f32 1.0, %v4924_v26 }
 0xa76   :  { %4929 = vrcp.f32 %v2669_v63  ;;  %v2683_v62 = vadd.f32 1.0, %v4926_v46 }
 0xa77   :  { %4931 = vrcp.f32 %v2682_v24 }
 0xa78   :  { %4933 = vrcp.f32 %v2683_v62 }
 0xa7e   :  { %v4928_v4 = vpop.eup %4927 }
 0xa7f   :  { %v2690_v0 = vmul.f32 %v4928_v4, %v2688_v58 }
 0xa80   :  { %v4930_v7 = vpop.eup %4929 }
 0xa81   :  { %v2692_v25 = vadd.f32 %v2690_v0, %v2204_v37  ;;  %v2691_v51 = vmul.f32 %v4930_v7, %v2689_v11  ;;  %v4932_v17 = vpop.eup %4931 }
 0xa82   :  { %v4934_v57 = vpop.eup %4933  ;;  %v2696_v19 = vsub.f32 1.0, %v4932_v17  ;;  %v2700_v26 = vmul.f32 %v4932_v17, %v6440_v3 }
 0xa83   :  { %4935 = vtanh.f32 %v2692_v25  ;;  %v2693_v20 = vadd.f32 %v2691_v51, %v2207_v53  ;;  %v2697_v63 = vsub.f32 1.0, %v4934_v57  ;;  %v2701_v24 = vmul.f32 %v4934_v57, %v6442_v49 }
 0xa85   :  { %4937 = vtanh.f32 %v2693_v20 }
 0xa8d   :  { %v4936_v48 = vpop.eup %4935 }
 0xa8e   :  { %v2698_v35 = vmul.f32 %v4936_v48, %v2696_v19 }
 0xa8f   :  { %v4938_v46 = vpop.eup %4937 }
 0xa90   :  { %v2699_v34 = vmul.f32 %v4938_v46, %v2697_v63  ;;  %v6493_v58 = vadd.f32 %v2700_v26, %v2698_v35 }
 0xa92   :  { %v6495_v44 = vadd.f32 %v2701_v24, %v2699_v34 }
 0xa94   :  { %v2704_v62 = vpack.c.bf16 %v6495_v44, %v6493_v58 }
 0xa96   :  { %2745 = vmatmul.mubr.bf16.vlgmr.msra.gmra.mrb[72].mxu1 %v2704_v62  ;;  %4317 = vmatmul.mubr.bf16.vlgmr.msra.gmra.mrb[56].mxu0 %v2704_v62 }
 0xa97   :  { %2849 = vmatpush1.bf16.msra.mxu1 %v6159_v42  ;;  %4321 = vmatpush3.bf16.msra.mxu0 %v6257_v61 }
 0xa98   :  { %2850 = vmatprep.subr.bf16.mxu1 %v6186_v36  ;;  %4322 = vmatprep.subr.bf16.mxu0 %v7004_v50 }
 0xa99   :  { %2880 = vmatprep.mubr.bf16.mxu1 %v7005_v2  ;;  %4336 = vmatprep.mubr.msk.bf16.mxu0 %vm5111_vm0, %v7004_v50 }
 0xa9b   :  { %2851 = vmatpush1.bf16.msra.mxu1 %v6191_v15  ;;  %4323 = vmatpush3.bf16.msra.mxu0 %v6268_v8 }
 0xa9c   :  { %2852 = vmatprep.subr.bf16.mxu1 %v6198_v13  ;;  %4324 = vmatprep.subr.bf16.mxu0 %v7004_v50 }
 0xa9f   :  { %2853 = vmatpush1.bf16.msra.mxu1 %v6203_v30  ;;  %4325 = vmatpush3.bf16.msra.mxu0 %v6284_v38 }
 0xaa0   :  { %2854 = vmatprep.subr.bf16.mxu1 %v6208_v22  ;;  %4326 = vmatprep.subr.bf16.mxu0 %v7004_v50 }
 0xaa3   :  { %2855 = vmatpush1.bf16.msra.mxu1 %v6215_v45  ;;  %4327 = vmatpush3.bf16.msra.mxu0 %v6291_v23 }
 0xaa4   :  { %2856 = vmatprep.subr.bf16.mxu1 %v6221_v54  ;;  %4328 = vmatprep.subr.bf16.mxu0 %v7004_v50 }
 0xaa7   :  { %2857 = vmatpush1.bf16.msra.mxu1 %v6227_v47  ;;  %4329 = vmatpush3.bf16.msra.mxu0 %v6298_v27 }
 0xaa8   :  { %2858 = vmatprep.subr.bf16.mxu1 %v6233_v55  ;;  %4330 = vmatprep.subr.bf16.mxu0 %v7004_v50 }
 0xaab   :  { %2859 = vmatpush1.bf16.msra.mxu1 %v6239_v56  ;;  %4331 = vmatpush3.bf16.msra.mxu0 %v6305_v21 }
 0xaac   :  { %2860 = vmatprep.subr.bf16.mxu1 %v6245_v60  ;;  %4332 = vmatprep.subr.bf16.mxu0 %v7004_v50 }
 0xaaf   :  { %2861 = vmatpush1.bf16.msra.mxu1 %v6251_v43  ;;  %4333 = vmatpush3.bf16.msra.mxu0 %v6312_v29 }
 0xab0   :  { %2862 = vmatprep.subr.bf16.mxu1 %v6262_v16  ;;  %4334 = vmatprep.subr.bf16.mxu0 %v7004_v50 }
 0xab3   :  { %2863 = vmatpush1.bf16.msra.mxu1 %v6274_v41  ;;  %4335 = vmatpush3.bf16.msra.mxu0 %v6319_v32 }
 0xab4   :  { %2984 = vmatprep.subr.bf16.mxu1 %v6153_v40  ;;  %4340 = vmatprep.subr.bf16.mxu0 %v7004_v50 }
 0xb69   :  { %v2746_v49 = vpop.f32.mrb[72].mxu1  ;;  %v2789_v3 = vpop.f32.mrb[56].mxu0 }
 0xb6a   :  { %v4520_v4 = vadd.f32 %v2746_v49, %v6415_v14  ;;  %v2748_v37 = vpop.f32.mrb[73].mxu1  ;;  %v4318_v0 = vpop.f32.mrb[57].mxu0 }
 0xb6b   :  { %v2750_v11 = vpop.f32.mrb[74].mxu1  ;;  %v2792_v7 = vpop.f32.mrb[58].mxu0  ;;  %v4521_v17 = vadd.f32 %v2748_v37, %v6419_v39 }
 0xb6c   :  { %v3816_v53 = vmul.f32 -1.442695, %v4520_v4  ;;  %v4522_v25 = vadd.f32 %v2750_v11, %v6415_v14  ;;  %v2752_v51 = vpop.f32.mrb[75].mxu1  ;;  %v4319_v20 = vpop.f32.mrb[59].mxu0  ;;  %v2824_v4 = vadd.f32 %v6428_v31, %v2789_v3  ;;  %v2212_v11 = vadd.f32 %v6346_v52, %v6432_v5 }
 0xb6d   :  { %v4523_v19 = vadd.f32 %v2752_v51, %v6419_v39  ;;  %v3818_v48 = vmul.f32 -1.442695, %v4521_v17  ;;  %v2215_v20 = vadd.f32 %v6350_v33, %v6432_v5 }
 0xb6e   :  { %4939 = vpow2.f32 %v3816_v53  ;;  %v3817_v57 = vmul.f32 -1.442695, %v4522_v25  ;;  %v2825_v25 = vadd.f32 %v6428_v31, %v2792_v7 }
 0xb6f   :  { %v3819_v63 = vmul.f32 -1.442695, %v4523_v19 }
 0xb70   :  { %4941 = vpow2.f32 %v3817_v57 }
 0xb71   :  { %4943 = vpow2.f32 %v3818_v48 }
 0xb72   :  { %4945 = vpow2.f32 %v3819_v63 }
 0xb78   :  { %v4940_v35 = vpop.eup %4939 }
 0xb79   :  { %v2804_v26 = vadd.f32 1.0, %v4940_v35 }
 0xb7a   :  { %v4942_v46 = vpop.eup %4941 }
 0xb7b   :  { %4947 = vrcp.f32 %v2804_v26  ;;  %v2805_v34 = vadd.f32 1.0, %v4942_v46  ;;  %v4944_v24 = vpop.eup %4943 }
 0xb7c   :  { %v4946_v62 = vpop.eup %4945  ;;  %v2818_v49 = vadd.f32 1.0, %v4944_v24 }
 0xb7d   :  { %4949 = vrcp.f32 %v2805_v34  ;;  %v2819_v37 = vadd.f32 1.0, %v4946_v62 }
 0xb7e   :  { %4951 = vrcp.f32 %v2818_v49 }
 0xb7f   :  { %4953 = vrcp.f32 %v2819_v37 }
 0xb85   :  { %v4948_v0 = vpop.eup %4947 }
 0xb86   :  { %v2826_v53 = vmul.f32 %v4948_v0, %v2824_v4 }
 0xb87   :  { %v4950_v51 = vpop.eup %4949 }
 0xb88   :  { %v2828_v17 = vadd.f32 %v2826_v53, %v2212_v11  ;;  %v2827_v57 = vmul.f32 %v4950_v51, %v2825_v25  ;;  %v4952_v3 = vpop.eup %4951 }
 0xb89   :  { %v4954_v48 = vpop.eup %4953  ;;  %v2832_v63 = vsub.f32 1.0, %v4952_v3  ;;  %v2836_v46 = vmul.f32 %v4952_v3, %v6493_v58 }
 0xb8a   :  { %4955 = vtanh.f32 %v2828_v17  ;;  %v2829_v19 = vadd.f32 %v2827_v57, %v2215_v20  ;;  %v2833_v26 = vsub.f32 1.0, %v4954_v48  ;;  %v2837_v24 = vmul.f32 %v4954_v48, %v6495_v44 }
 0xb8b   :  { %v2220_v17 = vadd.f32 %v6344_v12, %v6432_v5  ;;  %v2223_v48 = vadd.f32 %v6348_v9, %v6432_v5 }
 0xb8c   :  { %4957 = vtanh.f32 %v2829_v19 }
 0xb94   :  { %v4956_v35 = vpop.eup %4955 }
 0xb95   :  { %v2834_v52 = vmul.f32 %v4956_v35, %v2832_v63 }
 0xb96   :  { %v4958_v34 = vpop.eup %4957 }
 0xb97   :  { %v2835_v7 = vmul.f32 %v4958_v34, %v2833_v26  ;;  %v6546_v62 = vadd.f32 %v2836_v46, %v2834_v52 }
 0xb99   :  { %v6548_v33 = vadd.f32 %v2837_v24, %v2835_v7 }
 0xb9b   :  { %v2840_v49 = vpack.c.bf16 %v6548_v33, %v6546_v62 }
 0xb9d   :  { %2881 = vmatmul.mubr.bf16.vlgmr.msra.gmra.mrb[76].mxu1 %v2840_v49  ;;  %4337 = vmatmul.mubr.bf16.vlgmr.msra.gmra.mrb[60].mxu0 %v2840_v49 }
 0xb9e   :  { %2985 = vmatpush1.bf16.msra.mxu1 %v6159_v42  ;;  %4341 = vmatpush3.bf16.msra.mxu0 %v6257_v61 }
 0xb9f   :  { %2986 = vmatprep.subr.bf16.mxu1 %v6186_v36  ;;  %4342 = vmatprep.subr.bf16.mxu0 %v7004_v50 }
 0xba0   :  { %3016 = vmatprep.mubr.bf16.mxu1 %v7005_v2  ;;  %4356 = vmatprep.mubr.msk.bf16.mxu0 %vm5111_vm0, %v7004_v50 }
 0xba2   :  { %2987 = vmatpush1.bf16.msra.mxu1 %v6191_v15  ;;  %4343 = vmatpush3.bf16.msra.mxu0 %v6268_v8 }
 0xba3   :  { %2988 = vmatprep.subr.bf16.mxu1 %v6198_v13  ;;  %4344 = vmatprep.subr.bf16.mxu0 %v7004_v50 }
 0xba6   :  { %2989 = vmatpush1.bf16.msra.mxu1 %v6203_v30  ;;  %4345 = vmatpush3.bf16.msra.mxu0 %v6284_v38 }
 0xba7   :  { %2990 = vmatprep.subr.bf16.mxu1 %v6208_v22  ;;  %4346 = vmatprep.subr.bf16.mxu0 %v7004_v50 }
 0xbaa   :  { %2991 = vmatpush1.bf16.msra.mxu1 %v6215_v45  ;;  %4347 = vmatpush3.bf16.msra.mxu0 %v6291_v23 }
 0xbab   :  { %2992 = vmatprep.subr.bf16.mxu1 %v6221_v54  ;;  %4348 = vmatprep.subr.bf16.mxu0 %v7004_v50 }
 0xbae   :  { %2993 = vmatpush1.bf16.msra.mxu1 %v6227_v47  ;;  %4349 = vmatpush3.bf16.msra.mxu0 %v6298_v27 }
 0xbaf   :  { %2994 = vmatprep.subr.bf16.mxu1 %v6233_v55  ;;  %4350 = vmatprep.subr.bf16.mxu0 %v7004_v50 }
 0xbb2   :  { %2995 = vmatpush1.bf16.msra.mxu1 %v6239_v56  ;;  %4351 = vmatpush3.bf16.msra.mxu0 %v6305_v21 }
 0xbb3   :  { %2996 = vmatprep.subr.bf16.mxu1 %v6245_v60  ;;  %4352 = vmatprep.subr.bf16.mxu0 %v7004_v50 }
 0xbb6   :  { %2997 = vmatpush1.bf16.msra.mxu1 %v6251_v43  ;;  %4353 = vmatpush3.bf16.msra.mxu0 %v6312_v29 }
 0xbb7   :  { %2998 = vmatprep.subr.bf16.mxu1 %v6262_v16  ;;  %4354 = vmatprep.subr.bf16.mxu0 %v7004_v50 }
 0xbba   :  { %2999 = vmatpush1.bf16.msra.mxu1 %v6274_v41  ;;  %4355 = vmatpush3.bf16.msra.mxu0 %v6319_v32 }
 0xbbb   :  { %3120 = vmatprep.subr.bf16.mxu1 %v6153_v40  ;;  %4360 = vmatprep.subr.bf16.mxu0 %v7004_v50 }
 0xc70   :  { %v2882_v42 = vpop.f32.mrb[76].mxu1  ;;  %v2925_v36 = vpop.f32.mrb[60].mxu0 }
 0xc71   :  { %v4524_v15 = vadd.f32 %v2882_v42, %v6415_v14  ;;  %v2884_v13 = vpop.f32.mrb[77].mxu1  ;;  %v4338_v30 = vpop.f32.mrb[61].mxu0  ;;  %v2960_v25 = vadd.f32 %v6428_v31, %v2925_v36 }
 0xc72   :  { %v2886_v22 = vpop.f32.mrb[78].mxu1  ;;  %v2928_v45 = vpop.f32.mrb[62].mxu0  ;;  %v4525_v60 = vadd.f32 %v2884_v13, %v6419_v39 }
 0xc73   :  { %v3820_v54 = vmul.f32 -1.442695, %v4524_v15  ;;  %v4526_v47 = vadd.f32 %v2886_v22, %v6415_v14  ;;  %v2888_v55 = vpop.f32.mrb[79].mxu1  ;;  %v4339_v56 = vpop.f32.mrb[63].mxu0  ;;  %v2961_v19 = vadd.f32 %v6428_v31, %v2928_v45  ;;  %v6608_v22 = vld [vmem:[%s6969_s6] ss:$12 sps:$4 sm:$0xff]  }
 0xc74   :  { %v4527_v40 = vadd.f32 %v2888_v55, %v6419_v39  ;;  %v3822_v16 = vmul.f32 -1.442695, %v4525_v60  ;;  %v6639_v45 = vld [vmem:[%s6969_s6 + $0x30] ss:$12 sps:$4 sm:$0xff]   ;;  %v6681_v55 = vld [vmem:[%s6969_s6 + $0x78] ss:$12 sps:$4 sm:$0xff]  }
 0xc75   :  { %4959 = vpow2.f32 %v3820_v54  ;;  %v3821_v43 = vmul.f32 -1.442695, %v4526_v47  ;;  %v6653_v54 = vld [vmem:[%s6969_s6 + $0x48] ss:$12 sps:$4 sm:$0xff]   ;;  %v6667_v47 = vld [vmem:[%s6969_s6 + $0x60] ss:$12 sps:$4 sm:$0xff]  }
 0xc76   :  { %v3823_v41 = vmul.f32 -1.442695, %v4527_v40  ;;  %v6695_v56 = vld [vmem:[%s6969_s6 + $0x90] ss:$12 sps:$4 sm:$0xff]   ;;  %v6709_v60 = vld [vmem:[%s6969_s6 + $0xa8] ss:$12 sps:$4 sm:$0xff]  }
 0xc77   :  { %4961 = vpow2.f32 %v3821_v43 }
 0xc78   :  { %4963 = vpow2.f32 %v3822_v16 }
 0xc79   :  { %4965 = vpow2.f32 %v3823_v41 }
 0xc7f   :  { %v4960_v58 = vpop.eup %4959 }
 0xc80   :  { %v2940_v44 = vadd.f32 1.0, %v4960_v58 }
 0xc81   :  { %v4962_v4 = vpop.eup %4961 }
 0xc82   :  { %4967 = vrcp.f32 %v2940_v44  ;;  %v2941_v37 = vadd.f32 1.0, %v4962_v4  ;;  %v4964_v0 = vpop.eup %4963 }
 0xc83   :  { %v4966_v11 = vpop.eup %4965  ;;  %v2954_v53 = vadd.f32 1.0, %v4964_v0 }
 0xc84   :  { %4969 = vrcp.f32 %v2941_v37  ;;  %v2955_v51 = vadd.f32 1.0, %v4966_v11 }
 0xc85   :  { %4971 = vrcp.f32 %v2954_v53 }
 0xc86   :  { %4973 = vrcp.f32 %v2955_v51 }
 0xc8c   :  { %v4968_v20 = vpop.eup %4967 }
 0xc8d   :  { %v2962_v57 = vmul.f32 %v4968_v20, %v2960_v25 }
 0xc8e   :  { %v4970_v3 = vpop.eup %4969 }
 0xc8f   :  { %v2964_v63 = vadd.f32 %v2962_v57, %v2220_v17  ;;  %v2963_v35 = vmul.f32 %v4970_v3, %v2961_v19  ;;  %v4972_v52 = vpop.eup %4971 }
 0xc90   :  { %v4974_v46 = vpop.eup %4973  ;;  %v2968_v34 = vsub.f32 1.0, %v4972_v52  ;;  %v2972_v49 = vmul.f32 %v4972_v52, %v6546_v62  ;;  %v6615_v62 = vld [vmem:[%s6969_s6 + $0x1c] ss:$12 sps:$4 sm:$0xff]  }
 0xc91   :  { %4975 = vtanh.f32 %v2964_v63  ;;  %v2965_v26 = vadd.f32 %v2963_v35, %v2223_v48  ;;  %v2969_v24 = vsub.f32 1.0, %v4974_v46  ;;  %v2973_v15 = vmul.f32 %v4974_v46, %v6548_v33  ;;  %v6625_v33 = vld [vmem:[%s6969_s6 + $0x18] ss:$12 sps:$4 sm:$0xff]  }
 0xc93   :  { %4977 = vtanh.f32 %v2965_v26 }
 0xc9b   :  { %v4976_v7 = vpop.eup %4975 }
 0xc9c   :  { %v2970_v12 = vmul.f32 %v4976_v7, %v2968_v34  ;;  %v2228_v7 = vadd.f32 %v6356_v6, %v6432_v5 }
 0xc9d   :  { %v4978_v42 = vpop.eup %4977 }
 0xc9e   :  { %v2971_v36 = vmul.f32 %v4978_v42, %v2969_v24  ;;  %v6599_v13 = vadd.f32 %v2972_v49, %v2970_v12  ;;  %v2231_v42 = vadd.f32 %v6360_v18, %v6432_v5 }
 0xca0   :  { %v6601_v9 = vadd.f32 %v2973_v15, %v2971_v36 }
 0xca2   :  { %v2976_v30 = vpack.c.bf16 %v6601_v9, %v6599_v13 }
 0xca4   :  { %3017 = vmatmul.mubr.bf16.vlgmr.msra.gmra.mrb[80].mxu1 %v2976_v30  ;;  %4357 = vmatmul.mubr.bf16.vlgmr.msra.gmra.mrb[64].mxu0 %v2976_v30 }
 0xca5   :  { %3121 = vmatpush1.bf16.msra.mxu1 %v6608_v22  ;;  %4361 = vmatpush3.bf16.msra.mxu0 %v6257_v61  ;;  %v6632_v61 = vld [vmem:[%s6969_s6 + $0x34] ss:$12 sps:$4 sm:$0xff]  }
 0xca6   :  { %3122 = vmatprep.subr.bf16.mxu1 %v6615_v62  ;;  %4362 = vmatprep.subr.bf16.mxu0 %v7004_v50 }
 0xca7   :  { %3152 = vmatprep.mubr.bf16.mxu1 %v7005_v2  ;;  %4376 = vmatprep.mubr.msk.bf16.mxu0 %vm5111_vm0, %v7004_v50 }
 0xca9   :  { %3123 = vmatpush1.bf16.msra.mxu1 %v6625_v33  ;;  %4363 = vmatpush3.bf16.msra.mxu0 %v6268_v8  ;;  %v6646_v8 = vld [vmem:[%s6969_s6 + $0x4c] ss:$12 sps:$4 sm:$0xff]  }
 0xcaa   :  { %3124 = vmatprep.subr.bf16.mxu1 %v6632_v61  ;;  %4364 = vmatprep.subr.bf16.mxu0 %v7004_v50 }
 0xcad   :  { %3125 = vmatpush1.bf16.msra.mxu1 %v6639_v45  ;;  %4365 = vmatpush3.bf16.msra.mxu0 %v6284_v38  ;;  %v6660_v38 = vld [vmem:[%s6969_s6 + $0x64] ss:$12 sps:$4 sm:$0xff]  }
 0xcae   :  { %3126 = vmatprep.subr.bf16.mxu1 %v6646_v8  ;;  %4366 = vmatprep.subr.bf16.mxu0 %v7004_v50 }
 0xcb1   :  { %3127 = vmatpush1.bf16.msra.mxu1 %v6653_v54  ;;  %4367 = vmatpush3.bf16.msra.mxu0 %v6291_v23  ;;  %v6674_v23 = vld [vmem:[%s6969_s6 + $0x7c] ss:$12 sps:$4 sm:$0xff]  }
 0xcb2   :  { %3128 = vmatprep.subr.bf16.mxu1 %v6660_v38  ;;  %4368 = vmatprep.subr.bf16.mxu0 %v7004_v50 }
 0xcb5   :  { %3129 = vmatpush1.bf16.msra.mxu1 %v6667_v47  ;;  %4369 = vmatpush3.bf16.msra.mxu0 %v6298_v27  ;;  %v6688_v27 = vld [vmem:[%s6969_s6 + $0x94] ss:$12 sps:$4 sm:$0xff]  }
 0xcb6   :  { %3130 = vmatprep.subr.bf16.mxu1 %v6674_v23  ;;  %4370 = vmatprep.subr.bf16.mxu0 %v7004_v50 }
 0xcb9   :  { %3131 = vmatpush1.bf16.msra.mxu1 %v6681_v55  ;;  %4371 = vmatpush3.bf16.msra.mxu0 %v6305_v21  ;;  %v6702_v21 = vld [vmem:[%s6969_s6 + $0xac] ss:$12 sps:$4 sm:$0xff]  }
 0xcba   :  { %3132 = vmatprep.subr.bf16.mxu1 %v6688_v27  ;;  %4372 = vmatprep.subr.bf16.mxu0 %v7004_v50 }
 0xcbd   :  { %3133 = vmatpush1.bf16.msra.mxu1 %v6695_v56  ;;  %4373 = vmatpush3.bf16.msra.mxu0 %v6312_v29  ;;  %v6716_v29 = vld [vmem:[%s6969_s6 + $0x4] ss:$12 sps:$4 sm:$0xff]  }
 0xcbe   :  { %3134 = vmatprep.subr.bf16.mxu1 %v6702_v21  ;;  %4374 = vmatprep.subr.bf16.mxu0 %v7004_v50 }
 0xcc1   :  { %3135 = vmatpush1.bf16.msra.mxu1 %v6709_v60  ;;  %4375 = vmatpush3.bf16.msra.mxu0 %v6319_v32 }
 0xcc2   :  { %3256 = vmatprep.subr.bf16.mxu1 %v6716_v29  ;;  %4380 = vmatprep.subr.bf16.mxu0 %v7004_v50 }
 0xd77   :  { %v3018_v43 = vpop.f32.mrb[80].mxu1  ;;  %v3061_v40 = vpop.f32.mrb[64].mxu0 }
 0xd78   :  { %v4528_v16 = vadd.f32 %v3018_v43, %v6415_v14  ;;  %v3020_v41 = vpop.f32.mrb[81].mxu1  ;;  %v4358_v58 = vpop.f32.mrb[65].mxu0  ;;  %v3096_v52 = vadd.f32 %v6428_v31, %v3061_v40 }
 0xd79   :  { %v3022_v44 = vpop.f32.mrb[82].mxu1  ;;  %v3064_v4 = vpop.f32.mrb[66].mxu0  ;;  %v4529_v53 = vadd.f32 %v3020_v41, %v6419_v39 }
 0xd7a   :  { %v3824_v37 = vmul.f32 -1.442695, %v4528_v16  ;;  %v4530_v32 = vadd.f32 %v3022_v44, %v6415_v14  ;;  %v3024_v0 = vpop.f32.mrb[83].mxu1  ;;  %v4359_v11 = vpop.f32.mrb[67].mxu0  ;;  %v3097_v12 = vadd.f32 %v6428_v31, %v3064_v4 }
 0xd7b   :  { %v4531_v51 = vadd.f32 %v3024_v0, %v6419_v39  ;;  %v3826_v20 = vmul.f32 -1.442695, %v4529_v53  ;;  %v6742_v53 = vld [vmem:[%s6969_s6 + $0x8] ss:$12 sps:$4 sm:$0xff]  }
 0xd7c   :  { %4979 = vpow2.f32 %v3824_v37  ;;  %v3825_v25 = vmul.f32 -1.442695, %v4530_v32 }
 0xd7d   :  { %v3827_v17 = vmul.f32 -1.442695, %v4531_v51  ;;  %v6781_v51 = vld [vmem:[%s6969_s6 + $0x68] ss:$12 sps:$4 sm:$0xff]  }
 0xd7e   :  { %4981 = vpow2.f32 %v3825_v25  ;;  %v6772_v25 = vld [vmem:[%s6969_s6 + $0x50] ss:$12 sps:$4 sm:$0xff]  }
 0xd7f   :  { %4983 = vpow2.f32 %v3826_v20  ;;  %v6790_v20 = vld [vmem:[%s6969_s6 + $0x80] ss:$12 sps:$4 sm:$0xff]  }
 0xd80   :  { %4985 = vpow2.f32 %v3827_v17  ;;  %v6799_v17 = vld [vmem:[%s6969_s6 + $0x98] ss:$12 sps:$4 sm:$0xff]  }
 0xd86   :  { %v4980_v57 = vpop.eup %4979 }
 0xd87   :  { %v3076_v19 = vadd.f32 1.0, %v4980_v57  ;;  %v6808_v57 = vld [vmem:[%s6969_s6 + $0xb0] ss:$12 sps:$4 sm:$0xff]  }
 0xd88   :  { %v4982_v3 = vpop.eup %4981 }
 0xd89   :  { %4987 = vrcp.f32 %v3076_v19  ;;  %v3077_v48 = vadd.f32 1.0, %v4982_v3  ;;  %v4984_v63 = vpop.eup %4983 }
 0xd8a   :  { %v4986_v35 = vpop.eup %4985  ;;  %v3090_v26 = vadd.f32 1.0, %v4984_v63 }
 0xd8b   :  { %4989 = vrcp.f32 %v3077_v48  ;;  %v3091_v46 = vadd.f32 1.0, %v4986_v35 }
 0xd8c   :  { %4991 = vrcp.f32 %v3090_v26 }
 0xd8d   :  { %4993 = vrcp.f32 %v3091_v46 }
 0xd93   :  { %v4988_v34 = vpop.eup %4987 }
 0xd94   :  { %v3098_v24 = vmul.f32 %v4988_v34, %v3096_v52 }
 0xd95   :  { %v4990_v49 = vpop.eup %4989 }
 0xd96   :  { %v3100_v36 = vadd.f32 %v3098_v24, %v2228_v7  ;;  %v3099_v15 = vmul.f32 %v4990_v49, %v3097_v12  ;;  %v4992_v43 = vpop.eup %4991 }
 0xd97   :  { %v4994_v40 = vpop.eup %4993  ;;  %v3104_v16 = vsub.f32 1.0, %v4992_v43  ;;  %v3108_v44 = vmul.f32 %v4992_v43, %v6599_v13  ;;  %v6754_v13 = vld [vmem:[%s6969_s6 + $0x20] ss:$12 sps:$4 sm:$0xff]  }
 0xd98   :  { %4995 = vtanh.f32 %v3100_v36  ;;  %v3101_v30 = vadd.f32 %v3099_v15, %v2231_v42  ;;  %v3105_v58 = vsub.f32 1.0, %v4994_v40  ;;  %v3109_v32 = vmul.f32 %v4994_v40, %v6601_v9  ;;  %v6763_v9 = vld [vmem:[%s6969_s6 + $0x38] ss:$12 sps:$4 sm:$0xff]  }
 0xd9a   :  { %4997 = vtanh.f32 %v3101_v30 }
 0xda2   :  { %v4996_v41 = vpop.eup %4995 }
 0xda3   :  { %v3106_v6 = vmul.f32 %v4996_v41, %v3104_v16 }
 0xda4   :  { %v4998_v37 = vpop.eup %4997 }
 0xda5   :  { %v3107_v4 = vmul.f32 %v4998_v37, %v3105_v58  ;;  %v6732_v0 = vadd.f32 %v3108_v44, %v3106_v6 }
 0xda7   :  { %v6734_v18 = vadd.f32 %v3109_v32, %v3107_v4  ;;  %v2236_v4 = vadd.f32 %v6354_v28, %v6432_v5 }
 0xda9   :  { %v3112_v11 = vpack.c.bf16 %v6734_v18, %v6732_v0 }
 0xdab   :  { %3153 = vmatmul.mubr.bf16.vlgmr.msra.gmra.mrb[84].mxu1 %v3112_v11  ;;  %4377 = vmatmul.mubr.bf16.vlgmr.msra.gmra.mrb[68].mxu0 %v3112_v11 }
 0xdac   :  { %3257 = vmatpush1.bf16.msra.mxu1 %v6608_v22  ;;  %4381 = vmatpush3.bf16.msra.mxu0 %v6742_v53 }
 0xdad   :  { %3258 = vmatprep.subr.bf16.mxu1 %v6615_v62  ;;  %4382 = vmatprep.subr.bf16.mxu0 %v7004_v50 }
 0xdae   :  { %3288 = vmatprep.mubr.bf16.mxu1 %v7005_v2  ;;  %4396 = vmatprep.mubr.msk.bf16.mxu0 %vm5111_vm0, %v7004_v50 }
 0xdb0   :  { %3259 = vmatpush1.bf16.msra.mxu1 %v6625_v33  ;;  %4383 = vmatpush3.bf16.msra.mxu0 %v6754_v13 }
 0xdb1   :  { %3260 = vmatprep.subr.bf16.mxu1 %v6632_v61  ;;  %4384 = vmatprep.subr.bf16.mxu0 %v7004_v50 }
 0xdb4   :  { %3261 = vmatpush1.bf16.msra.mxu1 %v6639_v45  ;;  %4385 = vmatpush3.bf16.msra.mxu0 %v6763_v9 }
 0xdb5   :  { %3262 = vmatprep.subr.bf16.mxu1 %v6646_v8  ;;  %4386 = vmatprep.subr.bf16.mxu0 %v7004_v50 }
 0xdb8   :  { %3263 = vmatpush1.bf16.msra.mxu1 %v6653_v54  ;;  %4387 = vmatpush3.bf16.msra.mxu0 %v6772_v25 }
 0xdb9   :  { %3264 = vmatprep.subr.bf16.mxu1 %v6660_v38  ;;  %4388 = vmatprep.subr.bf16.mxu0 %v7004_v50 }
 0xdbc   :  { %3265 = vmatpush1.bf16.msra.mxu1 %v6667_v47  ;;  %4389 = vmatpush3.bf16.msra.mxu0 %v6781_v51 }
 0xdbd   :  { %3266 = vmatprep.subr.bf16.mxu1 %v6674_v23  ;;  %4390 = vmatprep.subr.bf16.mxu0 %v7004_v50 }
 0xdc0   :  { %3267 = vmatpush1.bf16.msra.mxu1 %v6681_v55  ;;  %4391 = vmatpush3.bf16.msra.mxu0 %v6790_v20 }
 0xdc1   :  { %3268 = vmatprep.subr.bf16.mxu1 %v6688_v27  ;;  %4392 = vmatprep.subr.bf16.mxu0 %v7004_v50 }
 0xdc4   :  { %3269 = vmatpush1.bf16.msra.mxu1 %v6695_v56  ;;  %4393 = vmatpush3.bf16.msra.mxu0 %v6799_v17 }
 0xdc5   :  { %3270 = vmatprep.subr.bf16.mxu1 %v6702_v21  ;;  %4394 = vmatprep.subr.bf16.mxu0 %v7004_v50 }
 0xdc8   :  { %3271 = vmatpush1.bf16.msra.mxu1 %v6709_v60  ;;  %4395 = vmatpush3.bf16.msra.mxu0 %v6808_v57 }
 0xdc9   :  { %4400 = vmatprep.subr.bf16.mxu0 %v7004_v50  ;;  %3392 = vmatprep.subr.bf16.mxu1 %v6716_v29 }
 0xe7e   :  { %v3154_v19 = vpop.f32.mrb[84].mxu1  ;;  %v3197_v3 = vpop.f32.mrb[68].mxu0 }
 0xe7f   :  { %v4532_v48 = vadd.f32 %v3154_v19, %v6415_v14  ;;  %v3156_v63 = vpop.f32.mrb[85].mxu1  ;;  %v4378_v35 = vpop.f32.mrb[69].mxu0  ;;  %v3232_v6 = vadd.f32 %v6428_v31, %v3197_v3 }
 0xe80   :  { %v3158_v26 = vpop.f32.mrb[86].mxu1  ;;  %v3200_v52 = vpop.f32.mrb[70].mxu0  ;;  %v4533_v12 = vadd.f32 %v3156_v63, %v6419_v39 }
 0xe81   :  { %v3828_v46 = vmul.f32 -1.442695, %v4532_v48  ;;  %v4534_v34 = vadd.f32 %v3158_v26, %v6415_v14  ;;  %v3160_v7 = vpop.f32.mrb[87].mxu1  ;;  %v4379_v24 = vpop.f32.mrb[71].mxu0  ;;  %v3233_v11 = vadd.f32 %v6428_v31, %v3200_v52  ;;  %v2239_v48 = vadd.f32 %v6358_v10, %v6432_v5 }
 0xe82   :  { %v4535_v42 = vadd.f32 %v3160_v7, %v6419_v39  ;;  %v3830_v29 = vmul.f32 -1.442695, %v4533_v12 }
 0xe83   :  { %4999 = vpow2.f32 %v3828_v46  ;;  %v3829_v49 = vmul.f32 -1.442695, %v4534_v34 }
 0xe84   :  { %v3831_v36 = vmul.f32 -1.442695, %v4535_v42 }
 0xe85   :  { %5001 = vpow2.f32 %v3829_v49 }
 0xe86   :  { %5003 = vpow2.f32 %v3830_v29 }
 0xe87   :  { %5005 = vpow2.f32 %v3831_v36 }
 0xe8d   :  { %v5000_v15 = vpop.eup %4999 }
 0xe8e   :  { %v3212_v30 = vadd.f32 1.0, %v5000_v15  ;;  %v2244_v15 = vadd.f32 %v6404_v1, %v6432_v5 }
 0xe8f   :  { %v5002_v43 = vpop.eup %5001 }
 0xe90   :  { %5007 = vrcp.f32 %v3212_v30  ;;  %v3213_v40 = vadd.f32 1.0, %v5002_v43  ;;  %v5004_v16 = vpop.eup %5003 }
 0xe91   :  { %v5006_v41 = vpop.eup %5005  ;;  %v3226_v58 = vadd.f32 1.0, %v5004_v16  ;;  %v2247_v16 = vadd.f32 %v6408_v59, %v6432_v5 }
 0xe92   :  { %5009 = vrcp.f32 %v3213_v40  ;;  %v3227_v44 = vadd.f32 1.0, %v5006_v41 }
 0xe93   :  { %5011 = vrcp.f32 %v3226_v58 }
 0xe94   :  { %5013 = vrcp.f32 %v3227_v44 }
 0xe9a   :  { %v5008_v37 = vpop.eup %5007 }
 0xe9b   :  { %v3234_v32 = vmul.f32 %v5008_v37, %v3232_v6 }
 0xe9c   :  { %v5010_v19 = vpop.eup %5009 }
 0xe9d   :  { %v3236_v63 = vadd.f32 %v3234_v32, %v2236_v4  ;;  %v3235_v35 = vmul.f32 %v5010_v19, %v3233_v11  ;;  %v5012_v3 = vpop.eup %5011 }
 0xe9e   :  { %v5014_v46 = vpop.eup %5013  ;;  %v3240_v34 = vsub.f32 1.0, %v5012_v3  ;;  %v3244_v12 = vmul.f32 %v5012_v3, %v6732_v0  ;;  %v4731_v3 = vld [vmem:[%s6972_s9] sm:$0xff]  }
 0xe9f   :  { %5015 = vtanh.f32 %v3236_v63  ;;  %v3237_v26 = vadd.f32 %v3235_v35, %v2239_v48  ;;  %v3241_v24 = vsub.f32 1.0, %v5014_v46  ;;  %v3245_v52 = vmul.f32 %v5014_v46, %v6734_v18 }
 0xea1   :  { %5017 = vtanh.f32 %v3237_v26 }
 0xea9   :  { %v5016_v7 = vpop.eup %5015 }
 0xeaa   :  { %v3242_v28 = vmul.f32 %v5016_v7, %v3240_v34  ;;  %v4732_v34 = vld [vmem:[%s6972_s9 + $0x8] sm:$0xff]   ;;  %v4733_v7 = vld [vmem:[%s6972_s9 + $0x10] sm:$0xff]  }
 0xeab   :  { %v5018_v49 = vpop.eup %5017 }
 0xeac   :  { %v3243_v31 = vmul.f32 %v5018_v49, %v3241_v24  ;;  %v6825_v42 = vadd.f32 %v3244_v12, %v3242_v28  ;;  %v4734_v24 = vld [vmem:[%s6972_s9 + $0x18] sm:$0xff]   ;;  %v4735_v28 = vld [vmem:[%s6972_s9 + $0x20] sm:$0xff]   ;;  %v4736_v12 = vld [vmem:[%s6972_s9 + $0x28] sm:$0xff]  }
 0xead   :  { %v4737_v49 = vld [vmem:[%s6972_s9 + $0x30] sm:$0xff]  }
 0xeae   :  { %v6827_v10 = vadd.f32 %v3245_v52, %v3243_v31  ;;  %v4738_v31 = vld [vmem:[%s6972_s9 + $0x38] sm:$0xff]  }
 0xeb0   :  { %v6831_v29 = vpack.c.bf16 %v6827_v10, %v6825_v42 }
 0xeb2   :  { %3289 = vmatmul.mubr.bf16.vlgmr.msra.gmra.mrb[88].mxu1 %v6831_v29  ;;  %4397 = vmatmul.mubr.bf16.vlgmr.msra.gmra.mrb[72].mxu0 %v6831_v29 }
 0xeb3   :  { %4401 = vmatpush3.bf16.msra.mxu0 %v6742_v53  ;;  %3393 = vmatpush1.bf16.msra.mxu1 %v6608_v22 }
 0xeb4   :  { %4402 = vmatprep.subr.bf16.mxu0 %v7004_v50  ;;  %3394 = vmatprep.subr.bf16.mxu1 %v6615_v62 }
 0xeb5   :  { %3424 = vmatprep.mubr.bf16.mxu1 %v7005_v2  ;;  %4416 = vmatprep.mubr.msk.bf16.mxu0 %vm5111_vm0, %v7004_v50 }
 0xeb7   :  { %4403 = vmatpush3.bf16.msra.mxu0 %v6754_v13  ;;  %3395 = vmatpush1.bf16.msra.mxu1 %v6625_v33 }
 0xeb8   :  { %4404 = vmatprep.subr.bf16.mxu0 %v7004_v50  ;;  %3396 = vmatprep.subr.bf16.mxu1 %v6632_v61 }
 0xebb   :  { %4405 = vmatpush3.bf16.msra.mxu0 %v6763_v9  ;;  %3397 = vmatpush1.bf16.msra.mxu1 %v6639_v45 }
 0xebc   :  { %4406 = vmatprep.subr.bf16.mxu0 %v7004_v50  ;;  %3398 = vmatprep.subr.bf16.mxu1 %v6646_v8 }
 0xebf   :  { %4407 = vmatpush3.bf16.msra.mxu0 %v6772_v25  ;;  %3399 = vmatpush1.bf16.msra.mxu1 %v6653_v54 }
 0xec0   :  { %4408 = vmatprep.subr.bf16.mxu0 %v7004_v50  ;;  %3400 = vmatprep.subr.bf16.mxu1 %v6660_v38 }
 0xec3   :  { %4409 = vmatpush3.bf16.msra.mxu0 %v6781_v51  ;;  %3401 = vmatpush1.bf16.msra.mxu1 %v6667_v47 }
 0xec4   :  { %4410 = vmatprep.subr.bf16.mxu0 %v7004_v50  ;;  %3402 = vmatprep.subr.bf16.mxu1 %v6674_v23 }
 0xec7   :  { %4411 = vmatpush3.bf16.msra.mxu0 %v6790_v20  ;;  %3403 = vmatpush1.bf16.msra.mxu1 %v6681_v55  ;;  %v6876_v20 = vld [vmem:[%s6971_s8] ss:$0 sm:$0xff] }
 0xec8   :  { %4412 = vmatprep.subr.bf16.mxu0 %v7004_v50  ;;  %3404 = vmatprep.subr.bf16.mxu1 %v6688_v27 }
 0xecb   :  { %4413 = vmatpush3.bf16.msra.mxu0 %v6799_v17  ;;  %3405 = vmatpush1.bf16.msra.mxu1 %v6695_v56 }
 0xecc   :  { %4414 = vmatprep.subr.bf16.mxu0 %v7004_v50  ;;  %3406 = vmatprep.subr.bf16.mxu1 %v6702_v21 }
 0xecf   :  { %4415 = vmatpush3.bf16.msra.mxu0 %v6808_v57  ;;  %3407 = vmatpush1.bf16.msra.mxu1 %v6709_v60 }
 0xed0   :  { %4420 = vmatprep.subr.bf16.mxu0 %v7004_v50 }
 0xf85   :  { %v3290_v2 = vpop.f32.mrb[88].mxu1  ;;  %v3333_v22 = vpop.f32.mrb[72].mxu0 }
 0xf86   :  { %v4536_v62 = vadd.f32 %v3290_v2, %v6415_v14  ;;  %v3292_v33 = vpop.f32.mrb[89].mxu1  ;;  %v4398_v61 = vpop.f32.mrb[73].mxu0  ;;  %v3368_v17 = vadd.f32 %v6876_v20, %v3333_v22 }
 0xf87   :  { %v3294_v45 = vpop.f32.mrb[90].mxu1  ;;  %v3336_v8 = vpop.f32.mrb[74].mxu0  ;;  %v4537_v55 = vadd.f32 %v3292_v33, %v6419_v39 }
 0xf88   :  { %v3832_v54 = vmul.f32 -1.442695, %v4536_v62  ;;  %v4538_v38 = vadd.f32 %v3294_v45, %v6415_v14  ;;  %v3296_v47 = vpop.f32.mrb[91].mxu1  ;;  %v4399_v23 = vpop.f32.mrb[75].mxu0  ;;  %v3369_v43 = vadd.f32 %v6876_v20, %v3336_v8 }
 0xf89   :  { %v4539_v56 = vadd.f32 %v3296_v47, %v6419_v39  ;;  %v3834_v21 = vmul.f32 -1.442695, %v4537_v55 }
 0xf8a   :  { %5019 = vpow2.f32 %v3832_v54  ;;  %v3833_v27 = vmul.f32 -1.442695, %v4538_v38 }
 0xf8b   :  { %v3835_v60 = vmul.f32 -1.442695, %v4539_v56 }
 0xf8c   :  { %5021 = vpow2.f32 %v3833_v27 }
 0xf8d   :  { %5023 = vpow2.f32 %v3834_v21 }
 0xf8e   :  { %5025 = vpow2.f32 %v3835_v60 }
 0xf94   :  { %v5020_v0 = vpop.eup %5019 }
 0xf95   :  { %v3348_v18 = vadd.f32 1.0, %v5020_v0 }
 0xf96   :  { %v5022_v53 = vpop.eup %5021 }
 0xf97   :  { %5027 = vrcp.f32 %v3348_v18  ;;  %v3349_v13 = vadd.f32 1.0, %v5022_v53  ;;  %v5024_v9 = vpop.eup %5023 }
 0xf98   :  { %v5026_v25 = vpop.eup %5025  ;;  %v3362_v51 = vadd.f32 1.0, %v5024_v9 }
 0xf99   :  { %5029 = vrcp.f32 %v3349_v13  ;;  %v3363_v57 = vadd.f32 1.0, %v5026_v25 }
 0xf9a   :  { %5031 = vrcp.f32 %v3362_v51 }
 0xf9b   :  { %5033 = vrcp.f32 %v3363_v57  ;;  %v3840_v57 = vld [vmem:[%s6973_s10] ss:$0 sm:$0xff] }
 0xfa1   :  { %v5028_v36 = vpop.eup %5027 }
 0xfa2   :  { %v3370_v30 = vmul.f32 %v5028_v36, %v3368_v17  ;;  %v7030_v36 = vld [vmem:[#allocation5_spill] sm:$0xff] }
 0xfa3   :  { %v5030_v40 = vpop.eup %5029 }
 0xfa4   :  { %v3372_v41 = vadd.f32 %v3370_v30, %v2244_v15  ;;  %v3371_v58 = vmul.f32 %v5030_v40, %v3369_v43  ;;  %v5032_v44 = vpop.eup %5031  ;;  %v2255_v15 = vadd.f32 %v7030_v36, %v6432_v5 }
 0xfa5   :  { %v5034_v37 = vpop.eup %5033  ;;  %v3376_v4 = vsub.f32 1.0, %v5032_v44  ;;  %v3380_v19 = vmul.f32 %v5032_v44, %v6825_v42 }
 0xfa6   :  { %5035 = vtanh.f32 %v3372_v41  ;;  %v3373_v6 = vadd.f32 %v3371_v58, %v2247_v16  ;;  %v3377_v11 = vsub.f32 1.0, %v5034_v37  ;;  %v3381_v35 = vmul.f32 %v5034_v37, %v6827_v10 }
 0xfa8   :  { %5037 = vtanh.f32 %v3373_v6 }
 0xfb0   :  { %v5036_v32 = vpop.eup %5035 }
 0xfb1   :  { %v3378_v1 = vmul.f32 %v5036_v32, %v3376_v4 }
 0xfb2   :  { %v5038_v48 = vpop.eup %5037 }
 0xfb3   :  { %v3379_v63 = vmul.f32 %v5038_v48, %v3377_v11  ;;  %v6886_v26 = vadd.f32 %v3380_v19, %v3378_v1 }
 0xfb5   :  { %v6888_v59 = vadd.f32 %v3381_v35, %v3379_v63 }
 0xfb7   :  { %v3384_v46 = vpack.c.bf16 %v6888_v59, %v6886_v26 }
 0xfb9   :  { %3425 = vmatmul.mubr.bf16.vlgmr.msra.gmra.mrb[92].mxu1 %v3384_v46  ;;  %4417 = vmatmul.mubr.bf16.vlgmr.msra.gmra.mrb[76].mxu0 %v3384_v46 }
 0xfba   :  { %4421 = vmatpush3.bf16.msra.mxu0 %v4731_v3  ;;  %4436 = vmatprep.mubr.msk.bf16.mxu0 %vm5111_vm0, %v7004_v50 }
 0xfbb   :  { %4422 = vmatprep.subr.bf16.mxu0 %v7004_v50 }
 0xfbe   :  { %4423 = vmatpush3.bf16.msra.mxu0 %v4732_v34 }
 0xfbf   :  { %4424 = vmatprep.subr.bf16.mxu0 %v7004_v50 }
 0xfc2   :  { %4425 = vmatpush3.bf16.msra.mxu0 %v4733_v7 }
 0xfc3   :  { %4426 = vmatprep.subr.bf16.mxu0 %v7004_v50 }
 0xfc6   :  { %4427 = vmatpush3.bf16.msra.mxu0 %v4734_v24 }
 0xfc7   :  { %4428 = vmatprep.subr.bf16.mxu0 %v7004_v50 }
 0xfca   :  { %4429 = vmatpush3.bf16.msra.mxu0 %v4735_v28 }
 0xfcb   :  { %4430 = vmatprep.subr.bf16.mxu0 %v7004_v50 }
 0xfce   :  { %4431 = vmatpush3.bf16.msra.mxu0 %v4736_v12 }
 0xfcf   :  { %4432 = vmatprep.subr.bf16.mxu0 %v7004_v50 }
 0xfd2   :  { %4433 = vmatpush3.bf16.msra.mxu0 %v4737_v49 }
 0xfd3   :  { %4434 = vmatprep.subr.bf16.mxu0 %v7004_v50 }
 0xfd6   :  { %4435 = vmatpush3.bf16.msra.mxu0 %v4738_v31 }
 0xfd9   :  { %4437 = vmatmul.mubr.bf16.vlgmr.msra.gmra.mrb[80].mxu0 %v6831_v29 }
 0xfda   :  { %4440 = vmatprep.mubr.msk.bf16.mxu0 %vm5111_vm0, %v7004_v50 }
 0xfe1   :  { %4441 = vmatmul.mubr.bf16.gmra.mrb[84].mxu0 %v3384_v46 }
 0xfe2   :  { %4444 = vmatprep.mubr.msk.bf16.mxu0 %vm5111_vm0, %v7004_v50 }
0x108c   :  { %v3426_v52 = vpop.f32.mrb[92].mxu1  ;;  %v3469_v42 = vpop.f32.mrb[76].mxu0 }
0x108d   :  { %v4540_v10 = vadd.f32 %v3426_v52, %v6415_v14  ;;  %v3428_v2 = vpop.f32.mrb[93].mxu1  ;;  %v4418_v22 = vpop.f32.mrb[77].mxu0  ;;  %v3504_v18 = vadd.f32 %v6876_v20, %v3469_v42 }
0x108e   :  { %v3430_v62 = vpop.f32.mrb[94].mxu1  ;;  %v3472_v33 = vpop.f32.mrb[78].mxu0  ;;  %v4541_v54 = vadd.f32 %v3428_v2, %v6419_v39 }
0x108f   :  { %v3836_v61 = vmul.f32 -1.442695, %v4540_v10  ;;  %v4542_v45 = vadd.f32 %v3430_v62, %v6415_v14  ;;  %v3432_v8 = vpop.f32.mrb[95].mxu1  ;;  %v4419_v29 = vpop.f32.mrb[79].mxu0  ;;  %v3505_v51 = vadd.f32 %v6876_v20, %v3472_v33 }
0x1090   :  { %v4543_v47 = vadd.f32 %v3432_v8, %v6419_v39  ;;  %v3838_v50 = vmul.f32 -1.442695, %v4541_v54  ;;  %v7029_v39 = vld [vmem:[#allocation4_spill] sm:$0xff] }
0x1091   :  { %5039 = vpow2.f32 %v3836_v61  ;;  %v3837_v38 = vmul.f32 -1.442695, %v4542_v45  ;;  %v2252_v9 = vadd.f32 %v7029_v39, %v6432_v5 }
0x1092   :  { %v3839_v23 = vmul.f32 -1.442695, %v4543_v47 }
0x1093   :  { %5041 = vpow2.f32 %v3837_v38 }
0x1094   :  { %5043 = vpow2.f32 %v3838_v50 }
0x1095   :  { %5045 = vpow2.f32 %v3839_v23 }
0x109b   :  { %v5040_v55 = vpop.eup %5039 }
0x109c   :  { %v3484_v27 = vadd.f32 1.0, %v5040_v55 }
0x109d   :  { %v5042_v56 = vpop.eup %5041 }
0x109e   :  { %5047 = vrcp.f32 %v3484_v27  ;;  %v3485_v21 = vadd.f32 1.0, %v5042_v56  ;;  %v5044_v14 = vpop.eup %5043 }
0x109f   :  { %v5046_v60 = vpop.eup %5045  ;;  %v3498_v0 = vadd.f32 1.0, %v5044_v14 }
0x10a0   :  { %5049 = vrcp.f32 %v3485_v21  ;;  %v3499_v53 = vadd.f32 1.0, %v5046_v60 }
0x10a1   :  { %5051 = vrcp.f32 %v3498_v0 }
0x10a2   :  { %5053 = vrcp.f32 %v3499_v53 }
0x10a8   :  { %v5048_v13 = vpop.eup %5047 }
0x10a9   :  { %v3506_v25 = vmul.f32 %v5048_v13, %v3504_v18 }
0x10aa   :  { %v5050_v17 = vpop.eup %5049 }
0x10ab   :  { %v3508_v30 = vadd.f32 %v3506_v25, %v2252_v9  ;;  %v3507_v43 = vmul.f32 %v5050_v17, %v3505_v51  ;;  %v5052_v5 = vpop.eup %5051 }
0x10ac   :  { %v3630_v40 = vpop.f32.mrb[80].mxu0  ;;  %v5054_v4 = vpop.eup %5053  ;;  %v3512_v19 = vsub.f32 1.0, %v5052_v5  ;;  %v3516_v34 = vmul.f32 %v5052_v5, %v6886_v26 }
0x10ad   :  { %5055 = vtanh.f32 %v3508_v30  ;;  %v3509_v16 = vadd.f32 %v3507_v43, %v2255_v15  ;;  %v3631_v41 = vadd.f32 %v3840_v57, %v3630_v40  ;;  %v4438_v58 = vpop.f32.mrb[81].mxu0  ;;  %v3513_v3 = vsub.f32 1.0, %v5054_v4 }
0x10ae   :  { %v3633_v6 = vpop.f32.mrb[82].mxu0  ;;  %v3517_v28 = vmul.f32 %v5054_v4, %v6888_v59 }
0x10af   :  { %5057 = vtanh.f32 %v3509_v16  ;;  %3653 = vst [vmem:[%s6974_s11] sm:$0xff] %v3631_v41  ;;  %v3634_v20 = vadd.f32 %v3840_v57, %v3633_v6  ;;  %v4439_v44 = vpop.f32.mrb[83].mxu0 }
0x10b1   :  { %3654 = vst [vmem:[%s6974_s11 + $0x8] sm:$0xff] %v3634_v20 }
0x10b4   :  { %v3638_v37 = vpop.f32.mrb[84].mxu0 }
0x10b5   :  { %v3639_v32 = vadd.f32 %v3840_v57, %v3638_v37  ;;  %v4442_v11 = vpop.f32.mrb[85].mxu0 }
0x10b6   :  { %v3641_v1 = vpop.f32.mrb[86].mxu0 }
0x10b7   :  { %v5056_v48 = vpop.eup %5055  ;;  %3655 = vst [vmem:[%s6974_s11 + $0x10] sm:$0xff] %v3639_v32  ;;  %v3642_v63 = vadd.f32 %v3840_v57, %v3641_v1  ;;  %v4443_v35 = vpop.f32.mrb[87].mxu0 }
0x10b8   :  { %v3514_v46 = vmul.f32 %v5056_v48, %v3512_v19 }
0x10b9   :  { %v5058_v7 = vpop.eup %5057  ;;  %3656 = vst [vmem:[%s6974_s11 + $0x18] sm:$0xff] %v3642_v63 }
0x10ba   :  { %v3515_v24 = vmul.f32 %v5058_v7, %v3513_v3  ;;  %v3518_v12 = vadd.f32 %v3516_v34, %v3514_v46 }
0x10bc   :  { %v3519_v49 = vadd.f32 %v3517_v28, %v3515_v24 }
0x10be   :  { %v3520_v31 = vpack.c.bf16 %v3519_v49, %v3518_v12 }
0x10c0   :  { %4445 = vmatmul.mubr.bf16.gmra.mrb[88].mxu0 %v3520_v31 }
0x1193   :  { %v3646_v52 = vpop.f32.mrb[88].mxu0 }
0x1194   :  { %v3647_v42 = vadd.f32 %v3840_v57, %v3646_v52  ;;  %v4446_v10 = vpop.f32.mrb[89].mxu0 }
0x1195   :  { %v3649_v2 = vpop.f32.mrb[90].mxu0 }
0x1196   :  { %3657 = vst [vmem:[%s6974_s11 + $0x20] sm:$0xff] %v3647_v42  ;;  %v3650_v26 = vadd.f32 %v3840_v57, %v3649_v2  ;;  %v4447_v22 = vpop.f32.mrb[91].mxu0 }
0x1198   :  { %3658 = vst [vmem:[%s6974_s11 + $0x28] sm:$0xff] %v3650_v26 }

</bundles_post_ra>
